<compile_context>
chip_gen: v7x
topology: tpu7x:2x2x1
jax: 0.10.0
libtpu: 0.0.40
codegen_flags: <defaults>
</compile_context>

<pallas_src>
import math
import functools

import jax
import jax.numpy as jnp
from jax.experimental import pallas as pl
from jax.experimental.pallas import tpu as pltpu

LOG_2PI = math.log(2.0 * math.pi)
LP_LANES = 128          # lane-dense lp output width
_MiB = 1 << 20


def _round_up(x, m):
    return ((x + m - 1) // m) * m


def _vael1_kernel(x_ref, wenc_ref, benc_ref, wdec_ref, bdec_ref, *out_refs,
                  emit_recon, compute_dtype, neg_half_inv_var, lp_const):
    """x_ref (TB, V) f32; wenc (V, Ep); benc (1, Ep); wdec (Ep, V); bdec (1, V)."""
    if emit_recon:
        loc_ref, recon_ref, lp_ref = out_refs
    else:
        loc_ref, lp_ref = out_refs

    # Cast x to the MXU input dtype *inside* the kernel (cheap VPU op on an
    # otherwise idle VALU slot) instead of writing a second copy of x from the
    # wrapper.
    x_c = x_ref[...].astype(compute_dtype)

    # Encoder matmul (MXU): loc = x @ W_enc^T + b_enc   (f32 accumulation)
    loc = jnp.dot(x_c, wenc_ref[...],
                  preferred_element_type=jnp.float32) + benc_ref[...]
    loc_ref[...] = loc

    # Decoder matmul (MXU): recon = loc @ W_dec^T + b_dec
    recon = jnp.dot(loc.astype(compute_dtype), wdec_ref[...],
                    preferred_element_type=jnp.float32) + bdec_ref[...]
    if emit_recon:
        recon_ref[...] = recon.astype(recon_ref.dtype)

    # Residual / Gaussian log-prob in full f32: re-read the f32 x tile from
    # VMEM (plentiful vld slots) so the bf16 cast never touches the lp math.
    diff = x_ref[...] - recon
    sq_sum = jnp.sum(diff * diff, axis=-1, keepdims=True)        # (TB, 1)
    lp_row = neg_half_inv_var * sq_sum + lp_const                # (TB, 1)
    # Lane-dense (unmasked) store: broadcast the per-row scalar over 128 lanes.
    lp_ref[...] = jnp.broadcast_to(lp_row, lp_ref.shape)


def prepare_vael1_params(w_enc, b_enc, w_dec, b_dec,
                         compute_dtype=jnp.bfloat16):
    """One-time weight prep (transpose, zero-pad to lane-aligned E, cast).

    w_enc: (E, V)  nn.Linear(V, E).weight layout
    b_enc: (E,)
    w_dec: (V, E)  nn.Linear(E, V).weight layout
    b_dec: (V,)
    Cache the returned dict across training steps — rebuilding it per call is
    pure recurring HBM traffic.
    """
    E, V = w_enc.shape
    E_pad = _round_up(E, 128)
    wenc_t = jnp.zeros((V, E_pad), jnp.float32).at[:, :E].set(
        jnp.asarray(w_enc, jnp.float32).T).astype(compute_dtype)     # (V, Ep)
    benc2 = jnp.zeros((1, E_pad), jnp.float32).at[:, :E].set(
        jnp.asarray(b_enc, jnp.float32))                             # (1, Ep) f32
    wdec_t = jnp.zeros((E_pad, V), jnp.float32).at[:E, :].set(
        jnp.asarray(w_dec, jnp.float32).T).astype(compute_dtype)     # (Ep, V)
    bdec2 = jnp.asarray(b_dec, jnp.float32).reshape(1, V)            # (1, V) f32
    return dict(wenc_t=wenc_t, benc=benc2, wdec_t=wdec_t, bdec=bdec2,
                V=V, E=E, E_pad=E_pad, compute_dtype=compute_dtype)


def _vmem_budget(tb, V, E_pad, emit_recon, w_itemsize, recon_itemsize,
                 weight_buffers):
    per_step = 2 * tb * V * 4             # x tile (f32), double buffered
    per_step += 2 * tb * E_pad * 4        # loc output tile
    per_step += 2 * tb * LP_LANES * 4     # lp output tile
    if emit_recon:
        per_step += 2 * tb * V * recon_itemsize
    weights = weight_buffers * (2 * V * E_pad * w_itemsize + (E_pad + V) * 4)
    return per_step + weights


def vael1_forward(x_nchw, params, *, b_scale_out=0.0, tb=512,
                  return_recon=False, recon_dtype=jnp.float32,
                  num_tensorcores=1):
    """VAEL1 encode/decode/log-prob via a Pallas TPU kernel.

    x_nchw:          (B, C, H, W) float32 (PyTorch NCHW convention)
    params:          dict from prepare_vael1_params (cache it across steps)
    b_scale_out:     static Python float (the module stores a constant 0.0)
    num_tensorcores: set to 2 on v7x to shard the batch grid across both TCs;
                     on single-TC v5e/v6e splitting only adds per-step overhead.
    """
    B = x_nchw.shape[0]
    V, E, E_pad = params["V"], params["E"], params["E_pad"]
    compute_dtype = params["compute_dtype"]
    assert int(math.prod(x_nchw.shape[1:])) == V

    w_itemsize = jnp.dtype(compute_dtype).itemsize
    recon_itemsize = jnp.dtype(recon_dtype).itemsize

    # ---- batch tile selection: biggest tile that fits the VMEM budget -------
    tb = _round_up(max(16, min(int(tb), 512)), 16)   # multiple of 16 keeps a
    if num_tensorcores > 1 and B >= 32:              # bf16-block option open
        tb = min(tb, _round_up(-(-B // num_tensorcores), 16))
    tb = min(tb, _round_up(B, 16))
    try:
        phys_vmem = int(pltpu.get_tpu_info().vmem_capacity_bytes)
    except Exception:
        phys_vmem = 64 * _MiB                        # v7x: smallest VMEM part
    budget_cap = min(40 * _MiB, int(phys_vmem * 0.6))
    while (_vmem_budget(tb, V, E_pad, return_recon, w_itemsize,
                        recon_itemsize, 2) > budget_cap and tb > 16):
        tb = max(16, _round_up(tb // 2, 16))
    B_pad = _round_up(B, tb)

    # x: reshape is a view; keep it in f32 (cast happens in-kernel) and only
    # pad when B is ragged — no extra full-array HBM passes in the common case.
    x_flat = x_nchw.reshape(B, V)
    if x_flat.dtype != jnp.float32:
        x_flat = x_flat.astype(jnp.float32)
    if B_pad != B:
        x_flat = jnp.pad(x_flat, ((0, B_pad - B), (0, 0)))

    # Fold the log-prob constants at trace time.
    log_sigma = float(b_scale_out)
    neg_half_inv_var = -0.5 * math.exp(-2.0 * log_sigma)
    lp_const = -float(V) * (log_sigma + 0.5 * LOG_2PI)

    kernel = functools.partial(_vael1_kernel,
                               emit_recon=return_recon,
                               compute_dtype=compute_dtype,
                               neg_half_inv_var=neg_half_inv_var,
                               lp_const=lp_const)

    out_shape = [jax.ShapeDtypeStruct((B_pad, E_pad), jnp.float32)]
    out_specs = [pl.BlockSpec((tb, E_pad), lambda i: (i, 0))]
    if return_recon:
        out_shape.append(jax.ShapeDtypeStruct((B_pad, V), recon_dtype))
        out_specs.append(pl.BlockSpec((tb, V), lambda i: (i, 0)))
    out_shape.append(jax.ShapeDtypeStruct((B_pad, LP_LANES), jnp.float32))
    out_specs.append(pl.BlockSpec((tb, LP_LANES), lambda i: (i, 0)))

    def make_in_specs(single_buffer_weights):
        wkw = dict(pipeline_mode=pl.Buffered(1)) if single_buffer_weights else {}
        return [
            pl.BlockSpec((tb, V), lambda i: (i, 0)),            # x tile
            pl.BlockSpec((V, E_pad), lambda i: (0, 0), **wkw),  # W_enc^T (resident)
            pl.BlockSpec((1, E_pad), lambda i: (0, 0), **wkw),  # b_enc
            pl.BlockSpec((E_pad, V), lambda i: (0, 0), **wkw),  # W_dec^T (resident)
            pl.BlockSpec((1, V), lambda i: (0, 0), **wkw),      # b_dec
        ]

    # Advisory cost estimate so XLA schedules neighbours around the call.
    flops = 4 * B_pad * V * E_pad + 3 * B_pad * V
    bytes_accessed = (B_pad * V * 4                                   # x read
                      + 2 * V * E_pad * w_itemsize + (E_pad + V) * 4  # weights
                      + B_pad * E_pad * 4                             # loc write
                      + B_pad * LP_LANES * 4)                         # lp write
    if return_recon:
        bytes_accessed += B_pad * V * recon_itemsize
    cost = pl.CostEstimate(flops=int(flops), transcendentals=0,
                           bytes_accessed=int(bytes_accessed))

    budget = _vmem_budget(tb, V, E_pad, return_recon, w_itemsize,
                          recon_itemsize, 2)
    vmem_limit = int(min(max(2 * budget, 16 * _MiB), 64 * _MiB))

    def _call(in_specs):
        return pl.pallas_call(
            kernel,
            out_shape=tuple(out_shape),
            grid_spec=pltpu.PrefetchScalarGridSpec(
                num_scalar_prefetch=0,
                grid=(B_pad // tb,),
                in_specs=in_specs,
                out_specs=out_specs,
            ),
            compiler_params=pltpu.CompilerParams(
                dimension_semantics=("parallel",),
                vmem_limit_bytes=vmem_limit,
            ),
            cost_estimate=cost,
        )(x_flat, params["wenc_t"], params["benc"],
          params["wdec_t"], params["bdec"])

    try:
        outs = _call(make_in_specs(single_buffer_weights=True))
    except Exception:
        # pipeline_mode=pl.Buffered(1) not supported on this jax version;
        # fall back to default double-buffered resident weights.
        outs = _call(make_in_specs(single_buffer_weights=False))

    if return_recon:
        loc_full, recon_full, lp_full = outs
        return loc_full[:B, :E], recon_full[:B], lp_full[:B, :1]
    loc_full, lp_full = outs
    return loc_full[:B, :E], lp_full[:B, :1]


def _reference(x_nchw, w_enc, b_enc, w_dec, b_dec, b_scale_out=0.0):
    B = x_nchw.shape[0]
    x = x_nchw.reshape(B, -1).astype(jnp.float32)
    loc = x @ w_enc.T + b_enc
    recon = loc @ w_dec.T + b_dec
    sigma = math.exp(b_scale_out)
    lp = -0.5 * ((x - recon) / sigma) ** 2 - math.log(sigma) - 0.5 * LOG_2PI
    return loc, recon, jnp.sum(lp, axis=-1, keepdims=True)


if __name__ == "__main__":
    # Shapes consistent with the module: V = C*H*W, latent dim E.
    B, C, H, W = 64, 4, 16, 16
    V = C * H * W        # 1024
    E = 32

    key = jax.random.PRNGKey(0)
    k_x, k_we, k_be, k_wd, k_bd = jax.random.split(key, 5)

    x = jax.random.normal(k_x, (B, C, H, W), dtype=jnp.float32)

    # Deterministic nn.Linear-style init: U(-1/sqrt(fan_in), 1/sqrt(fan_in)).
    bnd_e = 1.0 / math.sqrt(V)
    w_enc = jax.random.uniform(k_we, (E, V), jnp.float32, -bnd_e, bnd_e)
    b_enc = jax.random.uniform(k_be, (E,), jnp.float32, -bnd_e, bnd_e)
    bnd_d = 1.0 / math.sqrt(E)
    w_dec = jax.random.uniform(k_wd, (V, E), jnp.float32, -bnd_d, bnd_d)
    b_dec = jax.random.uniform(k_bd, (V,), jnp.float32, -bnd_d, bnd_d)

    loc_r, recon_r, lp_r = _reference(x, w_enc, b_enc, w_dec, b_dec, 0.0)

    # 1) f32 compute path, full outputs (tight tolerance check).
    params_f32 = prepare_vael1_params(w_enc, b_enc, w_dec, b_dec,
                                      compute_dtype=jnp.float32)
    loc, recon, lp = vael1_forward(x, params_f32, b_scale_out=0.0,
                                   return_recon=True)
    jax.block_until_ready((loc, recon, lp))
    assert loc.shape == loc_r.shape and recon.shape == recon_r.shape
    assert lp.shape == lp_r.shape
    assert jnp.allclose(loc, loc_r, atol=1e-4, rtol=1e-4)
    assert jnp.allclose(recon, recon_r, atol=1e-4, rtol=1e-4)
    assert jnp.allclose(lp, lp_r, atol=1e-2, rtol=1e-4)

    # 2) default path: bf16 MXU inputs, loss-only (skips (B,V) recon writeback).
    params_bf16 = prepare_vael1_params(w_enc, b_enc, w_dec, b_dec)
    loc2, lp2 = vael1_forward(x, params_bf16, b_scale_out=0.0)
    jax.block_until_ready((loc2, lp2))
    assert jnp.allclose(loc2, loc_r, atol=3e-2, rtol=3e-2)
    assert jnp.allclose(lp2, lp_r, atol=1.0, rtol=1e-2)

    # 3) ragged batch exercises the padding + output-slicing path.
    loc3, lp3 = vael1_forward(x[:20], params_f32, b_scale_out=0.0)
    jax.block_until_ready((loc3, lp3))
    assert jnp.allclose(loc3, loc_r[:20], atol=1e-4, rtol=1e-4)
    assert jnp.allclose(lp3, lp_r[:20], atol=1e-2, rtol=1e-4)

    print("KERNEL_OK")
</pallas_src>

<mosaic_0001>
module attributes {stable_mosaic.version = 11 : i64} {
  func.func @_vael1_kernel(%arg0: i32, %arg1: memref<64x1024xf32, #tpu.memory_space<vmem>>, %arg2: memref<1024x128xf32, #tpu.memory_space<vmem>>, %arg3: memref<1x128xf32, #tpu.memory_space<vmem>>, %arg4: memref<128x1024xf32, #tpu.memory_space<vmem>>, %arg5: memref<1x1024xf32, #tpu.memory_space<vmem>>, %arg6: memref<64x128xf32, #tpu.memory_space<vmem>>, %arg7: memref<64x1024xf32, #tpu.memory_space<vmem>>, %arg8: memref<64x128xf32, #tpu.memory_space<vmem>>) attributes {dimension_semantics = [#tpu.dimension_semantics<parallel>], iteration_bounds = array<i64: 1>, scalar_prefetch = 0 : i64, scratch_operands = 0 : i64, tpu.core_type = #tpu.core_type<tc>, window_params = [{transform_indices = @transform_0, window_bounds = array<i64: 64, 1024>}, {pipeline_mode = #tpu.pipeline_mode<synchronous>, transform_indices = @transform_1, window_bounds = array<i64: 1024, 128>}, {pipeline_mode = #tpu.pipeline_mode<synchronous>, transform_indices = @transform_2, window_bounds = array<i64: 1, 128>}, {pipeline_mode = #tpu.pipeline_mode<synchronous>, transform_indices = @transform_3, window_bounds = array<i64: 128, 1024>}, {pipeline_mode = #tpu.pipeline_mode<synchronous>, transform_indices = @transform_4, window_bounds = array<i64: 1, 1024>}, {transform_indices = @transform_5, window_bounds = array<i64: 64, 128>}, {transform_indices = @transform_6, window_bounds = array<i64: 64, 1024>}, {transform_indices = @transform_7, window_bounds = array<i64: 64, 128>}]} {
    %c0 = arith.constant 0 : index
    %c0_0 = arith.constant 0 : index
    %0 = vector.load %arg1[%c0, %c0_0] : memref<64x1024xf32, #tpu.memory_space<vmem>>, vector<64x1024xf32>
    %c0_1 = arith.constant 0 : index
    %c0_2 = arith.constant 0 : index
    %1 = vector.load %arg2[%c0_1, %c0_2] : memref<1024x128xf32, #tpu.memory_space<vmem>>, vector<1024x128xf32>
    %cst = arith.constant dense<0.000000e+00> : vector<64x128xf32>
    %2 = tpu.matmul %0, %1, %cst {dimension_numbers = #tpu.dot_dimension_numbers<[1], [0], [0], [1], [0, 0, 1, 1], [], []>} : vector<64x1024xf32>, vector<1024x128xf32>, vector<64x128xf32> -> vector<64x128xf32>
    %c0_3 = arith.constant 0 : index
    %c0_4 = arith.constant 0 : index
    %3 = vector.load %arg3[%c0_3, %c0_4] : memref<1x128xf32, #tpu.memory_space<vmem>>, vector<1x128xf32>
    %4 = vector.broadcast %3 : vector<1x128xf32> to vector<64x128xf32>
    %5 = arith.addf %2, %4 : vector<64x128xf32>
    %c0_5 = arith.constant 0 : index
    %c0_6 = arith.constant 0 : index
    %6 = vector.load %arg6[%c0_5, %c0_6] : memref<64x128xf32, #tpu.memory_space<vmem>>, vector<64x128xf32>
    tpu.vector_store %arg6[%c0_5, %c0_6], %5 {strides = array<i32>} : memref<64x128xf32, #tpu.memory_space<vmem>>, vector<64x128xf32>,
    %c0_7 = arith.constant 0 : index
    %c0_8 = arith.constant 0 : index
    %7 = vector.load %arg4[%c0_7, %c0_8] : memref<128x1024xf32, #tpu.memory_space<vmem>>, vector<128x1024xf32>
    %cst_9 = arith.constant dense<0.000000e+00> : vector<64x1024xf32>
    %8 = tpu.matmul %5, %7, %cst_9 {dimension_numbers = #tpu.dot_dimension_numbers<[1], [0], [0], [1], [0, 0, 1, 1], [], []>} : vector<64x128xf32>, vector<128x1024xf32>, vector<64x1024xf32> -> vector<64x1024xf32>
    %c0_10 = arith.constant 0 : index
    %c0_11 = arith.constant 0 : index
    %9 = vector.load %arg5[%c0_10, %c0_11] : memref<1x1024xf32, #tpu.memory_space<vmem>>, vector<1x1024xf32>
    %10 = vector.broadcast %9 : vector<1x1024xf32> to vector<64x1024xf32>
    %11 = arith.addf %8, %10 : vector<64x1024xf32>
    %c0_12 = arith.constant 0 : index
    %c0_13 = arith.constant 0 : index
    %12 = vector.load %arg7[%c0_12, %c0_13] : memref<64x1024xf32, #tpu.memory_space<vmem>>, vector<64x1024xf32>
    tpu.vector_store %arg7[%c0_12, %c0_13], %11 {strides = array<i32>} : memref<64x1024xf32, #tpu.memory_space<vmem>>, vector<64x1024xf32>,
    %c0_14 = arith.constant 0 : index
    %c0_15 = arith.constant 0 : index
    %13 = vector.load %arg1[%c0_14, %c0_15] : memref<64x1024xf32, #tpu.memory_space<vmem>>, vector<64x1024xf32>
    %14 = arith.subf %13, %11 : vector<64x1024xf32>
    %15 = arith.mulf %14, %14 : vector<64x1024xf32>
    %cst_16 = arith.constant dense<0.000000e+00> : vector<64xf32>
    %16 = vector.multi_reduction <add>, %15, %cst_16 [1] : vector<64x1024xf32> to vector<64xf32>
    %17 = vector.shape_cast %16 : vector<64xf32> to vector<64x1xf32>
    %cst_17 = arith.constant -5.000000e-01 : f32
    %18 = vector.broadcast %cst_17 : f32 to vector<64x1xf32>
    %19 = arith.mulf %18, %17 : vector<64x1xf32>
    %cst_18 = arith.constant -940.993041 : f32
    %20 = vector.broadcast %cst_18 : f32 to vector<64x1xf32>
    %21 = arith.addf %19, %20 : vector<64x1xf32>
    %22 = vector.shape_cast %21 : vector<64x1xf32> to vector<64x1xf32>
    %23 = vector.broadcast %22 : vector<64x1xf32> to vector<64x128xf32>
    %c0_19 = arith.constant 0 : index
    %c0_20 = arith.constant 0 : index
    %24 = vector.load %arg8[%c0_19, %c0_20] : memref<64x128xf32, #tpu.memory_space<vmem>>, vector<64x128xf32>
    tpu.vector_store %arg8[%c0_19, %c0_20], %23 {strides = array<i32>} : memref<64x128xf32, #tpu.memory_space<vmem>>, vector<64x128xf32>,
    return
  }
  func.func @transform_0(%arg0: i32) -> (i32, i32) {
    %c0_i32 = arith.constant 0 : i32
    %c0_i32_0 = arith.constant 0 : i32
    return %arg0, %c0_i32 : i32, i32
  }
  func.func @transform_1(%arg0: i32) -> (i32, i32) {
    %c0_i32 = arith.constant 0 : i32
    %c0_i32_0 = arith.constant 0 : i32
    %c0_i32_1 = arith.constant 0 : i32
    return %c0_i32, %c0_i32_0 : i32, i32
  }
  func.func @transform_2(%arg0: i32) -> (i32, i32) {
    %c0_i32 = arith.constant 0 : i32
    %c0_i32_0 = arith.constant 0 : i32
    %c0_i32_1 = arith.constant 0 : i32
    return %c0_i32, %c0_i32_0 : i32, i32
  }
  func.func @transform_3(%arg0: i32) -> (i32, i32) {
    %c0_i32 = arith.constant 0 : i32
    %c0_i32_0 = arith.constant 0 : i32
    %c0_i32_1 = arith.constant 0 : i32
    return %c0_i32, %c0_i32_0 : i32, i32
  }
  func.func @transform_4(%arg0: i32) -> (i32, i32) {
    %c0_i32 = arith.constant 0 : i32
    %c0_i32_0 = arith.constant 0 : i32
    %c0_i32_1 = arith.constant 0 : i32
    return %c0_i32, %c0_i32_0 : i32, i32
  }
  func.func @transform_5(%arg0: i32) -> (i32, i32) {
    %c0_i32 = arith.constant 0 : i32
    %c0_i32_0 = arith.constant 0 : i32
    return %arg0, %c0_i32 : i32, i32
  }
  func.func @transform_6(%arg0: i32) -> (i32, i32) {
    %c0_i32 = arith.constant 0 : i32
    %c0_i32_0 = arith.constant 0 : i32
    return %arg0, %c0_i32 : i32, i32
  }
  func.func @transform_7(%arg0: i32) -> (i32, i32) {
    %c0_i32 = arith.constant 0 : i32
    %c0_i32_0 = arith.constant 0 : i32
    return %arg0, %c0_i32 : i32, i32
  }
}

module attributes {stable_mosaic.version = 11 : i64} {
  func.func @_vael1_kernel(%arg0: i32, %arg1: memref<64x1024xf32, #tpu.memory_space<vmem>>, %arg2: memref<1024x128xf32, #tpu.memory_space<vmem>>, %arg3: memref<1x128xf32, #tpu.memory_space<vmem>>, %arg4: memref<128x1024xf32, #tpu.memory_space<vmem>>, %arg5: memref<1x1024xf32, #tpu.memory_space<vmem>>, %arg6: memref<64x128xf32, #tpu.memory_space<vmem>>, %arg7: memref<64x1024xf32, #tpu.memory_space<vmem>>, %arg8: memref<64x128xf32, #tpu.memory_space<vmem>>) attributes {dimension_semantics = [#tpu.dimension_semantics<parallel>], iteration_bounds = array<i64: 1>, scalar_prefetch = 0 : i64, scratch_operands = 0 : i64, tpu.core_type = #tpu.core_type<tc>, window_params = [{transform_indices = @transform_0, window_bounds = array<i64: 64, 1024>}, {pipeline_mode = #tpu.pipeline_mode<synchronous>, transform_indices = @transform_1, window_bounds = array<i64: 1024, 128>}, {pipeline_mode = #tpu.pipeline_mode<synchronous>, transform_indices = @transform_2, window_bounds = array<i64: 1, 128>}, {pipeline_mode = #tpu.pipeline_mode<synchronous>, transform_indices = @transform_3, window_bounds = array<i64: 128, 1024>}, {pipeline_mode = #tpu.pipeline_mode<synchronous>, transform_indices = @transform_4, window_bounds = array<i64: 1, 1024>}, {transform_indices = @transform_5, window_bounds = array<i64: 64, 128>}, {transform_indices = @transform_6, window_bounds = array<i64: 64, 1024>}, {transform_indices = @transform_7, window_bounds = array<i64: 64, 128>}]} {
    %c0 = arith.constant 0 : index
    %c0_0 = arith.constant 0 : index
    %0 = vector.load %arg1[%c0, %c0_0] : memref<64x1024xf32, #tpu.memory_space<vmem>>, vector<64x1024xf32>
    %c0_1 = arith.constant 0 : index
    %c0_2 = arith.constant 0 : index
    %1 = vector.load %arg2[%c0_1, %c0_2] : memref<1024x128xf32, #tpu.memory_space<vmem>>, vector<1024x128xf32>
    %cst = arith.constant dense<0.000000e+00> : vector<64x128xf32>
    %2 = tpu.matmul %0, %1, %cst {dimension_numbers = #tpu.dot_dimension_numbers<[1], [0], [0], [1], [0, 0, 1, 1], [], []>} : vector<64x1024xf32>, vector<1024x128xf32>, vector<64x128xf32> -> vector<64x128xf32>
    %c0_3 = arith.constant 0 : index
    %c0_4 = arith.constant 0 : index
    %3 = vector.load %arg3[%c0_3, %c0_4] : memref<1x128xf32, #tpu.memory_space<vmem>>, vector<1x128xf32>
    %4 = vector.broadcast %3 : vector<1x128xf32> to vector<64x128xf32>
    %5 = arith.addf %2, %4 : vector<64x128xf32>
    %c0_5 = arith.constant 0 : index
    %c0_6 = arith.constant 0 : index
    %6 = vector.load %arg6[%c0_5, %c0_6] : memref<64x128xf32, #tpu.memory_space<vmem>>, vector<64x128xf32>
    tpu.vector_store %arg6[%c0_5, %c0_6], %5 {strides = array<i32>} : memref<64x128xf32, #tpu.memory_space<vmem>>, vector<64x128xf32>,
    %c0_7 = arith.constant 0 : index
    %c0_8 = arith.constant 0 : index
    %7 = vector.load %arg4[%c0_7, %c0_8] : memref<128x1024xf32, #tpu.memory_space<vmem>>, vector<128x1024xf32>
    %cst_9 = arith.constant dense<0.000000e+00> : vector<64x1024xf32>
    %8 = tpu.matmul %5, %7, %cst_9 {dimension_numbers = #tpu.dot_dimension_numbers<[1], [0], [0], [1], [0, 0, 1, 1], [], []>} : vector<64x128xf32>, vector<128x1024xf32>, vector<64x1024xf32> -> vector<64x1024xf32>
    %c0_10 = arith.constant 0 : index
    %c0_11 = arith.constant 0 : index
    %9 = vector.load %arg5[%c0_10, %c0_11] : memref<1x1024xf32, #tpu.memory_space<vmem>>, vector<1x1024xf32>
    %10 = vector.broadcast %9 : vector<1x1024xf32> to vector<64x1024xf32>
    %11 = arith.addf %8, %10 : vector<64x1024xf32>
    %c0_12 = arith.constant 0 : index
    %c0_13 = arith.constant 0 : index
    %12 = vector.load %arg7[%c0_12, %c0_13] : memref<64x1024xf32, #tpu.memory_space<vmem>>, vector<64x1024xf32>
    tpu.vector_store %arg7[%c0_12, %c0_13], %11 {strides = array<i32>} : memref<64x1024xf32, #tpu.memory_space<vmem>>, vector<64x1024xf32>,
    %c0_14 = arith.constant 0 : index
    %c0_15 = arith.constant 0 : index
    %13 = vector.load %arg1[%c0_14, %c0_15] : memref<64x1024xf32, #tpu.memory_space<vmem>>, vector<64x1024xf32>
    %14 = arith.subf %13, %11 : vector<64x1024xf32>
    %15 = arith.mulf %14, %14 : vector<64x1024xf32>
    %cst_16 = arith.constant dense<0.000000e+00> : vector<64xf32>
    %16 = vector.multi_reduction <add>, %15, %cst_16 [1] : vector<64x1024xf32> to vector<64xf32>
    %17 = vector.shape_cast %16 : vector<64xf32> to vector<64x1xf32>
    %cst_17 = arith.constant -5.000000e-01 : f32
    %18 = vector.broadcast %cst_17 : f32 to vector<64x1xf32>
    %19 = arith.mulf %18, %17 : vector<64x1xf32>
    %cst_18 = arith.constant -940.993041 : f32
    %20 = vector.broadcast %cst_18 : f32 to vector<64x1xf32>
    %21 = arith.addf %19, %20 : vector<64x1xf32>
    %22 = vector.shape_cast %21 : vector<64x1xf32> to vector<64x1xf32>
    %23 = vector.broadcast %22 : vector<64x1xf32> to vector<64x128xf32>
    %c0_19 = arith.constant 0 : index
    %c0_20 = arith.constant 0 : index
    %24 = vector.load %arg8[%c0_19, %c0_20] : memref<64x128xf32, #tpu.memory_space<vmem>>, vector<64x128xf32>
    tpu.vector_store %arg8[%c0_19, %c0_20], %23 {strides = array<i32>} : memref<64x128xf32, #tpu.memory_space<vmem>>, vector<64x128xf32>,
    return
  }
  func.func @transform_0(%arg0: i32) -> (i32, i32) {
    %c0_i32 = arith.constant 0 : i32
    %c0_i32_0 = arith.constant 0 : i32
    return %arg0, %c0_i32 : i32, i32
  }
  func.func @transform_1(%arg0: i32) -> (i32, i32) {
    %c0_i32 = arith.constant 0 : i32
    %c0_i32_0 = arith.constant 0 : i32
    %c0_i32_1 = arith.constant 0 : i32
    return %c0_i32, %c0_i32_0 : i32, i32
  }
  func.func @transform_2(%arg0: i32) -> (i32, i32) {
    %c0_i32 = arith.constant 0 : i32
    %c0_i32_0 = arith.constant 0 : i32
    %c0_i32_1 = arith.constant 0 : i32
    return %c0_i32, %c0_i32_0 : i32, i32
  }
  func.func @transform_3(%arg0: i32) -> (i32, i32) {
    %c0_i32 = arith.constant 0 : i32
    %c0_i32_0 = arith.constant 0 : i32
    %c0_i32_1 = arith.constant 0 : i32
    return %c0_i32, %c0_i32_0 : i32, i32
  }
  func.func @transform_4(%arg0: i32) -> (i32, i32) {
    %c0_i32 = arith.constant 0 : i32
    %c0_i32_0 = arith.constant 0 : i32
    %c0_i32_1 = arith.constant 0 : i32
    return %c0_i32, %c0_i32_0 : i32, i32
  }
  func.func @transform_5(%arg0: i32) -> (i32, i32) {
    %c0_i32 = arith.constant 0 : i32
    %c0_i32_0 = arith.constant 0 : i32
    return %arg0, %c0_i32 : i32, i32
  }
  func.func @transform_6(%arg0: i32) -> (i32, i32) {
    %c0_i32 = arith.constant 0 : i32
    %c0_i32_0 = arith.constant 0 : i32
    return %arg0, %c0_i32 : i32, i32
  }
  func.func @transform_7(%arg0: i32) -> (i32, i32) {
    %c0_i32 = arith.constant 0 : i32
    %c0_i32_0 = arith.constant 0 : i32
    return %arg0, %c0_i32 : i32, i32
  }
}

</mosaic_0001>

<bundles_post_ra>
// kernel: tpu_custom_call.1
= control target key start
LH: loop header
LB: loop body
LE: loop exit
PB: predicated region body
PF: predicated region fallthrough
CT: control target
= control target key end

     0   :  { %13 = vsyncpa [#allocation3], 0  ;;  %s2732_s0 = inlined_call_operand.hbm [shape: f32[64,1024], index: 0, kind: input, shape index: {}]   ;;  %s2733_s1 = inlined_call_operand.hbm [shape: f32[1024,128], index: 1, kind: input, shape index: {}]   ;;  %s2734_s2 = inlined_call_operand.vmem [shape: f32[1,128], index: 2, kind: input, shape index: {}]   ;;  %s2735_s3 = inlined_call_operand.hbm [shape: f32[128,1024], index: 3, kind: input, shape index: {}]   ;;  %s2736_s4 = inlined_call_operand.vmem [shape: f32[1,1024], index: 4, kind: input, shape index: {}]   ;;  %s2737_s5 = inlined_call_operand.hbm [shape: f32[64,128], index: 5, kind: output, shape index: {0}]   ;;  %s2738_s6 = inlined_call_operand.hbm [shape: f32[64,1024], index: 6, kind: output, shape index: {1}]   ;;  %s2739_s7 = inlined_call_operand.hbm [shape: f32[64,128], index: 7, kind: output, shape index: {2}]  }
   0x1   :  { %14 = vsyncpa [#allocation6], 0 }
   0x2   :  { %15 = vsyncpa [#allocation4], 0 }
   0x3   :  { %16 = vsyncpa [#allocation10], 0  ;;  %s2348_s24 = smov [#allocation5]   ;;  %s2208_s28 = scalar_lea.hbm %s2733_s1, 16384 }
   0x4   :  { %s34_s25 = sshll.u32 %s2348_s24, 4  ;;  %p2209_p0 = scmp.ne.s32.totalorder %s2733_s1, %s2208_s28  ;;  %s35_s25 = int_to_ptr.vmem [resolvable:$true] %s34_s25 }
   0x5   :  { %p2212_p1 = scmp.lt.u32.totalorder %s2208_s28, %s2733_s1 }
   0x7   :  { %p2214_p2 = pnand %p2212_p1, %p2209_p0 }
   0x9   :  { %2217 = shalt.err (!%p2214_p2)
}
   0xa   :  { %s2218_s10 = scalar_lea.vmem %s35_s25, 16384  ;;  %p2223_p4 = scmp.lt.s32.totalorder %s35_s25, %s35_s25 }
   0xb   :  { %p2219_p3 = scmp.ne.s32.totalorder %s35_s25, %s2218_s10  ;;  %p2224_p5 = scmp.lt.s32.totalorder %s2218_s10, %s2218_s10 }
   0xd   :  { %p2225_p6 = por %p2224_p5, %p2223_p4 }
   0xf   :  { %p2226_p7 = pnand %p2225_p6, %p2219_p3 }
  0x11   :  { %2229 = shalt.err (!%p2226_p7)
}
  0x12   :  { %s2349_s11 = smov 128   ;;  %s2350_s12 = smov 8  }
  0x13   :  { %40 = dma.hbm_to_vmem [thread:$0]  %s2733_s1, 16384, %s35_s25, [#allocation6], %s2349_s11, %s2349_s11, %s2350_s12  }
  0x14   :  { %s2351_s15 = smov [#allocation2]   ;;  %s2230_s19 = scalar_lea.hbm %s2732_s0, 8192 }
  0x15   :  { %s22_s16 = sshll.u32 %s2351_s15, 4  ;;  %p2231_p8 = scmp.ne.s32.totalorder %s2732_s0, %s2230_s19  ;;  %s23_s16 = int_to_ptr.vmem [resolvable:$true] %s22_s16 }
  0x16   :  { %p2234_p9 = scmp.lt.u32.totalorder %s2230_s19, %s2732_s0 }
  0x18   :  { %p2236_p10 = pnand %p2234_p9, %p2231_p8 }
  0x1a   :  { %2239 = shalt.err (!%p2236_p10)
}
  0x1b   :  { %s2240_s24 = scalar_lea.vmem %s23_s16, 8192  ;;  %p2245_p12 = scmp.lt.s32.totalorder %s23_s16, %s23_s16 }
  0x1c   :  { %p2241_p11 = scmp.ne.s32.totalorder %s23_s16, %s2240_s24  ;;  %p2246_p13 = scmp.lt.s32.totalorder %s2240_s24, %s2240_s24 }
  0x1e   :  { %p2247_p0 = por %p2246_p13, %p2245_p12 }
  0x20   :  { %p2248_p1 = pnand %p2247_p0, %p2241_p11 }
  0x22   :  { %2251 = shalt.err (!%p2248_p1)
}
  0x23   :  { %s2352_s1 = smov 1024   ;;  %s2353_s25 = smov 64  }
  0x24   :  { %28 = dma.hbm_to_vmem [thread:$0]  %s2732_s0, 8192, %s23_s16, [#allocation3], %s2352_s1, %s2352_s1, %s2353_s25  }
  0x25   :  { %s2354_s28 = smov [#allocation7]   ;;  %s2252_s9 = scalar_lea.hbm %s2735_s3, 16384 }
  0x26   :  { %s48_s29 = sshll.u32 %s2354_s28, 4  ;;  %p2253_p2 = scmp.ne.s32.totalorder %s2735_s3, %s2252_s9  ;;  %s49_s29 = int_to_ptr.vmem [resolvable:$true] %s48_s29 }
  0x27   :  { %p2256_p3 = scmp.lt.u32.totalorder %s2252_s9, %s2735_s3 }
  0x29   :  { %p2258_p4 = pnand %p2256_p3, %p2253_p2 }
  0x2b   :  { %2261 = shalt.err (!%p2258_p4)
}
  0x2c   :  { %s2262_s17 = scalar_lea.vmem %s49_s29, 16384  ;;  %p2267_p6 = scmp.lt.s32.totalorder %s49_s29, %s49_s29 }
  0x2d   :  { %p2263_p5 = scmp.ne.s32.totalorder %s49_s29, %s2262_s17  ;;  %p2268_p7 = scmp.lt.s32.totalorder %s2262_s17, %s2262_s17 }
  0x2f   :  { %p2269_p8 = por %p2268_p7, %p2267_p6 }
  0x31   :  { %p2270_p9 = pnand %p2269_p8, %p2263_p5 }
  0x33   :  { %2273 = shalt.err (!%p2270_p9)
}
  0x34   :  { %54 = dma.hbm_to_vmem [thread:$0]  %s2735_s3, 16384, %s49_s29, [#allocation6], %s2352_s1, %s2352_s1, %s2353_s25  }
  0x35   :  { %2340 = dma.done.wait [#allocation3], 8192  }
  0x36   :  { %2341 = vsyncadd [#allocation3], 4294959104 }
  0x37   :  { %2342 = dma.done.wait [#allocation6], 32768  }
  0x38   :  { %2343 = vsyncadd [#allocation6], 4294934528  ;;  %v146_v0 = vld [vmem:[#allocation5 + $0x80] sm:$0xff]  ;;  %v147_v1 = vld [vmem:[#allocation5 + $0x88] sm:$0xff]  ;;  %s2357_s21 = smov [#allocation8]  }
  0x39   :  { %v130_v2 = vld [vmem:[#allocation5] sm:$0xff]  ;;  %v1941_v3 = vpack.c.bf16 %v147_v1, %v146_v0  ;;  %v131_v4 = vld [vmem:[#allocation5 + $0x8] sm:$0xff]  ;;  %v148_v11 = vld [vmem:[#allocation5 + $0x90] sm:$0xff]  ;;  %s1672_s22 = sshll.u32 %s2357_s21, 4  ;;  %s2680_s22 = int_to_ptr.vmem [resolvable:$true] %s1672_s22 }
  0x3a   :  { %v178_v5 = vld [vmem:[#allocation5 + $0x180] sm:$0xff]  ;;  %v179_v6 = vld [vmem:[#allocation5 + $0x188] sm:$0xff]  ;;  %v1943_v7 = vpack.c.bf16 %v131_v4, %v130_v2  ;;  %v149_v13 = vld [vmem:[#allocation5 + $0x98] sm:$0xff] }
  0x3b   :  { %v1973_v8 = vpack.c.bf16 %v179_v6, %v178_v5  ;;  %v162_v9 = vld [vmem:[#allocation5 + $0x100] sm:$0xff]  ;;  %v163_v10 = vld [vmem:[#allocation5 + $0x108] sm:$0xff]  ;;  %1942 = vmatprep.subr.bf16.mxu0 %v1941_v3  ;;  %v132_v14 = vld [vmem:[#allocation5 + $0x10] sm:$0xff]  ;;  %v1945_v16 = vpack.c.bf16 %v149_v13, %v148_v11 }
  0x3c   :  { %v1975_v12 = vpack.c.bf16 %v163_v10, %v162_v9  ;;  %v133_v15 = vld [vmem:[#allocation5 + $0x18] sm:$0xff]  ;;  %1944 = vmatpush3.bf16.msra.mxu0 %v1943_v7  ;;  %v180_v18 = vld [vmem:[#allocation5 + $0x190] sm:$0xff]  ;;  %v150_v23 = vld [vmem:[#allocation5 + $0xa0] sm:$0xff] }
  0x3d   :  { %1974 = vmatprep.subr.bf16.mxu1 %v1973_v8  ;;  %v1947_v17 = vpack.c.bf16 %v133_v15, %v132_v14  ;;  %v181_v19 = vld [vmem:[#allocation5 + $0x198] sm:$0xff]  ;;  %v164_v20 = vld [vmem:[#allocation5 + $0x110] sm:$0xff]  ;;  %v151_v24 = vld [vmem:[#allocation5 + $0xa8] sm:$0xff]  ;;  %1946 = vmatprep.subr.bf16.mxu0 %v1945_v16 }
  0x3e   :  { %1976 = vmatpush3.bf16.msra.mxu1 %v1975_v12  ;;  %v1977_v21 = vpack.c.bf16 %v181_v19, %v180_v18  ;;  %v165_v22 = vld [vmem:[#allocation5 + $0x118] sm:$0xff]  ;;  %v1949_v26 = vpack.c.bf16 %v151_v24, %v150_v23  ;;  %v134_v27 = vld [vmem:[#allocation5 + $0x20] sm:$0xff]  ;;  %v135_v28 = vld [vmem:[#allocation5 + $0x28] sm:$0xff] }
  0x3f   :  { %v1979_v25 = vpack.c.bf16 %v165_v22, %v164_v20  ;;  %v182_v29 = vld [vmem:[#allocation5 + $0x1a0] sm:$0xff]  ;;  %v183_v30 = vld [vmem:[#allocation5 + $0x1a8] sm:$0xff]  ;;  %v1951_v33 = vpack.c.bf16 %v135_v28, %v134_v27  ;;  %v152_v35 = vld [vmem:[#allocation5 + $0xb0] sm:$0xff] }
  0x40   :  { %1978 = vmatprep.subr.bf16.mxu1 %v1977_v21  ;;  %v166_v31 = vld [vmem:[#allocation5 + $0x120] sm:$0xff]  ;;  %v167_v32 = vld [vmem:[#allocation5 + $0x128] sm:$0xff]  ;;  %1948 = vmatpush3.bf16.msra.mxu0 %v1947_v17  ;;  %v1981_v34 = vpack.c.bf16 %v183_v30, %v182_v29  ;;  %v153_v36 = vld [vmem:[#allocation5 + $0xb8] sm:$0xff] }
  0x41   :  { %v136_v37 = vld [vmem:[#allocation5 + $0x30] sm:$0xff]  ;;  %1950 = vmatprep.subr.bf16.mxu0 %v1949_v26  ;;  %v1983_v38 = vpack.c.bf16 %v167_v32, %v166_v31  ;;  %v1953_v39 = vpack.c.bf16 %v153_v36, %v152_v35  ;;  %v137_v40 = vld [vmem:[#allocation5 + $0x38] sm:$0xff]  ;;  %v154_v46 = vld [vmem:[#allocation5 + $0xc0] sm:$0xff] }
  0x42   :  { %1980 = vmatpush3.bf16.msra.mxu1 %v1979_v25  ;;  %v184_v41 = vld [vmem:[#allocation5 + $0x1b0] sm:$0xff]  ;;  %v185_v42 = vld [vmem:[#allocation5 + $0x1b8] sm:$0xff]  ;;  %v155_v47 = vld [vmem:[#allocation5 + $0xc8] sm:$0xff]  ;;  %v1955_v48 = vpack.c.bf16 %v137_v40, %v136_v37 }
  0x43   :  { %1982 = vmatprep.subr.bf16.mxu1 %v1981_v34  ;;  %v1985_v43 = vpack.c.bf16 %v185_v42, %v184_v41  ;;  %v168_v44 = vld [vmem:[#allocation5 + $0x130] sm:$0xff]  ;;  %v169_v45 = vld [vmem:[#allocation5 + $0x138] sm:$0xff]  ;;  %v186_v49 = vld [vmem:[#allocation5 + $0x1c0] sm:$0xff]  ;;  %v1957_v52 = vpack.c.bf16 %v155_v47, %v154_v46 }
  0x44   :  { %1952 = vmatpush3.bf16.msra.mxu0 %v1951_v33  ;;  %v187_v50 = vld [vmem:[#allocation5 + $0x1c8] sm:$0xff]  ;;  %v1987_v51 = vpack.c.bf16 %v169_v45, %v168_v44  ;;  %v138_v53 = vld [vmem:[#allocation5 + $0x40] sm:$0xff]  ;;  %v156_v58 = vld [vmem:[#allocation5 + $0xd0] sm:$0xff] }
  0x45   :  { %1954 = vmatprep.subr.bf16.mxu0 %v1953_v39  ;;  %v139_v54 = vld [vmem:[#allocation5 + $0x48] sm:$0xff]  ;;  %v170_v55 = vld [vmem:[#allocation5 + $0x140] sm:$0xff]  ;;  %v1989_v56 = vpack.c.bf16 %v187_v50, %v186_v49  ;;  %v157_v59 = vld [vmem:[#allocation5 + $0xd8] sm:$0xff] }
  0x46   :  { %1984 = vmatpush3.bf16.msra.mxu1 %v1983_v38  ;;  %v171_v57 = vld [vmem:[#allocation5 + $0x148] sm:$0xff]  ;;  %v188_v60 = vld [vmem:[#allocation5 + $0x1d0] sm:$0xff]  ;;  %v189_v61 = vld [vmem:[#allocation5 + $0x1d8] sm:$0xff]  ;;  %v1959_v62 = vpack.c.bf16 %v139_v54, %v138_v53  ;;  %v1961_v0 = vpack.c.bf16 %v157_v59, %v156_v58 }
  0x47   :  { %1986 = vmatprep.subr.bf16.mxu1 %v1985_v43  ;;  %v1991_v63 = vpack.c.bf16 %v171_v57, %v170_v55  ;;  %v140_v1 = vld [vmem:[#allocation5 + $0x50] sm:$0xff]  ;;  %v141_v2 = vld [vmem:[#allocation5 + $0x58] sm:$0xff]  ;;  %v1993_v4 = vpack.c.bf16 %v189_v61, %v188_v60  ;;  %v158_v6 = vld [vmem:[#allocation5 + $0xe0] sm:$0xff] }
  0x48   :  { %1956 = vmatpush3.bf16.msra.mxu0 %v1955_v48  ;;  %v172_v3 = vld [vmem:[#allocation5 + $0x150] sm:$0xff]  ;;  %v173_v5 = vld [vmem:[#allocation5 + $0x158] sm:$0xff]  ;;  %v159_v7 = vld [vmem:[#allocation5 + $0xe8] sm:$0xff]  ;;  %v1963_v10 = vpack.c.bf16 %v141_v2, %v140_v1 }
  0x49   :  { %1958 = vmatprep.subr.bf16.mxu0 %v1957_v52  ;;  %v190_v8 = vld [vmem:[#allocation5 + $0x1e0] sm:$0xff]  ;;  %v191_v9 = vld [vmem:[#allocation5 + $0x1e8] sm:$0xff]  ;;  %v1995_v13 = vpack.c.bf16 %v173_v5, %v172_v3  ;;  %v1965_v14 = vpack.c.bf16 %v159_v7, %v158_v6  ;;  %v160_v19 = vld [vmem:[#allocation5 + $0xf0] sm:$0xff] }
  0x4a   :  { %1988 = vmatpush3.bf16.msra.mxu1 %v1987_v51  ;;  %v142_v11 = vld [vmem:[#allocation5 + $0x60] sm:$0xff]  ;;  %v67_v12 = vld [vmem:[#allocation2 + $0x8] sm:$0xff]  ;;  %v1997_v18 = vpack.c.bf16 %v191_v9, %v190_v8  ;;  %v161_v20 = vld [vmem:[#allocation5 + $0xf8] sm:$0xff] }
  0x4b   :  { %1990 = vmatprep.subr.bf16.mxu1 %v1989_v56  ;;  %v143_v15 = vld [vmem:[#allocation5 + $0x68] sm:$0xff]  ;;  %v174_v16 = vld [vmem:[#allocation5 + $0x160] sm:$0xff]  ;;  %329 = vmatprep.mubr.f32.mxu0 %v67_v12  ;;  %v69_v21 = vld [vmem:[#allocation2 + $0x18] sm:$0xff]  ;;  %v1969_v26 = vpack.c.bf16 %v161_v20, %v160_v19 }
  0x4c   :  { %1960 = vmatpush3.bf16.msra.mxu0 %v1959_v62  ;;  %v175_v17 = vld [vmem:[#allocation5 + $0x168] sm:$0xff]  ;;  %v192_v22 = vld [vmem:[#allocation5 + $0x1f0] sm:$0xff]  ;;  %v193_v23 = vld [vmem:[#allocation5 + $0x1f8] sm:$0xff]  ;;  %434 = vmatprep.mubr.f32.mxu1 %v69_v21  ;;  %v1967_v24 = vpack.c.bf16 %v143_v15, %v142_v11 }
  0x4d   :  { %1962 = vmatprep.subr.bf16.mxu0 %v1961_v0  ;;  %v1999_v25 = vpack.c.bf16 %v175_v17, %v174_v16  ;;  %v144_v27 = vld [vmem:[#allocation5 + $0x70] sm:$0xff]  ;;  %v145_v28 = vld [vmem:[#allocation5 + $0x78] sm:$0xff]  ;;  %v2001_v30 = vpack.c.bf16 %v193_v23, %v192_v22  ;;  %v210_v32 = vld [vmem:[#allocation5 + $0x280] sm:$0xff] }
  0x4e   :  { %1992 = vmatpush3.bf16.msra.mxu1 %v1991_v63  ;;  %v176_v29 = vld [vmem:[#allocation5 + $0x170] sm:$0xff]  ;;  %v177_v31 = vld [vmem:[#allocation5 + $0x178] sm:$0xff]  ;;  %v211_v33 = vld [vmem:[#allocation5 + $0x288] sm:$0xff]  ;;  %v1971_v36 = vpack.c.bf16 %v145_v28, %v144_v27 }
  0x4f   :  { %1994 = vmatprep.subr.bf16.mxu1 %v1993_v4  ;;  %v242_v34 = vld [vmem:[#allocation5 + $0x380] sm:$0xff]  ;;  %v243_v35 = vld [vmem:[#allocation5 + $0x388] sm:$0xff]  ;;  %v2003_v37 = vpack.c.bf16 %v177_v31, %v176_v29  ;;  %v2005_v38 = vpack.c.bf16 %v211_v33, %v210_v32  ;;  %v212_v44 = vld [vmem:[#allocation5 + $0x290] sm:$0xff] }
  0x50   :  { %1964 = vmatpush3.bf16.msra.mxu0 %v1963_v10  ;;  %v194_v39 = vld [vmem:[#allocation5 + $0x200] sm:$0xff]  ;;  %v195_v40 = vld [vmem:[#allocation5 + $0x208] sm:$0xff]  ;;  %v2037_v41 = vpack.c.bf16 %v243_v35, %v242_v34  ;;  %v213_v45 = vld [vmem:[#allocation5 + $0x298] sm:$0xff] }
  0x51   :  { %1966 = vmatprep.subr.bf16.mxu0 %v1965_v14  ;;  %v226_v42 = vld [vmem:[#allocation5 + $0x300] sm:$0xff]  ;;  %v227_v43 = vld [vmem:[#allocation5 + $0x308] sm:$0xff]  ;;  %v2007_v47 = vpack.c.bf16 %v195_v40, %v194_v39  ;;  %v244_v48 = vld [vmem:[#allocation5 + $0x390] sm:$0xff]  ;;  %v2009_v55 = vpack.c.bf16 %v213_v45, %v212_v44 }
  0x52   :  { %1996 = vmatpush3.bf16.msra.mxu1 %v1995_v13  ;;  %v66_v46 = vld [vmem:[#allocation2] sm:$0xff]  ;;  %v245_v49 = vld [vmem:[#allocation5 + $0x398] sm:$0xff]  ;;  %v68_v50 = vld [vmem:[#allocation2 + $0x10] sm:$0xff]  ;;  %v2039_v51 = vpack.c.bf16 %v227_v43, %v226_v42 }
  0x53   :  { %1998 = vmatprep.subr.bf16.mxu1 %v1997_v18  ;;  %v196_v52 = vld [vmem:[#allocation5 + $0x210] sm:$0xff]  ;;  %v197_v53 = vld [vmem:[#allocation5 + $0x218] sm:$0xff]  ;;  %v75_v54 = vld [vmem:[#allocation2 + $0x48] sm:$0xff]  ;;  %v2041_v59 = vpack.c.bf16 %v245_v49, %v244_v48 }
  0x54   :  { %1968 = vmatpush3.bf16.msra.mxu0 %v1967_v24  ;;  %v228_v56 = vld [vmem:[#allocation5 + $0x310] sm:$0xff]  ;;  %v229_v57 = vld [vmem:[#allocation5 + $0x318] sm:$0xff]  ;;  %v214_v60 = vld [vmem:[#allocation5 + $0x2a0] sm:$0xff]  ;;  %v2011_v63 = vpack.c.bf16 %v197_v53, %v196_v52 }
  0x55   :  { %1970 = vmatprep.subr.bf16.mxu0 %v1969_v26  ;;  %v77_v58 = vld [vmem:[#allocation2 + $0x58] sm:$0xff]  ;;  %v215_v61 = vld [vmem:[#allocation5 + $0x2a8] sm:$0xff]  ;;  %v74_v62 = vld [vmem:[#allocation2 + $0x40] sm:$0xff]  ;;  %v2043_v3 = vpack.c.bf16 %v229_v57, %v228_v56 }
  0x56   :  { %2000 = vmatpush3.bf16.msra.mxu1 %v1999_v25  ;;  %v246_v0 = vld [vmem:[#allocation5 + $0x3a0] sm:$0xff]  ;;  %v247_v1 = vld [vmem:[#allocation5 + $0x3a8] sm:$0xff]  ;;  %v76_v2 = vld [vmem:[#allocation2 + $0x50] sm:$0xff]  ;;  %v2013_v7 = vpack.c.bf16 %v215_v61, %v214_v60 }
  0x57   :  { %2002 = vmatprep.subr.bf16.mxu1 %v2001_v30  ;;  %v198_v4 = vld [vmem:[#allocation5 + $0x220] sm:$0xff]  ;;  %v199_v5 = vld [vmem:[#allocation5 + $0x228] sm:$0xff]  ;;  %v85_v10 = vld [vmem:[#allocation2 + $0x98] sm:$0xff]  ;;  %v2045_v11 = vpack.c.bf16 %v247_v1, %v246_v0 }
  0x58   :  { %1972 = vmatpush3.bf16.msra.mxu0 %v1971_v36  ;;  %v83_v6 = vld [vmem:[#allocation2 + $0x88] sm:$0xff]  ;;  %v230_v8 = vld [vmem:[#allocation5 + $0x320] sm:$0xff]  ;;  %v216_v12 = vld [vmem:[#allocation5 + $0x2b0] sm:$0xff]  ;;  %v2015_v15 = vpack.c.bf16 %v199_v5, %v198_v4 }
  0x59   :  { %2006 = vmatprep.subr.bf16.mxu0 %v2005_v38  ;;  %v231_v9 = vld [vmem:[#allocation5 + $0x328] sm:$0xff]  ;;  %v217_v13 = vld [vmem:[#allocation5 + $0x2b8] sm:$0xff]  ;;  %v82_v14 = vld [vmem:[#allocation2 + $0x80] sm:$0xff] }
  0x5a   :  { %2004 = vmatpush3.bf16.msra.mxu1 %v2003_v37  ;;  %v248_v16 = vld [vmem:[#allocation5 + $0x3b0] sm:$0xff]  ;;  %v249_v17 = vld [vmem:[#allocation5 + $0x3b8] sm:$0xff]  ;;  %v2047_v19 = vpack.c.bf16 %v231_v9, %v230_v8  ;;  %v91_v22 = vld [vmem:[#allocation2 + $0xc8] sm:$0xff]  ;;  %v2017_v23 = vpack.c.bf16 %v217_v13, %v216_v12 }
  0x5b   :  { %2038 = vmatprep.subr.bf16.mxu1 %v2037_v41  ;;  %330 = vmatmul.mubr.f32.vlgmr.msra.gmra.mrb[0].mxu0 %v66_v46  ;;  %v84_v18 = vld [vmem:[#allocation2 + $0x90] sm:$0xff]  ;;  %v201_v21 = vld [vmem:[#allocation5 + $0x238] sm:$0xff]  ;;  %v2049_v27 = vpack.c.bf16 %v249_v17, %v248_v16  ;;  %v218_v28 = vld [vmem:[#allocation5 + $0x2c0] sm:$0xff] }
  0x5c   :  { %2008 = vmatpush3.bf16.msra.mxu0 %v2007_v47  ;;  %334 = vmatprep.mubr.f32.mxu0 %v75_v54  ;;  %v200_v20 = vld [vmem:[#allocation5 + $0x230] sm:$0xff]  ;;  %v233_v25 = vld [vmem:[#allocation5 + $0x338] sm:$0xff]  ;;  %v219_v29 = vld [vmem:[#allocation5 + $0x2c8] sm:$0xff] }
  0x5d   :  { %435 = vmatmul.mubr.f32.vlgmr.msra.gmra.mrb[0].mxu1 %v68_v50  ;;  %2010 = vmatprep.subr.bf16.mxu0 %v2009_v55  ;;  %v232_v24 = vld [vmem:[#allocation5 + $0x330] sm:$0xff]  ;;  %v93_v26 = vld [vmem:[#allocation2 + $0xd8] sm:$0xff]  ;;  %v90_v30 = vld [vmem:[#allocation2 + $0xc0] sm:$0xff]  ;;  %v2019_v31 = vpack.c.bf16 %v201_v21, %v200_v20  ;;  %v2021_v39 = vpack.c.bf16 %v219_v29, %v218_v28 }
  0x5e   :  { %2040 = vmatpush3.bf16.msra.mxu1 %v2039_v51  ;;  %439 = vmatprep.mubr.f32.mxu1 %v77_v58  ;;  %v250_v32 = vld [vmem:[#allocation5 + $0x3c0] sm:$0xff]  ;;  %v251_v33 = vld [vmem:[#allocation5 + $0x3c8] sm:$0xff]  ;;  %v92_v34 = vld [vmem:[#allocation2 + $0xd0] sm:$0xff]  ;;  %v2051_v35 = vpack.c.bf16 %v233_v25, %v232_v24 }
  0x5f   :  { %335 = vmatmul.mubr.f32.gmra.mrb[2].mxu0 %v74_v62  ;;  %2042 = vmatprep.subr.bf16.mxu1 %v2041_v59  ;;  %v202_v36 = vld [vmem:[#allocation5 + $0x240] sm:$0xff]  ;;  %v203_v37 = vld [vmem:[#allocation5 + $0x248] sm:$0xff]  ;;  %v101_v42 = vld [vmem:[#allocation2 + $0x118] sm:$0xff]  ;;  %v2053_v43 = vpack.c.bf16 %v251_v33, %v250_v32 }
  0x60   :  { %2012 = vmatpush3.bf16.msra.mxu0 %v2011_v63  ;;  %339 = vmatprep.mubr.f32.mxu0 %v83_v6  ;;  %v99_v38 = vld [vmem:[#allocation2 + $0x108] sm:$0xff]  ;;  %v234_v40 = vld [vmem:[#allocation5 + $0x340] sm:$0xff]  ;;  %v220_v44 = vld [vmem:[#allocation5 + $0x2d0] sm:$0xff]  ;;  %v2023_v47 = vpack.c.bf16 %v203_v37, %v202_v36 }
  0x61   :  { %440 = vmatmul.mubr.f32.gmra.mrb[2].mxu1 %v76_v2  ;;  %2014 = vmatprep.subr.bf16.mxu0 %v2013_v7  ;;  %v235_v41 = vld [vmem:[#allocation5 + $0x348] sm:$0xff]  ;;  %v221_v45 = vld [vmem:[#allocation5 + $0x2d8] sm:$0xff]  ;;  %v98_v46 = vld [vmem:[#allocation2 + $0x100] sm:$0xff] }
  0x62   :  { %2044 = vmatpush3.bf16.msra.mxu1 %v2043_v3  ;;  %444 = vmatprep.mubr.f32.mxu1 %v85_v10  ;;  %v252_v48 = vld [vmem:[#allocation5 + $0x3d0] sm:$0xff]  ;;  %v253_v49 = vld [vmem:[#allocation5 + $0x3d8] sm:$0xff]  ;;  %v2055_v51 = vpack.c.bf16 %v235_v41, %v234_v40  ;;  %v107_v54 = vld [vmem:[#allocation2 + $0x148] sm:$0xff]  ;;  %v2025_v55 = vpack.c.bf16 %v221_v45, %v220_v44 }
  0x63   :  { %340 = vmatmul.mubr.f32.gmra.mrb[4].mxu0 %v82_v14  ;;  %2046 = vmatprep.subr.bf16.mxu1 %v2045_v11  ;;  %v100_v50 = vld [vmem:[#allocation2 + $0x110] sm:$0xff]  ;;  %v205_v53 = vld [vmem:[#allocation5 + $0x258] sm:$0xff]  ;;  %v2057_v59 = vpack.c.bf16 %v253_v49, %v252_v48  ;;  %v222_v60 = vld [vmem:[#allocation5 + $0x2e0] sm:$0xff] }
  0x64   :  { %2016 = vmatpush3.bf16.msra.mxu0 %v2015_v15  ;;  %344 = vmatprep.mubr.f32.mxu0 %v91_v22  ;;  %v204_v52 = vld [vmem:[#allocation5 + $0x250] sm:$0xff]  ;;  %v237_v57 = vld [vmem:[#allocation5 + $0x358] sm:$0xff]  ;;  %v223_v61 = vld [vmem:[#allocation5 + $0x2e8] sm:$0xff] }
  0x65   :  { %445 = vmatmul.mubr.f32.gmra.mrb[4].mxu1 %v84_v18  ;;  %2018 = vmatprep.subr.bf16.mxu0 %v2017_v23  ;;  %v236_v56 = vld [vmem:[#allocation5 + $0x350] sm:$0xff]  ;;  %v109_v58 = vld [vmem:[#allocation2 + $0x158] sm:$0xff]  ;;  %v106_v62 = vld [vmem:[#allocation2 + $0x140] sm:$0xff]  ;;  %v2027_v63 = vpack.c.bf16 %v205_v53, %v204_v52  ;;  %v2029_v7 = vpack.c.bf16 %v223_v61, %v222_v60 }
  0x66   :  { %2048 = vmatpush3.bf16.msra.mxu1 %v2047_v19  ;;  %449 = vmatprep.mubr.f32.mxu1 %v93_v26  ;;  %v254_v0 = vld [vmem:[#allocation5 + $0x3e0] sm:$0xff]  ;;  %v255_v1 = vld [vmem:[#allocation5 + $0x3e8] sm:$0xff]  ;;  %v108_v2 = vld [vmem:[#allocation2 + $0x150] sm:$0xff]  ;;  %v2059_v3 = vpack.c.bf16 %v237_v57, %v236_v56 }
  0x67   :  { %345 = vmatmul.mubr.f32.gmra.mrb[6].mxu0 %v90_v30  ;;  %2050 = vmatprep.subr.bf16.mxu1 %v2049_v27  ;;  %v206_v4 = vld [vmem:[#allocation5 + $0x260] sm:$0xff]  ;;  %v207_v5 = vld [vmem:[#allocation5 + $0x268] sm:$0xff]  ;;  %v117_v10 = vld [vmem:[#allocation2 + $0x198] sm:$0xff]  ;;  %v2061_v11 = vpack.c.bf16 %v255_v1, %v254_v0 }
  0x68   :  { %2020 = vmatpush3.bf16.msra.mxu0 %v2019_v31  ;;  %349 = vmatprep.mubr.f32.mxu0 %v99_v38  ;;  %v115_v6 = vld [vmem:[#allocation2 + $0x188] sm:$0xff]  ;;  %v238_v8 = vld [vmem:[#allocation5 + $0x360] sm:$0xff]  ;;  %v224_v12 = vld [vmem:[#allocation5 + $0x2f0] sm:$0xff]  ;;  %v2031_v15 = vpack.c.bf16 %v207_v5, %v206_v4 }
  0x69   :  { %450 = vmatmul.mubr.f32.gmra.mrb[6].mxu1 %v92_v34  ;;  %2022 = vmatprep.subr.bf16.mxu0 %v2021_v39  ;;  %v239_v9 = vld [vmem:[#allocation5 + $0x368] sm:$0xff]  ;;  %v225_v13 = vld [vmem:[#allocation5 + $0x2f8] sm:$0xff]  ;;  %v114_v14 = vld [vmem:[#allocation2 + $0x180] sm:$0xff] }
  0x6a   :  { %2052 = vmatpush3.bf16.msra.mxu1 %v2051_v35  ;;  %454 = vmatprep.mubr.f32.mxu1 %v101_v42  ;;  %v256_v16 = vld [vmem:[#allocation5 + $0x3f0] sm:$0xff]  ;;  %v257_v17 = vld [vmem:[#allocation5 + $0x3f8] sm:$0xff]  ;;  %v2063_v19 = vpack.c.bf16 %v239_v9, %v238_v8  ;;  %v123_v22 = vld [vmem:[#allocation2 + $0x1c8] sm:$0xff]  ;;  %v2033_v23 = vpack.c.bf16 %v225_v13, %v224_v12 }
  0x6b   :  { %350 = vmatmul.mubr.f32.gmra.mrb[8].mxu0 %v98_v46  ;;  %2054 = vmatprep.subr.bf16.mxu1 %v2053_v43  ;;  %v116_v18 = vld [vmem:[#allocation2 + $0x190] sm:$0xff]  ;;  %v209_v21 = vld [vmem:[#allocation5 + $0x278] sm:$0xff]  ;;  %v2065_v27 = vpack.c.bf16 %v257_v17, %v256_v16  ;;  %v122_v28 = vld [vmem:[#allocation2 + $0x1c0] sm:$0xff] }
  0x6c   :  { %2024 = vmatpush3.bf16.msra.mxu0 %v2023_v47  ;;  %354 = vmatprep.mubr.f32.mxu0 %v107_v54  ;;  %v208_v20 = vld [vmem:[#allocation5 + $0x270] sm:$0xff]  ;;  %v241_v25 = vld [vmem:[#allocation5 + $0x378] sm:$0xff]  ;;  %v71_v32 = vld [vmem:[#allocation2 + $0x28] sm:$0xff] }
  0x6d   :  { %455 = vmatmul.mubr.f32.gmra.mrb[8].mxu1 %v100_v50  ;;  %2026 = vmatprep.subr.bf16.mxu0 %v2025_v55  ;;  %v240_v24 = vld [vmem:[#allocation5 + $0x370] sm:$0xff]  ;;  %v125_v26 = vld [vmem:[#allocation2 + $0x1d8] sm:$0xff]  ;;  %v2035_v29 = vpack.c.bf16 %v209_v21, %v208_v20  ;;  %v70_v34 = vld [vmem:[#allocation2 + $0x20] sm:$0xff] }
  0x6e   :  { %2056 = vmatpush3.bf16.msra.mxu1 %v2055_v51  ;;  %459 = vmatprep.mubr.f32.mxu1 %v109_v58  ;;  %v124_v30 = vld [vmem:[#allocation2 + $0x1d0] sm:$0xff]  ;;  %v2067_v31 = vpack.c.bf16 %v241_v25, %v240_v24  ;;  %v73_v33 = vld [vmem:[#allocation2 + $0x38] sm:$0xff]  ;;  %v79_v36 = vld [vmem:[#allocation2 + $0x68] sm:$0xff] }
  0x6f   :  { %355 = vmatmul.mubr.f32.gmra.mrb[10].mxu0 %v106_v62  ;;  %2058 = vmatprep.subr.bf16.mxu1 %v2057_v59  ;;  %v72_v35 = vld [vmem:[#allocation2 + $0x30] sm:$0xff]  ;;  %v81_v37 = vld [vmem:[#allocation2 + $0x78] sm:$0xff]  ;;  %v78_v38 = vld [vmem:[#allocation2 + $0x60] sm:$0xff] }
  0x70   :  { %2028 = vmatpush3.bf16.msra.mxu0 %v2027_v63  ;;  %359 = vmatprep.mubr.f32.mxu0 %v115_v6  ;;  %v80_v39 = vld [vmem:[#allocation2 + $0x70] sm:$0xff]  ;;  %v87_v40 = vld [vmem:[#allocation2 + $0xa8] sm:$0xff]  ;;  %v89_v41 = vld [vmem:[#allocation2 + $0xb8] sm:$0xff] }
  0x71   :  { %460 = vmatmul.mubr.f32.gmra.mrb[10].mxu1 %v108_v2  ;;  %2030 = vmatprep.subr.bf16.mxu0 %v2029_v7  ;;  %v86_v42 = vld [vmem:[#allocation2 + $0xa0] sm:$0xff]  ;;  %v88_v43 = vld [vmem:[#allocation2 + $0xb0] sm:$0xff]  ;;  %v95_v44 = vld [vmem:[#allocation2 + $0xe8] sm:$0xff] }
  0x72   :  { %2060 = vmatpush3.bf16.msra.mxu1 %v2059_v3  ;;  %464 = vmatprep.mubr.f32.mxu1 %v117_v10  ;;  %v97_v45 = vld [vmem:[#allocation2 + $0xf8] sm:$0xff]  ;;  %v94_v46 = vld [vmem:[#allocation2 + $0xe0] sm:$0xff]  ;;  %v96_v47 = vld [vmem:[#allocation2 + $0xf0] sm:$0xff] }
  0x73   :  { %360 = vmatmul.mubr.f32.gmra.mrb[12].mxu0 %v114_v14  ;;  %2062 = vmatprep.subr.bf16.mxu1 %v2061_v11  ;;  %v103_v48 = vld [vmem:[#allocation2 + $0x128] sm:$0xff]  ;;  %v105_v49 = vld [vmem:[#allocation2 + $0x138] sm:$0xff]  ;;  %v102_v50 = vld [vmem:[#allocation2 + $0x120] sm:$0xff] }
  0x74   :  { %2032 = vmatpush3.bf16.msra.mxu0 %v2031_v15  ;;  %364 = vmatprep.mubr.f32.mxu0 %v123_v22  ;;  %v104_v51 = vld [vmem:[#allocation2 + $0x130] sm:$0xff]  ;;  %v111_v52 = vld [vmem:[#allocation2 + $0x168] sm:$0xff]  ;;  %v113_v53 = vld [vmem:[#allocation2 + $0x178] sm:$0xff] }
  0x75   :  { %465 = vmatmul.mubr.f32.gmra.mrb[12].mxu1 %v116_v18  ;;  %2034 = vmatprep.subr.bf16.mxu0 %v2033_v23  ;;  %v110_v54 = vld [vmem:[#allocation2 + $0x160] sm:$0xff]  ;;  %v112_v55 = vld [vmem:[#allocation2 + $0x170] sm:$0xff]  ;;  %v119_v56 = vld [vmem:[#allocation2 + $0x1a8] sm:$0xff] }
  0x76   :  { %2064 = vmatpush3.bf16.msra.mxu1 %v2063_v19  ;;  %469 = vmatprep.mubr.f32.mxu1 %v125_v26  ;;  %v121_v57 = vld [vmem:[#allocation2 + $0x1b8] sm:$0xff]  ;;  %v118_v58 = vld [vmem:[#allocation2 + $0x1a0] sm:$0xff]  ;;  %v120_v59 = vld [vmem:[#allocation2 + $0x1b0] sm:$0xff] }
  0x77   :  { %365 = vmatmul.mubr.f32.gmra.mrb[14].mxu0 %v122_v28  ;;  %2066 = vmatprep.subr.bf16.mxu1 %v2065_v27  ;;  %v127_v60 = vld [vmem:[#allocation2 + $0x1e8] sm:$0xff]  ;;  %v129_v61 = vld [vmem:[#allocation2 + $0x1f8] sm:$0xff]  ;;  %v126_v62 = vld [vmem:[#allocation2 + $0x1e0] sm:$0xff] }
  0x78   :  { %2036 = vmatpush3.bf16.msra.mxu0 %v2035_v29  ;;  %539 = vmatprep.mubr.f32.mxu0 %v71_v32  ;;  %v128_v63 = vld [vmem:[#allocation2 + $0x1f0] sm:$0xff]  ;;  %v694_v0 = vld [vmem:[#allocation7 + $0x8] sm:$0xff]  ;;  %v696_v2 = vld [vmem:[#allocation7 + $0x18] sm:$0xff] }
  0x79   :  { %470 = vmatmul.mubr.f32.gmra.mrb[14].mxu1 %v124_v30  ;;  %v702_v1 = vld [vmem:[#allocation7 + $0x48] sm:$0xff]  ;;  %v704_v4 = vld [vmem:[#allocation7 + $0x58] sm:$0xff]  ;;  %v693_v5 = vld [vmem:[#allocation7] sm:$0xff] }
  0x7a   :  { %2068 = vmatpush3.bf16.msra.mxu1 %v2067_v31  ;;  %644 = vmatprep.mubr.f32.mxu1 %v73_v33  ;;  %v2069_v3 = vpack.c.bf16 %v702_v1, %v694_v0  ;;  %v701_v6 = vld [vmem:[#allocation7 + $0x40] sm:$0xff]  ;;  %v2101_v7 = vpack.c.bf16 %v704_v4, %v696_v2  ;;  %v695_v9 = vld [vmem:[#allocation7 + $0x10] sm:$0xff]  ;;  %v710_v12 = vld [vmem:[#allocation7 + $0x88] sm:$0xff] }
  0x7b   :  { %540 = vmatmul.mubr.f32.vlgmr.msra.gmra.mrb[16].mxu0 %v70_v34  ;;  %v2071_v8 = vpack.c.bf16 %v701_v6, %v693_v5  ;;  %v703_v10 = vld [vmem:[#allocation7 + $0x50] sm:$0xff]  ;;  %v718_v13 = vld [vmem:[#allocation7 + $0xc8] sm:$0xff]  ;;  %v712_v14 = vld [vmem:[#allocation7 + $0x98] sm:$0xff] }
  0x7c   :  { %544 = vmatprep.mubr.f32.mxu0 %v79_v36  ;;  %2070 = vmatprep.subr.bf16.mxu0 %v2069_v3  ;;  %v2103_v11 = vpack.c.bf16 %v703_v10, %v695_v9  ;;  %v2073_v15 = vpack.c.bf16 %v718_v13, %v710_v12  ;;  %v720_v16 = vld [vmem:[#allocation7 + $0xd8] sm:$0xff]  ;;  %v709_v17 = vld [vmem:[#allocation7 + $0x80] sm:$0xff]  ;;  %v711_v21 = vld [vmem:[#allocation7 + $0x90] sm:$0xff] }
  0x7d   :  { %645 = vmatmul.mubr.f32.vlgmr.msra.gmra.mrb[16].mxu1 %v72_v35  ;;  %2102 = vmatprep.subr.bf16.mxu1 %v2101_v7  ;;  %v717_v18 = vld [vmem:[#allocation7 + $0xc0] sm:$0xff]  ;;  %v2105_v19 = vpack.c.bf16 %v720_v16, %v712_v14  ;;  %v719_v22 = vld [vmem:[#allocation7 + $0xd0] sm:$0xff]  ;;  %v726_v24 = vld [vmem:[#allocation7 + $0x108] sm:$0xff] }
  0x7e   :  { %649 = vmatprep.mubr.f32.mxu1 %v81_v37  ;;  %2072 = vmatpush1.bf16.msra.mxu0 %v2071_v8  ;;  %v2075_v20 = vpack.c.bf16 %v717_v18, %v709_v17  ;;  %v2107_v23 = vpack.c.bf16 %v719_v22, %v711_v21  ;;  %v734_v25 = vld [vmem:[#allocation7 + $0x148] sm:$0xff]  ;;  %v728_v26 = vld [vmem:[#allocation7 + $0x118] sm:$0xff]  ;;  %v725_v29 = vld [vmem:[#allocation7 + $0x100] sm:$0xff] }
  0x7f   :  { %545 = vmatmul.mubr.f32.gmra.mrb[18].mxu0 %v78_v38  ;;  %2104 = vmatpush1.bf16.msra.mxu1 %v2103_v11  ;;  %v2077_v27 = vpack.c.bf16 %v734_v25, %v726_v24  ;;  %v736_v28 = vld [vmem:[#allocation7 + $0x158] sm:$0xff]  ;;  %v733_v30 = vld [vmem:[#allocation7 + $0x140] sm:$0xff]  ;;  %v727_v33 = vld [vmem:[#allocation7 + $0x110] sm:$0xff] }
  0x80   :  { %549 = vmatprep.mubr.f32.mxu0 %v87_v40  ;;  %2074 = vmatprep.subr.bf16.mxu0 %v2073_v15  ;;  %v2109_v31 = vpack.c.bf16 %v736_v28, %v728_v26  ;;  %v2079_v32 = vpack.c.bf16 %v733_v30, %v725_v29  ;;  %v735_v34 = vld [vmem:[#allocation7 + $0x150] sm:$0xff]  ;;  %v742_v36 = vld [vmem:[#allocation7 + $0x188] sm:$0xff]  ;;  %v744_v38 = vld [vmem:[#allocation7 + $0x198] sm:$0xff] }
  0x81   :  { %650 = vmatmul.mubr.f32.gmra.mrb[18].mxu1 %v80_v39  ;;  %2106 = vmatprep.subr.bf16.mxu1 %v2105_v19  ;;  %v2111_v35 = vpack.c.bf16 %v735_v34, %v727_v33  ;;  %v750_v37 = vld [vmem:[#allocation7 + $0x1c8] sm:$0xff]  ;;  %v752_v40 = vld [vmem:[#allocation7 + $0x1d8] sm:$0xff]  ;;  %v773_v1 = vld [vmem:[#allocation7 + $0x280] sm:$0xff] }
  0x82   :  { %654 = vmatprep.mubr.f32.mxu1 %v89_v41  ;;  %2076 = vmatpush1.bf16.msra.mxu0 %v2075_v20  ;;  %v2081_v39 = vpack.c.bf16 %v750_v37, %v742_v36  ;;  %v741_v41 = vld [vmem:[#allocation7 + $0x180] sm:$0xff]  ;;  %v784_v0 = vld [vmem:[#allocation7 + $0x2d8] sm:$0xff]  ;;  %v775_v5 = vld [vmem:[#allocation7 + $0x290] sm:$0xff]  ;;  %v2355_v37 = vmov 0.0  }
  0x83   :  { %550 = vmatmul.mubr.f32.gmra.mrb[20].mxu0 %v86_v42  ;;  %2108 = vmatpush1.bf16.msra.mxu1 %v2107_v23  ;;  %v749_v42 = vld [vmem:[#allocation7 + $0x1c0] sm:$0xff]  ;;  %v783_v6 = vld [vmem:[#allocation7 + $0x2d0] sm:$0xff]  ;;  %v790_v8 = vld [vmem:[#allocation7 + $0x308] sm:$0xff] }
  0x84   :  { %554 = vmatprep.mubr.f32.mxu0 %v95_v44  ;;  %2078 = vmatprep.subr.bf16.mxu0 %v2077_v27  ;;  %v2083_v44 = vpack.c.bf16 %v749_v42, %v741_v41  ;;  %v781_v2 = vld [vmem:[#allocation7 + $0x2c0] sm:$0xff]  ;;  %v2123_v7 = vpack.c.bf16 %v783_v6, %v775_v5  ;;  %v798_v9 = vld [vmem:[#allocation7 + $0x348] sm:$0xff]  ;;  %v792_v10 = vld [vmem:[#allocation7 + $0x318] sm:$0xff] }
  0x85   :  { %655 = vmatmul.mubr.f32.gmra.mrb[20].mxu1 %v88_v43  ;;  %2110 = vmatprep.subr.bf16.mxu1 %v2109_v31  ;;  %v2113_v43 = vpack.c.bf16 %v752_v40, %v744_v38  ;;  %v2091_v4 = vpack.c.bf16 %v781_v2, %v773_v1  ;;  %v2093_v11 = vpack.c.bf16 %v798_v9, %v790_v8  ;;  %v800_v12 = vld [vmem:[#allocation7 + $0x358] sm:$0xff]  ;;  %v789_v13 = vld [vmem:[#allocation7 + $0x300] sm:$0xff]  ;;  %v791_v17 = vld [vmem:[#allocation7 + $0x310] sm:$0xff] }
  0x86   :  { %659 = vmatprep.mubr.f32.mxu1 %v97_v45  ;;  %2080 = vmatpush1.bf16.msra.mxu0 %v2079_v32  ;;  %v743_v45 = vld [vmem:[#allocation7 + $0x190] sm:$0xff]  ;;  %v797_v14 = vld [vmem:[#allocation7 + $0x340] sm:$0xff]  ;;  %v2125_v15 = vpack.c.bf16 %v800_v12, %v792_v10  ;;  %v806_v20 = vld [vmem:[#allocation7 + $0x388] sm:$0xff] }
  0x87   :  { %555 = vmatmul.mubr.f32.gmra.mrb[22].mxu0 %v94_v46  ;;  %2112 = vmatpush1.bf16.msra.mxu1 %v2111_v35  ;;  %v751_v46 = vld [vmem:[#allocation7 + $0x1d0] sm:$0xff]  ;;  %v2095_v16 = vpack.c.bf16 %v797_v14, %v789_v13  ;;  %v814_v21 = vld [vmem:[#allocation7 + $0x3c8] sm:$0xff]  ;;  %v808_v22 = vld [vmem:[#allocation7 + $0x398] sm:$0xff] }
  0x88   :  { %559 = vmatprep.mubr.f32.mxu0 %v103_v48  ;;  %2082 = vmatprep.subr.bf16.mxu0 %v2081_v39  ;;  %v758_v48 = vld [vmem:[#allocation7 + $0x208] sm:$0xff]  ;;  %v799_v18 = vld [vmem:[#allocation7 + $0x350] sm:$0xff]  ;;  %v2097_v23 = vpack.c.bf16 %v814_v21, %v806_v20  ;;  %v816_v24 = vld [vmem:[#allocation7 + $0x3d8] sm:$0xff] }
  0x89   :  { %660 = vmatmul.mubr.f32.gmra.mrb[22].mxu1 %v96_v47  ;;  %v2115_v47 = vpack.c.bf16 %v751_v46, %v743_v45  ;;  %2114 = vmatprep.subr.bf16.mxu1 %v2113_v43  ;;  %v2127_v19 = vpack.c.bf16 %v799_v18, %v791_v17  ;;  %v805_v25 = vld [vmem:[#allocation7 + $0x380] sm:$0xff]  ;;  %v2129_v27 = vpack.c.bf16 %v816_v24, %v808_v22  ;;  %v807_v29 = vld [vmem:[#allocation7 + $0x390] sm:$0xff]  ;;  %v698_v32 = vld [vmem:[#allocation7 + $0x28] sm:$0xff] }
  0x8a   :  { %664 = vmatprep.mubr.f32.mxu1 %v105_v49  ;;  %2084 = vmatpush1.bf16.msra.mxu0 %v2083_v44  ;;  %v766_v49 = vld [vmem:[#allocation7 + $0x248] sm:$0xff]  ;;  %v813_v26 = vld [vmem:[#allocation7 + $0x3c0] sm:$0xff]  ;;  %v815_v30 = vld [vmem:[#allocation7 + $0x3d0] sm:$0xff] }
  0x8b   :  { %560 = vmatmul.mubr.f32.gmra.mrb[24].mxu0 %v102_v50  ;;  %v760_v50 = vld [vmem:[#allocation7 + $0x218] sm:$0xff]  ;;  %2116 = vmatpush1.bf16.msra.mxu1 %v2115_v47  ;;  %v2099_v28 = vpack.c.bf16 %v813_v26, %v805_v25  ;;  %v2131_v31 = vpack.c.bf16 %v815_v30, %v807_v29  ;;  %v706_v33 = vld [vmem:[#allocation7 + $0x68] sm:$0xff]  ;;  %v1716_v40 = vld [vmem:[%s2734_s2] ss:$0 sm:$0xff] }
  0x8c   :  { %564 = vmatprep.mubr.f32.mxu0 %v111_v52  ;;  %v768_v52 = vld [vmem:[#allocation7 + $0x258] sm:$0xff]  ;;  %v2133_v35 = vpack.c.bf16 %v706_v33, %v698_v32 }
  0x8d   :  { %665 = vmatmul.mubr.f32.gmra.mrb[24].mxu1 %v104_v51  ;;  %v2085_v51 = vpack.c.bf16 %v766_v49, %v758_v48  ;;  %v700_v34 = vld [vmem:[#allocation7 + $0x38] sm:$0xff] }
  0x8e   :  { %669 = vmatprep.mubr.f32.mxu1 %v113_v53  ;;  %v757_v53 = vld [vmem:[#allocation7 + $0x200] sm:$0xff]  ;;  %v708_v36 = vld [vmem:[#allocation7 + $0x78] sm:$0xff] }
  0x8f   :  { %565 = vmatmul.mubr.f32.gmra.mrb[26].mxu0 %v110_v54  ;;  %v765_v54 = vld [vmem:[#allocation7 + $0x240] sm:$0xff]  ;;  %2086 = vmatprep.subr.bf16.mxu0 %v2085_v51  ;;  %v2165_v38 = vpack.c.bf16 %v708_v36, %v700_v34 }
  0x90   :  { %569 = vmatprep.mubr.f32.mxu0 %v119_v56  ;;  %v2087_v56 = vpack.c.bf16 %v765_v54, %v757_v53 }
  0x91   :  { %670 = vmatmul.mubr.f32.gmra.mrb[26].mxu1 %v112_v55  ;;  %v2117_v55 = vpack.c.bf16 %v768_v52, %v760_v50 }
  0x92   :  { %674 = vmatprep.mubr.f32.mxu1 %v121_v57  ;;  %v759_v57 = vld [vmem:[#allocation7 + $0x210] sm:$0xff]  ;;  %2088 = vmatpush1.bf16.msra.mxu0 %v2087_v56 }
  0x93   :  { %570 = vmatmul.mubr.f32.gmra.mrb[28].mxu0 %v118_v58  ;;  %v767_v58 = vld [vmem:[#allocation7 + $0x250] sm:$0xff]  ;;  %2118 = vmatprep.subr.bf16.mxu1 %v2117_v55 }
  0x94   :  { %574 = vmatprep.mubr.f32.mxu0 %v127_v60  ;;  %v774_v60 = vld [vmem:[#allocation7 + $0x288] sm:$0xff] }
  0x95   :  { %675 = vmatmul.mubr.f32.gmra.mrb[28].mxu1 %v120_v59  ;;  %v2119_v59 = vpack.c.bf16 %v767_v58, %v759_v57 }
  0x96   :  { %679 = vmatprep.mubr.f32.mxu1 %v129_v61  ;;  %v782_v61 = vld [vmem:[#allocation7 + $0x2c8] sm:$0xff] }
  0x97   :  { %575 = vmatmul.mubr.f32.gmra.mrb[30].mxu0 %v126_v62  ;;  %v776_v62 = vld [vmem:[#allocation7 + $0x298] sm:$0xff]  ;;  %2120 = vmatpush1.bf16.msra.mxu1 %v2119_v59 }
  0x98   :  { %v2121_v3 = vpack.c.bf16 %v784_v0, %v776_v62  ;;  %927 = vmatprep.mubr.f32.mxu0 %v2355_v37 }
  0x99   :  { %680 = vmatmul.mubr.f32.gmra.mrb[30].mxu1 %v128_v63  ;;  %v2089_v63 = vpack.c.bf16 %v782_v61, %v774_v60 }
  0x9a   :  { %2122 = vmatprep.subr.bf16.mxu1 %v2121_v3  ;;  %1040 = vmatprep.mubr.f32.mxu1 %v2355_v37 }
  0x9b   :  { %2090 = vmatprep.subr.bf16.mxu0 %v2089_v63  ;;  %2124 = vmatpush1.bf16.msra.mxu1 %v2123_v7 }
  0x9c   :  { %2092 = vmatpush1.bf16.msra.mxu0 %v2091_v4  ;;  %2126 = vmatprep.subr.bf16.mxu1 %v2125_v15 }
  0x9d   :  { %2094 = vmatprep.subr.bf16.mxu0 %v2093_v11 }
  0x9f   :  { %2128 = vmatpush1.bf16.msra.mxu1 %v2127_v19 }
  0xa0   :  { %2096 = vmatpush1.bf16.msra.mxu0 %v2095_v16  ;;  %2130 = vmatprep.subr.bf16.mxu1 %v2129_v27 }
  0xa1   :  { %2098 = vmatprep.subr.bf16.mxu0 %v2097_v23 }
  0xa3   :  { %2132 = vmatpush1.bf16.msra.mxu1 %v2131_v31 }
  0xa4   :  { %2100 = vmatpush1.bf16.msra.mxu0 %v2099_v28  ;;  %2166 = vmatprep.subr.bf16.mxu1 %v2165_v38 }
  0xa5   :  { %2134 = vmatprep.subr.bf16.mxu0 %v2133_v35 }
 0x12e   :  { %v1749_v39 = vpop.f32.mrb[0].mxu0 }
 0x12f   :  { %v1750_v41 = vpop.f32.mrb[1].mxu0 }
 0x130   :  { %v1805_v42 = vpop.f32.mrb[0].mxu1  ;;  %v1751_v43 = vadd.f32 %v1750_v41, %v1749_v39 }
 0x131   :  { %v1806_v44 = vpop.f32.mrb[1].mxu1 }
 0x132   :  { %v1807_v45 = vadd.f32 %v1806_v44, %v1805_v42  ;;  %v332_v46 = vadd.f32 %v1751_v43, %v1716_v40  ;;  %v1752_v47 = vpop.f32.mrb[2].mxu0  ;;  %v697_v44 = vld [vmem:[#allocation7 + $0x20] sm:$0xff] }
 0x133   :  { %v1753_v48 = vpop.f32.mrb[3].mxu0 }
 0x134   :  { %v1808_v49 = vpop.f32.mrb[2].mxu1  ;;  %v2449_v50 = vadd.f32 %v1807_v45, %v332_v46  ;;  %v1754_v51 = vadd.f32 %v1753_v48, %v1752_v47  ;;  %v705_v48 = vld [vmem:[#allocation7 + $0x60] sm:$0xff] }
 0x135   :  { %v1809_v52 = vpop.f32.mrb[3].mxu1 }
 0x136   :  { %v1810_v53 = vadd.f32 %v1809_v52, %v1808_v49  ;;  %v337_v54 = vadd.f32 %v1754_v51, %v1716_v40  ;;  %v1755_v55 = vpop.f32.mrb[4].mxu0  ;;  %v699_v49 = vld [vmem:[#allocation7 + $0x30] sm:$0xff] }
 0x137   :  { %v1756_v56 = vpop.f32.mrb[5].mxu0  ;;  %v707_v51 = vld [vmem:[#allocation7 + $0x70] sm:$0xff] }
 0x138   :  { %v1811_v57 = vpop.f32.mrb[4].mxu1  ;;  %v2451_v58 = vadd.f32 %v1810_v53, %v337_v54  ;;  %v1757_v59 = vadd.f32 %v1756_v56, %v1755_v55  ;;  %v714_v53 = vld [vmem:[#allocation7 + $0xa8] sm:$0xff] }
 0x139   :  { %v1812_v60 = vpop.f32.mrb[5].mxu1  ;;  %v722_v56 = vld [vmem:[#allocation7 + $0xe8] sm:$0xff] }
 0x13a   :  { %v1813_v61 = vadd.f32 %v1812_v60, %v1811_v57  ;;  %v342_v62 = vadd.f32 %v1757_v59, %v1716_v40  ;;  %v1758_v63 = vpop.f32.mrb[6].mxu0  ;;  %v716_v57 = vld [vmem:[#allocation7 + $0xb8] sm:$0xff] }
 0x13b   :  { %v1759_v0 = vpop.f32.mrb[7].mxu0  ;;  %v724_v59 = vld [vmem:[#allocation7 + $0xf8] sm:$0xff] }
 0x13c   :  { %v1814_v1 = vpop.f32.mrb[6].mxu1  ;;  %v2453_v2 = vadd.f32 %v1813_v61, %v342_v62  ;;  %v1760_v3 = vadd.f32 %v1759_v0, %v1758_v63  ;;  %v2135_v61 = vpack.c.bf16 %v705_v48, %v697_v44  ;;  %v2167_v62 = vpack.c.bf16 %v707_v51, %v699_v49  ;;  %v713_v63 = vld [vmem:[#allocation7 + $0xa0] sm:$0xff]  ;;  %v747_v49 = vld [vmem:[#allocation7 + $0x1b0] sm:$0xff] }
 0x13d   :  { %v1815_v4 = vpop.f32.mrb[7].mxu1  ;;  %v745_v44 = vld [vmem:[#allocation7 + $0x1a0] sm:$0xff]  ;;  %v755_v51 = vld [vmem:[#allocation7 + $0x1f0] sm:$0xff] }
 0x13e   :  { %v1816_v5 = vadd.f32 %v1815_v4, %v1814_v1  ;;  %v347_v6 = vadd.f32 %v1760_v3, %v1716_v40  ;;  %v1761_v7 = vpop.f32.mrb[8].mxu0  ;;  %v721_v4 = vld [vmem:[#allocation7 + $0xe0] sm:$0xff] }
 0x13f   :  { %v1762_v8 = vpop.f32.mrb[9].mxu0 }
 0x140   :  { %v1817_v9 = vpop.f32.mrb[8].mxu1  ;;  %v2455_v10 = vadd.f32 %v1816_v5, %v347_v6  ;;  %v1763_v11 = vadd.f32 %v1762_v8, %v1761_v7  ;;  %v715_v5 = vld [vmem:[#allocation7 + $0xb0] sm:$0xff]  ;;  %v2137_v8 = vpack.c.bf16 %v722_v56, %v714_v53 }
 0x141   :  { %v1818_v12 = vpop.f32.mrb[9].mxu1  ;;  %v723_v6 = vld [vmem:[#allocation7 + $0xf0] sm:$0xff] }
 0x142   :  { %v1819_v13 = vadd.f32 %v1818_v12, %v1817_v9  ;;  %v352_v14 = vadd.f32 %v1763_v11, %v1716_v40  ;;  %v1764_v15 = vpop.f32.mrb[10].mxu0  ;;  %v2169_v9 = vpack.c.bf16 %v724_v59, %v716_v57  ;;  %v770_v59 = vld [vmem:[#allocation7 + $0x268] sm:$0xff] }
 0x143   :  { %v1765_v16 = vpop.f32.mrb[11].mxu0 }
 0x144   :  { %v1820_v17 = vpop.f32.mrb[10].mxu1  ;;  %v2457_v18 = vadd.f32 %v1819_v13, %v352_v14  ;;  %v1766_v19 = vadd.f32 %v1765_v16, %v1764_v15  ;;  %v738_v13 = vld [vmem:[#allocation7 + $0x168] sm:$0xff]  ;;  %v732_v14 = vld [vmem:[#allocation7 + $0x138] sm:$0xff] }
 0x145   :  { %v1821_v20 = vpop.f32.mrb[11].mxu1  ;;  %v740_v15 = vld [vmem:[#allocation7 + $0x178] sm:$0xff] }
 0x146   :  { %v1822_v21 = vadd.f32 %v1821_v20, %v1820_v17  ;;  %v357_v22 = vadd.f32 %v1766_v19, %v1716_v40  ;;  %v1767_v23 = vpop.f32.mrb[12].mxu0  ;;  %v2139_v19 = vpack.c.bf16 %v721_v4, %v713_v63  ;;  %v2171_v20 = vpack.c.bf16 %v723_v6, %v715_v5 }
 0x147   :  { %v1768_v24 = vpop.f32.mrb[13].mxu0 }
 0x148   :  { %v1823_v25 = vpop.f32.mrb[12].mxu1  ;;  %v2459_v26 = vadd.f32 %v1822_v21, %v357_v22  ;;  %v1769_v27 = vadd.f32 %v1768_v24, %v1767_v23  ;;  %v729_v21 = vld [vmem:[#allocation7 + $0x120] sm:$0xff] }
 0x149   :  { %v1824_v28 = vpop.f32.mrb[13].mxu1 }
 0x14a   :  { %v1825_v29 = vadd.f32 %v1824_v28, %v1823_v25  ;;  %v362_v30 = vadd.f32 %v1769_v27, %v1716_v40  ;;  %v1770_v31 = vpop.f32.mrb[14].mxu0  ;;  %v731_v25 = vld [vmem:[#allocation7 + $0x130] sm:$0xff] }
 0x14b   :  { %v1771_v32 = vpop.f32.mrb[15].mxu0  ;;  %v739_v27 = vld [vmem:[#allocation7 + $0x170] sm:$0xff] }
 0x14c   :  { %v1826_v33 = vpop.f32.mrb[14].mxu1  ;;  %v2461_v34 = vadd.f32 %v1825_v29, %v362_v30  ;;  %v1772_v35 = vadd.f32 %v1771_v32, %v1770_v31  ;;  %v2173_v30 = vpack.c.bf16 %v740_v15, %v732_v14  ;;  %v746_v31 = vld [vmem:[#allocation7 + $0x1a8] sm:$0xff] }
 0x14d   :  { %v1827_v36 = vpop.f32.mrb[15].mxu1  ;;  %v786_v15 = vld [vmem:[#allocation7 + $0x2e8] sm:$0xff] }
 0x14e   :  { %v1828_v38 = vadd.f32 %v1827_v36, %v1826_v33  ;;  %v367_v39 = vadd.f32 %v1772_v35, %v1716_v40  ;;  %v1861_v41 = vpop.f32.mrb[16].mxu0  ;;  %v754_v35 = vld [vmem:[#allocation7 + $0x1e8] sm:$0xff]  ;;  %v748_v36 = vld [vmem:[#allocation7 + $0x1b8] sm:$0xff] }
 0x14f   :  { %v1862_v42 = vpop.f32.mrb[17].mxu0  ;;  %v2145_v53 = vpack.c.bf16 %v754_v35, %v746_v31 }
 0x150   :  { %v1917_v43 = vpop.f32.mrb[16].mxu1  ;;  %v2463_v45 = vadd.f32 %v1828_v38, %v367_v39  ;;  %v1863_v46 = vadd.f32 %v1862_v42, %v1861_v41  ;;  %v756_v38 = vld [vmem:[#allocation7 + $0x1f8] sm:$0xff] }
 0x151   :  { %v1918_v47 = vpop.f32.mrb[17].mxu1 }
 0x152   :  { %v1919_v52 = vadd.f32 %v1918_v47, %v1917_v43  ;;  %v542_v54 = vadd.f32 %v1863_v46, %v2449_v50  ;;  %v1864_v55 = vpop.f32.mrb[18].mxu0  ;;  %v730_v50 = vld [vmem:[#allocation7 + $0x128] sm:$0xff]  ;;  %v2175_v43 = vpack.c.bf16 %v739_v27, %v731_v25 }
 0x153   :  { %v1865_v40 = vpop.f32.mrb[19].mxu0  ;;  %v2141_v29 = vpack.c.bf16 %v738_v13, %v730_v50 }
 0x154   :  { %v1920_v60 = vpop.f32.mrb[18].mxu1  ;;  %v2466_v0 = vadd.f32 %v1919_v52, %v542_v54  ;;  %v1866_v1 = vadd.f32 %v1865_v40, %v1864_v55  ;;  %v2177_v54 = vpack.c.bf16 %v756_v38, %v748_v36  ;;  %v762_v55 = vld [vmem:[#allocation7 + $0x228] sm:$0xff]  ;;  %v764_v40 = vld [vmem:[#allocation7 + $0x238] sm:$0xff] }
 0x155   :  { %v1921_v3 = vpop.f32.mrb[19].mxu1  ;;  %v2149_v50 = vpack.c.bf16 %v770_v59, %v762_v55  ;;  %v802_v38 = vld [vmem:[#allocation7 + $0x368] sm:$0xff] }
 0x156   :  { %v1922_v7 = vadd.f32 %v1921_v3, %v1920_v60  ;;  %685 = vst [vmem:[#allocation8] sm:$0xff] %v2466_v0  ;;  %v547_v11 = vadd.f32 %v1866_v1, %v2451_v58  ;;  %v1867_v12 = vpop.f32.mrb[20].mxu0  ;;  %928 = vmatmul.mubr.f32.vlgmr.msra.gmra.mrb[32].mxu0 %v2466_v0  ;;  %1041 = vmatmul.mubr.f32.vlgmr.msra.gmra.mrb[32].mxu1 %v2466_v0  ;;  %v737_v58 = vld [vmem:[#allocation7 + $0x160] sm:$0xff]  ;;  %v772_v60 = vld [vmem:[#allocation7 + $0x278] sm:$0xff] }
 0x157   :  { %v1868_v16 = vpop.f32.mrb[21].mxu0  ;;  %2136 = vmatpush1.bf16.msra.mxu0 %v2135_v61  ;;  %2168 = vmatpush1.bf16.msra.mxu1 %v2167_v62  ;;  %v2143_v42 = vpack.c.bf16 %v737_v58, %v729_v21  ;;  %v2179_v1 = vpack.c.bf16 %v755_v51, %v747_v49  ;;  %v761_v3 = vld [vmem:[#allocation7 + $0x220] sm:$0xff] }
 0x158   :  { %v1923_v17 = vpop.f32.mrb[20].mxu1  ;;  %v2472_v22 = vadd.f32 %v1922_v7, %v547_v11  ;;  %v1869_v23 = vadd.f32 %v1868_v16, %v1867_v12  ;;  %933 = vmatprep.mubr.f32.mxu0 %v2355_v37  ;;  %1046 = vmatprep.mubr.f32.mxu1 %v2355_v37  ;;  %v763_v7 = vld [vmem:[#allocation7 + $0x230] sm:$0xff]  ;;  %v2181_v11 = vpack.c.bf16 %v772_v60, %v764_v40  ;;  %v778_v12 = vld [vmem:[#allocation7 + $0x2a8] sm:$0xff]  ;;  %v780_v16 = vld [vmem:[#allocation7 + $0x2b8] sm:$0xff] }
 0x159   :  { %v1924_v24 = vpop.f32.mrb[21].mxu1  ;;  %2138 = vmatprep.subr.bf16.mxu0 %v2137_v8  ;;  %2170 = vmatprep.subr.bf16.mxu1 %v2169_v9  ;;  %v771_v8 = vld [vmem:[#allocation7 + $0x270] sm:$0xff]  ;;  %v2153_v31 = vpack.c.bf16 %v786_v15, %v778_v12  ;;  %v818_v60 = vld [vmem:[#allocation7 + $0x3e8] sm:$0xff] }
 0x15a   :  { %v1925_v28 = vadd.f32 %v1924_v24, %v1923_v17  ;;  %686 = vst [vmem:[#allocation8 + $0x8] sm:$0xff] %v2472_v22  ;;  %v552_v32 = vadd.f32 %v1869_v23, %v2453_v2  ;;  %v1870_v33 = vpop.f32.mrb[22].mxu0  ;;  %934 = vmatmul.mubr.f32.gmra.mrb[34].mxu0 %v2472_v22  ;;  %1047 = vmatmul.mubr.f32.gmra.mrb[34].mxu1 %v2472_v22  ;;  %v753_v2 = vld [vmem:[#allocation7 + $0x1e0] sm:$0xff]  ;;  %v788_v17 = vld [vmem:[#allocation7 + $0x2f8] sm:$0xff] }
 0x15b   :  { %v1871_v39 = vpop.f32.mrb[23].mxu0  ;;  %2140 = vmatpush1.bf16.msra.mxu0 %v2139_v19  ;;  %2172 = vmatpush1.bf16.msra.mxu1 %v2171_v20  ;;  %v2147_v63 = vpack.c.bf16 %v753_v2, %v745_v44  ;;  %v2183_v23 = vpack.c.bf16 %v771_v8, %v763_v7  ;;  %v777_v24 = vld [vmem:[#allocation7 + $0x2a0] sm:$0xff] }
 0x15c   :  { %v1926_v41 = vpop.f32.mrb[22].mxu1  ;;  %v2480_v46 = vadd.f32 %v1925_v28, %v552_v32  ;;  %v1872_v47 = vadd.f32 %v1871_v39, %v1870_v33  ;;  %939 = vmatprep.mubr.f32.mxu0 %v2355_v37  ;;  %1052 = vmatprep.mubr.f32.mxu1 %v2355_v37  ;;  %v779_v28 = vld [vmem:[#allocation7 + $0x2b0] sm:$0xff]  ;;  %v2185_v32 = vpack.c.bf16 %v788_v17, %v780_v16  ;;  %v794_v33 = vld [vmem:[#allocation7 + $0x328] sm:$0xff]  ;;  %v796_v39 = vld [vmem:[#allocation7 + $0x338] sm:$0xff] }
 0x15d   :  { %v1927_v48 = vpop.f32.mrb[23].mxu1  ;;  %2142 = vmatprep.subr.bf16.mxu0 %v2141_v29  ;;  %2174 = vmatprep.subr.bf16.mxu1 %v2173_v30  ;;  %v787_v29 = vld [vmem:[#allocation7 + $0x2f0] sm:$0xff]  ;;  %v2157_v55 = vpack.c.bf16 %v802_v38, %v794_v33  ;;  %v1382_v38 = vld [vmem:[#allocation2 + $0x18] sm:$0xff] }
 0x15e   :  { %v1928_v52 = vadd.f32 %v1927_v48, %v1926_v41  ;;  %687 = vst [vmem:[#allocation8 + $0x10] sm:$0xff] %v2480_v46  ;;  %v557_v56 = vadd.f32 %v1872_v47, %v2455_v10  ;;  %v1873_v57 = vpop.f32.mrb[24].mxu0  ;;  %940 = vmatmul.mubr.f32.gmra.mrb[36].mxu0 %v2480_v46  ;;  %1053 = vmatmul.mubr.f32.gmra.mrb[36].mxu1 %v2480_v46  ;;  %v769_v10 = vld [vmem:[#allocation7 + $0x260] sm:$0xff]  ;;  %v804_v41 = vld [vmem:[#allocation7 + $0x378] sm:$0xff] }
 0x15f   :  { %v1874_v61 = vpop.f32.mrb[25].mxu0  ;;  %2144 = vmatpush1.bf16.msra.mxu0 %v2143_v42  ;;  %2176 = vmatpush1.bf16.msra.mxu1 %v2175_v43  ;;  %v2151_v21 = vpack.c.bf16 %v769_v10, %v761_v3  ;;  %v2187_v47 = vpack.c.bf16 %v787_v29, %v779_v28  ;;  %v793_v48 = vld [vmem:[#allocation7 + $0x320] sm:$0xff]  ;;  %v1381_v29 = vld [vmem:[#allocation2 + $0x10] sm:$0xff] }
 0x160   :  { %v1929_v62 = vpop.f32.mrb[24].mxu1  ;;  %v2488_v4 = vadd.f32 %v1928_v52, %v557_v56  ;;  %v1875_v5 = vadd.f32 %v1874_v61, %v1873_v57  ;;  %945 = vmatprep.mubr.f32.mxu0 %v2355_v37  ;;  %1058 = vmatprep.mubr.f32.mxu1 %v2355_v37  ;;  %v795_v52 = vld [vmem:[#allocation7 + $0x330] sm:$0xff]  ;;  %v2189_v56 = vpack.c.bf16 %v804_v41, %v796_v39  ;;  %v810_v57 = vld [vmem:[#allocation7 + $0x3a8] sm:$0xff]  ;;  %v812_v61 = vld [vmem:[#allocation7 + $0x3b8] sm:$0xff] }
 0x161   :  { %v1930_v6 = vpop.f32.mrb[25].mxu1  ;;  %2146 = vmatprep.subr.bf16.mxu0 %v2145_v53  ;;  %2178 = vmatprep.subr.bf16.mxu1 %v2177_v54  ;;  %v803_v53 = vld [vmem:[#allocation7 + $0x370] sm:$0xff]  ;;  %v2161_v12 = vpack.c.bf16 %v818_v60, %v810_v57  ;;  %v1390_v57 = vld [vmem:[#allocation2 + $0x58] sm:$0xff] }
 0x162   :  { %v1931_v9 = vadd.f32 %v1930_v6, %v1929_v62  ;;  %688 = vst [vmem:[#allocation8 + $0x18] sm:$0xff] %v2488_v4  ;;  %v562_v13 = vadd.f32 %v1875_v5, %v2457_v18  ;;  %v1876_v14 = vpop.f32.mrb[26].mxu0  ;;  %946 = vmatmul.mubr.f32.gmra.mrb[38].mxu0 %v2488_v4  ;;  %1059 = vmatmul.mubr.f32.gmra.mrb[38].mxu1 %v2488_v4  ;;  %v785_v18 = vld [vmem:[#allocation7 + $0x2e0] sm:$0xff]  ;;  %v820_v62 = vld [vmem:[#allocation7 + $0x3f8] sm:$0xff] }
 0x163   :  { %v1877_v19 = vpop.f32.mrb[27].mxu0  ;;  %2148 = vmatpush1.bf16.msra.mxu0 %v2147_v63  ;;  %2180 = vmatpush1.bf16.msra.mxu1 %v2179_v1  ;;  %v2155_v44 = vpack.c.bf16 %v785_v18, %v777_v24  ;;  %v2191_v5 = vpack.c.bf16 %v803_v53, %v795_v52  ;;  %v809_v6 = vld [vmem:[#allocation7 + $0x3a0] sm:$0xff] }
 0x164   :  { %v1932_v20 = vpop.f32.mrb[26].mxu1  ;;  %v2496_v58 = vadd.f32 %v1931_v9, %v562_v13  ;;  %v1878_v25 = vadd.f32 %v1877_v19, %v1876_v14  ;;  %951 = vmatprep.mubr.f32.mxu0 %v2355_v37  ;;  %1064 = vmatprep.mubr.f32.mxu1 %v2355_v37  ;;  %v811_v9 = vld [vmem:[#allocation7 + $0x3b0] sm:$0xff]  ;;  %v2193_v13 = vpack.c.bf16 %v820_v62, %v812_v61 }
 0x165   :  { %v1933_v27 = vpop.f32.mrb[27].mxu1  ;;  %2150 = vmatprep.subr.bf16.mxu0 %v2149_v50  ;;  %2182 = vmatprep.subr.bf16.mxu1 %v2181_v11  ;;  %v819_v50 = vld [vmem:[#allocation7 + $0x3f0] sm:$0xff] }
 0x166   :  { %v1934_v30 = vadd.f32 %v1933_v27, %v1932_v20  ;;  %689 = vst [vmem:[#allocation8 + $0x20] sm:$0xff] %v2496_v58  ;;  %v567_v35 = vadd.f32 %v1878_v25, %v2459_v26  ;;  %v1879_v36 = vpop.f32.mrb[28].mxu0  ;;  %952 = vmatmul.mubr.f32.gmra.mrb[40].mxu0 %v2496_v58  ;;  %1065 = vmatmul.mubr.f32.gmra.mrb[40].mxu1 %v2496_v58  ;;  %v801_v26 = vld [vmem:[#allocation7 + $0x360] sm:$0xff] }
 0x167   :  { %v1880_v42 = vpop.f32.mrb[29].mxu0  ;;  %2152 = vmatpush1.bf16.msra.mxu0 %v2151_v21  ;;  %2184 = vmatpush1.bf16.msra.mxu1 %v2183_v23  ;;  %v2159_v3 = vpack.c.bf16 %v801_v26, %v793_v48  ;;  %v2195_v16 = vpack.c.bf16 %v819_v50, %v811_v9  ;;  %v1379_v25 = vld [vmem:[#allocation2] sm:$0xff]  ;;  %v1388_v26 = vld [vmem:[#allocation2 + $0x48] sm:$0xff] }
 0x168   :  { %v1935_v43 = vpop.f32.mrb[28].mxu1  ;;  %v2504_v2 = vadd.f32 %v1934_v30, %v567_v35  ;;  %v1881_v49 = vadd.f32 %v1880_v42, %v1879_v36  ;;  %957 = vmatprep.mubr.f32.mxu0 %v2355_v37  ;;  %1070 = vmatprep.mubr.f32.mxu1 %v2355_v37 }
 0x169   :  { %v1936_v51 = vpop.f32.mrb[29].mxu1  ;;  %2154 = vmatprep.subr.bf16.mxu0 %v2153_v31  ;;  %2186 = vmatprep.subr.bf16.mxu1 %v2185_v32  ;;  %v1380_v31 = vld [vmem:[#allocation2 + $0x8] sm:$0xff] }
 0x16a   :  { %v1937_v54 = vadd.f32 %v1936_v51, %v1935_v43  ;;  %690 = vst [vmem:[#allocation8 + $0x28] sm:$0xff] %v2504_v2  ;;  %v572_v59 = vadd.f32 %v1881_v49, %v2461_v34  ;;  %v1882_v40 = vpop.f32.mrb[30].mxu0  ;;  %958 = vmatmul.mubr.f32.gmra.mrb[42].mxu0 %v2504_v2  ;;  %1071 = vmatmul.mubr.f32.gmra.mrb[42].mxu1 %v2504_v2  ;;  %v817_v34 = vld [vmem:[#allocation7 + $0x3e0] sm:$0xff]  ;;  %v1389_v49 = vld [vmem:[#allocation2 + $0x50] sm:$0xff] }
 0x16b   :  { %v1883_v63 = vpop.f32.mrb[31].mxu0  ;;  %2156 = vmatpush1.bf16.msra.mxu0 %v2155_v44  ;;  %2188 = vmatpush1.bf16.msra.mxu1 %v2187_v47  ;;  %v2163_v15 = vpack.c.bf16 %v817_v34, %v809_v6  ;;  %v1387_v43 = vld [vmem:[#allocation2 + $0x40] sm:$0xff] }
 0x16c   :  { %v1938_v1 = vpop.f32.mrb[30].mxu1  ;;  %v677_v10 = vadd.f32 %v1937_v54, %v572_v59  ;;  %v1884_v7 = vadd.f32 %v1883_v63, %v1882_v40  ;;  %963 = vmatprep.mubr.f32.mxu0 %v2355_v37  ;;  %1076 = vmatprep.mubr.f32.mxu1 %v2355_v37 }
 0x16d   :  { %v1939_v8 = vpop.f32.mrb[31].mxu1  ;;  %2158 = vmatprep.subr.bf16.mxu0 %v2157_v55  ;;  %2190 = vmatprep.subr.bf16.mxu1 %v2189_v56 }
 0x16e   :  { %v1940_v11 = vadd.f32 %v1939_v8, %v1938_v1  ;;  %691 = vst [vmem:[#allocation8 + $0x30] sm:$0xff] %v677_v10  ;;  %v577_v14 = vadd.f32 %v1884_v7, %v2463_v45  ;;  %964 = vmatmul.mubr.f32.gmra.mrb[44].mxu0 %v677_v10  ;;  %1077 = vmatmul.mubr.f32.gmra.mrb[44].mxu1 %v677_v10  ;;  %v823_v45 = vlaneseq }
 0x16f   :  { %2160 = vmatpush1.bf16.msra.mxu0 %v2159_v3  ;;  %2192 = vmatpush1.bf16.msra.mxu1 %v2191_v5  ;;  %v1395_v5 = vld [vmem:[#allocation2 + $0x80] sm:$0xff] }
 0x170   :  { %v682_v17 = vadd.f32 %v1940_v11, %v577_v14  ;;  %969 = vmatprep.mubr.f32.mxu0 %v2355_v37  ;;  %1082 = vmatprep.mubr.f32.mxu1 %v2355_v37  ;;  %v1396_v11 = vld [vmem:[#allocation2 + $0x88] sm:$0xff] }
 0x171   :  { %2162 = vmatprep.subr.bf16.mxu0 %v2161_v12  ;;  %2194 = vmatprep.subr.bf16.mxu1 %v2193_v13 }
 0x172   :  { %692 = vst [vmem:[#allocation8 + $0x38] sm:$0xff] %v682_v17  ;;  %970 = vmatmul.mubr.f32.gmra.mrb[46].mxu0 %v682_v17  ;;  %1083 = vmatmul.mubr.f32.gmra.mrb[46].mxu1 %v682_v17 }
 0x173   :  { %2164 = vmatpush1.bf16.msra.mxu0 %v2163_v15  ;;  %2196 = vmatpush1.bf16.msra.mxu1 %v2195_v16 }
 0x174   :  { %1153 = vmatprep.mubr.f32.mxu0 %v2355_v37  ;;  %1266 = vmatprep.mubr.f32.mxu1 %v2355_v37 }
 0x176   :  { %1154 = vmatmul.mubr.f32.vlgmr.msra.gmra.mrb[48].mxu0 %v2466_v0  ;;  %1267 = vmatmul.mubr.f32.vlgmr.msra.gmra.mrb[48].mxu1 %v2466_v0  ;;  %v2545_v0 = vshrl.u32 %v823_v45, 7 }
 0x177   :  { %1159 = vmatprep.mubr.f32.mxu0 %v2355_v37  ;;  %1272 = vmatprep.mubr.f32.mxu1 %v2355_v37 }
 0x178   :  { %v829_v19 = vsub.s32 1, %v2545_v0  ;;  %v837_v20 = vsub.s32 3, %v2545_v0  ;;  %v841_v40 = vsub.s32 4, %v2545_v0  ;;  %v849_v60 = vsub.s32 6, %v2545_v0 }
 0x17a   :  { %1160 = vmatmul.mubr.f32.gmra.mrb[50].mxu0 %v2472_v22  ;;  %1273 = vmatmul.mubr.f32.gmra.mrb[50].mxu1 %v2472_v22  ;;  %v825_v22 = vsub.s32 0, %v2545_v0 }
 0x17b   :  { %1165 = vmatprep.mubr.f32.mxu0 %v2355_v37  ;;  %1278 = vmatprep.mubr.f32.mxu1 %v2355_v37 }
 0x17e   :  { %1166 = vmatmul.mubr.f32.gmra.mrb[52].mxu0 %v2480_v46  ;;  %1279 = vmatmul.mubr.f32.gmra.mrb[52].mxu1 %v2480_v46  ;;  %v833_v46 = vsub.s32 2, %v2545_v0 }
 0x17f   :  { %1171 = vmatprep.mubr.f32.mxu0 %v2355_v37  ;;  %1284 = vmatprep.mubr.f32.mxu1 %v2355_v37 }
 0x182   :  { %1172 = vmatmul.mubr.f32.gmra.mrb[54].mxu0 %v2488_v4  ;;  %1285 = vmatmul.mubr.f32.gmra.mrb[54].mxu1 %v2488_v4  ;;  %v2552_v4 = vld [vmem:[%s2736_s4] sm:$0xff]  ;;  %s2356_s4 = smov [#allocation9]  }
 0x183   :  { %1177 = vmatprep.mubr.f32.mxu0 %v2355_v37  ;;  %1290 = vmatprep.mubr.f32.mxu1 %v2355_v37  ;;  %v2560_v21 = vrot.slane %v2552_v4, %v833_v46  ;;  %v2563_v23 = vrot.slane %v2552_v4, %v829_v19  ;;  %v2566_v24 = vrot.slane %v2552_v4, %v837_v20  ;;  %v845_v19 = vsub.s32 5, %v2545_v0  ;;  %s1684_s20 = sshll.u32 %s2356_s4, 4  ;;  %s1685_s20 = int_to_ptr.vmem [resolvable:$true] %s1684_s20 }
 0x184   :  { %s2274_s23 = scalar_lea.vmem %s1685_s20, 8192  ;;  %p2279_p11 = scmp.lt.s32.totalorder %s1685_s20, %s1685_s20 }
 0x185   :  { %p2275_p10 = scmp.ne.s32.totalorder %s1685_s20, %s2274_s23  ;;  %p2280_p12 = scmp.lt.s32.totalorder %s2274_s23, %s2274_s23 }
 0x186   :  { %1178 = vmatmul.mubr.f32.gmra.mrb[56].mxu0 %v2496_v58  ;;  %1291 = vmatmul.mubr.f32.gmra.mrb[56].mxu1 %v2496_v58 }
 0x187   :  { %1183 = vmatprep.mubr.f32.mxu0 %v2355_v37  ;;  %1296 = vmatprep.mubr.f32.mxu1 %v2355_v37  ;;  %p2281_p13 = por %p2280_p12, %p2279_p11 }
 0x189   :  { %p2282_p0 = pnand %p2281_p13, %p2275_p10 }
 0x18a   :  { %1184 = vmatmul.mubr.f32.gmra.mrb[58].mxu0 %v2504_v2  ;;  %1297 = vmatmul.mubr.f32.gmra.mrb[58].mxu1 %v2504_v2 }
 0x18b   :  { %1189 = vmatprep.mubr.f32.mxu0 %v2355_v37  ;;  %1302 = vmatprep.mubr.f32.mxu1 %v2355_v37 }
 0x18e   :  { %1190 = vmatmul.mubr.f32.gmra.mrb[60].mxu0 %v677_v10  ;;  %1303 = vmatmul.mubr.f32.gmra.mrb[60].mxu1 %v677_v10  ;;  %v1397_v10 = vld [vmem:[#allocation2 + $0x90] sm:$0xff] }
 0x18f   :  { %1195 = vmatprep.mubr.f32.mxu0 %v2355_v37  ;;  %1308 = vmatprep.mubr.f32.mxu1 %v2355_v37  ;;  %v2557_v37 = vrot.slane %v2552_v4, %v825_v22 }
 0x192   :  { %1196 = vmatmul.mubr.f32.gmra.mrb[62].mxu0 %v682_v17  ;;  %1309 = vmatmul.mubr.f32.gmra.mrb[62].mxu1 %v682_v17  ;;  %v1398_v17 = vld [vmem:[#allocation2 + $0x98] sm:$0xff] }
 0x229   :  { %v929_v58 = vpop.f32.mrb[32].mxu0  ;;  %v1042_v27 = vpop.f32.mrb[32].mxu1 }
 0x22a   :  { %v930_v18 = vadd.f32 %v929_v58, %v2557_v37  ;;  %v1043_v28 = vadd.f32 %v1042_v27, %v2560_v21  ;;  %v931_v30 = vpop.f32.mrb[33].mxu0  ;;  %v1044_v32 = vpop.f32.mrb[33].mxu1 }
 0x22b   :  { %v932_v33 = vadd.f32 %v931_v30, %v2563_v23  ;;  %v1045_v35 = vadd.f32 %v1044_v32, %v2566_v24 }
 0x22c   :  { %1315 = vst [vmem:[#allocation9] sm:$0xff] %v930_v18  ;;  %v1443_v36 = vsub.f32 %v1379_v25, %v930_v18  ;;  %1317 = vst [vmem:[#allocation9 + $0x10] sm:$0xff] %v1043_v28  ;;  %v1445_v39 = vsub.f32 %v1381_v29, %v1043_v28  ;;  %v1403_v28 = vld [vmem:[#allocation2 + $0xc0] sm:$0xff] }
 0x22d   :  { %1316 = vst [vmem:[#allocation9 + $0x8] sm:$0xff] %v932_v33  ;;  %v1444_v41 = vsub.f32 %v1380_v31, %v932_v33  ;;  %1318 = vst [vmem:[#allocation9 + $0x18] sm:$0xff] %v1045_v35  ;;  %v935_v42 = vpop.f32.mrb[34].mxu0  ;;  %v1048_v44 = vpop.f32.mrb[34].mxu1  ;;  %v1446_v54 = vsub.f32 %v1382_v38, %v1045_v35  ;;  %v1405_v35 = vld [vmem:[#allocation2 + $0xd0] sm:$0xff]  ;;  %v1404_v38 = vld [vmem:[#allocation2 + $0xc8] sm:$0xff] }
 0x22e   :  { %v1507_v47 = vmul.f32 %v1443_v36, %v1443_v36  ;;  %v936_v48 = vadd.f32 %v935_v42, %v2557_v37  ;;  %v1049_v2 = vadd.f32 %v1048_v44, %v2560_v21  ;;  %v937_v51 = vpop.f32.mrb[35].mxu0  ;;  %v1050_v52 = vpop.f32.mrb[35].mxu1  ;;  %v1509_v61 = vmul.f32 %v1445_v39, %v1445_v39 }
 0x22f   :  { %v1508_v53 = vmul.f32 %v1444_v41, %v1444_v41  ;;  %v938_v55 = vadd.f32 %v937_v51, %v2563_v23  ;;  %v1051_v56 = vadd.f32 %v1050_v52, %v2566_v24  ;;  %v1510_v13 = vmul.f32 %v1446_v54, %v1446_v54 }
 0x230   :  { %1323 = vst [vmem:[#allocation9 + $0x40] sm:$0xff] %v936_v48  ;;  %v1451_v59 = vsub.f32 %v1387_v43, %v936_v48  ;;  %1325 = vst [vmem:[#allocation9 + $0x50] sm:$0xff] %v1049_v2  ;;  %v1453_v63 = vsub.f32 %v1389_v49, %v1049_v2  ;;  %v853_v51 = vsub.s32 7, %v2545_v0 }
 0x231   :  { %v1571_v62 = vadd.f32 %v1508_v53, %v1507_v47  ;;  %1324 = vst [vmem:[#allocation9 + $0x48] sm:$0xff] %v938_v55  ;;  %v1452_v1 = vsub.f32 %v1388_v26, %v938_v55  ;;  %1326 = vst [vmem:[#allocation9 + $0x58] sm:$0xff] %v1051_v56  ;;  %v941_v3 = vpop.f32.mrb[36].mxu0  ;;  %v1054_v6 = vpop.f32.mrb[36].mxu1  ;;  %v1454_v8 = vsub.f32 %v1390_v57, %v1051_v56  ;;  %v1406_v47 = vld [vmem:[#allocation2 + $0xd8] sm:$0xff]  ;;  %v1411_v56 = vld [vmem:[#allocation2 + $0x100] sm:$0xff] }
 0x232   :  { %v1515_v7 = vmul.f32 %v1451_v59, %v1451_v59  ;;  %v942_v34 = vadd.f32 %v941_v3, %v2557_v37  ;;  %v1055_v9 = vadd.f32 %v1054_v6, %v2560_v21  ;;  %v943_v50 = vpop.f32.mrb[37].mxu0  ;;  %v1056_v12 = vpop.f32.mrb[37].mxu1  ;;  %v1517_v58 = vmul.f32 %v1453_v63, %v1453_v63  ;;  %v1413_v59 = vld [vmem:[#allocation2 + $0x110] sm:$0xff] }
 0x233   :  { %v1572_v14 = vadd.f32 %v1571_v62, %v1509_v61  ;;  %v1516_v15 = vmul.f32 %v1452_v1, %v1452_v1  ;;  %v944_v16 = vadd.f32 %v943_v50, %v2563_v23  ;;  %v1057_v46 = vadd.f32 %v1056_v12, %v2566_v24 }
 0x234   :  { %1331 = vst [vmem:[#allocation9 + $0x80] sm:$0xff] %v942_v34  ;;  %v1459_v45 = vsub.f32 %v1395_v5, %v942_v34  ;;  %1333 = vst [vmem:[#allocation9 + $0x90] sm:$0xff] %v1055_v9  ;;  %v1461_v22 = vsub.f32 %v1397_v10, %v1055_v9  ;;  %v1518_v30 = vmul.f32 %v1454_v8, %v1454_v8  ;;  %v1412_v5 = vld [vmem:[#allocation2 + $0x108] sm:$0xff]  ;;  %v1414_v9 = vld [vmem:[#allocation2 + $0x118] sm:$0xff] }
 0x235   :  { %v2583_v20 = vadd.f32 %v1572_v14, %v1510_v13  ;;  %v1580_v25 = vadd.f32 %v1516_v15, %v1515_v7  ;;  %1332 = vst [vmem:[#allocation9 + $0x88] sm:$0xff] %v944_v16  ;;  %v1460_v27 = vsub.f32 %v1396_v11, %v944_v16  ;;  %v947_v18 = vpop.f32.mrb[38].mxu0  ;;  %v1060_v29 = vpop.f32.mrb[38].mxu1  ;;  %1334 = vst [vmem:[#allocation9 + $0x98] sm:$0xff] %v1057_v46 }
 0x236   :  { %v1523_v31 = vmul.f32 %v1459_v45, %v1459_v45  ;;  %v1462_v32 = vsub.f32 %v1398_v17, %v1057_v46  ;;  %v948_v33 = vadd.f32 %v947_v18, %v2557_v37  ;;  %v949_v36 = vpop.f32.mrb[39].mxu0  ;;  %v1062_v39 = vpop.f32.mrb[39].mxu1  ;;  %v1061_v43 = vadd.f32 %v1060_v29, %v2560_v21 }
 0x237   :  { %v1581_v41 = vadd.f32 %v1580_v25, %v1517_v58  ;;  %v1524_v42 = vmul.f32 %v1460_v27, %v1460_v27  ;;  %v950_v44 = vadd.f32 %v949_v36, %v2563_v23  ;;  %v1525_v48 = vmul.f32 %v1461_v22, %v1461_v22  ;;  %v1419_v22 = vld [vmem:[#allocation2 + $0x140] sm:$0xff]  ;;  %v1422_v36 = vld [vmem:[#allocation2 + $0x158] sm:$0xff] }
 0x238   :  { %1339 = vst [vmem:[#allocation9 + $0xc0] sm:$0xff] %v948_v33  ;;  %v1467_v2 = vsub.f32 %v1403_v28, %v948_v33  ;;  %v1063_v49 = vadd.f32 %v1062_v39, %v2566_v24  ;;  %1341 = vst [vmem:[#allocation9 + $0xd0] sm:$0xff] %v1061_v43  ;;  %v1469_v53 = vsub.f32 %v1405_v35, %v1061_v43  ;;  %v1421_v28 = vld [vmem:[#allocation2 + $0x150] sm:$0xff] }
 0x239   :  { %v2590_v26 = vadd.f32 %v1581_v41, %v1518_v30  ;;  %v1589_v52 = vadd.f32 %v1524_v42, %v1523_v31  ;;  %1340 = vst [vmem:[#allocation9 + $0xc8] sm:$0xff] %v950_v44  ;;  %v1468_v54 = vsub.f32 %v1404_v38, %v950_v44  ;;  %v953_v55 = vpop.f32.mrb[40].mxu0  ;;  %v1066_v57 = vpop.f32.mrb[40].mxu1  ;;  %v1526_v10 = vmul.f32 %v1462_v32, %v1462_v32  ;;  %v1420_v30 = vld [vmem:[#allocation2 + $0x148] sm:$0xff] }
 0x23a   :  { %v1531_v61 = vmul.f32 %v1467_v2, %v1467_v2  ;;  %1342 = vst [vmem:[#allocation9 + $0xd8] sm:$0xff] %v1063_v49  ;;  %v1470_v62 = vsub.f32 %v1406_v47, %v1063_v49  ;;  %v954_v63 = vadd.f32 %v953_v55, %v2557_v37  ;;  %v1067_v1 = vadd.f32 %v1066_v57, %v2560_v21  ;;  %v955_v3 = vpop.f32.mrb[41].mxu0  ;;  %v1068_v6 = vpop.f32.mrb[41].mxu1  ;;  %v1427_v49 = vld [vmem:[#allocation2 + $0x180] sm:$0xff] }
 0x23b   :  { %v1590_v7 = vadd.f32 %v1589_v52, %v1525_v48  ;;  %v1532_v8 = vmul.f32 %v1468_v54, %v1468_v54  ;;  %v956_v34 = vadd.f32 %v955_v3, %v2563_v23  ;;  %v1069_v12 = vadd.f32 %v1068_v6, %v2566_v24 }
 0x23c   :  { %1347 = vst [vmem:[#allocation9 + $0x100] sm:$0xff] %v954_v63  ;;  %v1475_v50 = vsub.f32 %v1411_v56, %v954_v63  ;;  %1349 = vst [vmem:[#allocation9 + $0x110] sm:$0xff] %v1067_v1  ;;  %v1477_v11 = vsub.f32 %v1413_v59, %v1067_v1  ;;  %v2599_v13 = vrot.slane %v2552_v4, %v841_v40  ;;  %v1428_v59 = vld [vmem:[#allocation2 + $0x188] sm:$0xff] }
 0x23d   :  { %v2601_v14 = vadd.f32 %v1590_v7, %v1526_v10  ;;  %v1533_v15 = vmul.f32 %v1469_v53, %v1469_v53  ;;  %v1598_v16 = vadd.f32 %v1532_v8, %v1531_v61  ;;  %1348 = vst [vmem:[#allocation9 + $0x108] sm:$0xff] %v956_v34  ;;  %v1476_v17 = vsub.f32 %v1412_v5, %v956_v34  ;;  %v959_v45 = vpop.f32.mrb[42].mxu0  ;;  %v1072_v46 = vpop.f32.mrb[42].mxu1  ;;  %v1429_v53 = vld [vmem:[#allocation2 + $0x190] sm:$0xff]  ;;  %v1430_v5 = vld [vmem:[#allocation2 + $0x198] sm:$0xff] }
 0x23e   :  { %v1534_v58 = vmul.f32 %v1470_v62, %v1470_v62  ;;  %v1539_v25 = vmul.f32 %v1475_v50, %v1475_v50  ;;  %1350 = vst [vmem:[#allocation9 + $0x118] sm:$0xff] %v1069_v12  ;;  %v1478_v27 = vsub.f32 %v1414_v9, %v1069_v12  ;;  %v960_v18 = vadd.f32 %v959_v45, %v2557_v37  ;;  %v961_v29 = vpop.f32.mrb[43].mxu0  ;;  %v1074_v40 = vpop.f32.mrb[43].mxu1 }
 0x23f   :  { %v1599_v31 = vadd.f32 %v1598_v16, %v1533_v15  ;;  %v1540_v32 = vmul.f32 %v1476_v17, %v1476_v17  ;;  %v1073_v33 = vadd.f32 %v1072_v46, %v2560_v21  ;;  %v962_v35 = vadd.f32 %v961_v29, %v2563_v23  ;;  %v1435_v15 = vld [vmem:[#allocation2 + $0x1c0] sm:$0xff] }
 0x240   :  { %v1541_v38 = vmul.f32 %v1477_v11, %v1477_v11  ;;  %1355 = vst [vmem:[#allocation9 + $0x140] sm:$0xff] %v960_v18  ;;  %v1483_v39 = vsub.f32 %v1419_v22, %v960_v18  ;;  %v1075_v41 = vadd.f32 %v1074_v40, %v2566_v24  ;;  %v2610_v42 = vrot.slane %v2552_v4, %v849_v60 }
 0x241   :  { %v2612_v43 = vadd.f32 %v1599_v31, %v1534_v58  ;;  %v1607_v44 = vadd.f32 %v1540_v32, %v1539_v25  ;;  %1357 = vst [vmem:[#allocation9 + $0x150] sm:$0xff] %v1073_v33  ;;  %v1485_v47 = vsub.f32 %v1421_v28, %v1073_v33  ;;  %1356 = vst [vmem:[#allocation9 + $0x148] sm:$0xff] %v962_v35  ;;  %v965_v2 = vpop.f32.mrb[44].mxu0  ;;  %v1078_v52 = vpop.f32.mrb[44].mxu1  ;;  %v1437_v58 = vld [vmem:[#allocation2 + $0x1d0] sm:$0xff]  ;;  %v1438_v33 = vld [vmem:[#allocation2 + $0x1d8] sm:$0xff] }
 0x242   :  { %v1484_v48 = vsub.f32 %v1420_v30, %v962_v35  ;;  %v1547_v54 = vmul.f32 %v1483_v39, %v1483_v39  ;;  %1358 = vst [vmem:[#allocation9 + $0x158] sm:$0xff] %v1075_v41  ;;  %v1486_v55 = vsub.f32 %v1422_v36, %v1075_v41  ;;  %v966_v56 = vadd.f32 %v965_v2, %v2557_v37  ;;  %v967_v60 = vpop.f32.mrb[45].mxu0  ;;  %v1080_v61 = vpop.f32.mrb[45].mxu1 }
 0x243   :  { %v1079_v57 = vadd.f32 %v1078_v52, %v2560_v21  ;;  %v1542_v62 = vmul.f32 %v1478_v27, %v1478_v27  ;;  %v1608_v63 = vadd.f32 %v1607_v44, %v1541_v38  ;;  %v968_v3 = vadd.f32 %v967_v60, %v2563_v23  ;;  %v1436_v27 = vld [vmem:[#allocation2 + $0x1c8] sm:$0xff] }
 0x244   :  { %v1548_v1 = vmul.f32 %v1484_v48, %v1484_v48  ;;  %1363 = vst [vmem:[#allocation9 + $0x180] sm:$0xff] %v966_v56  ;;  %v1491_v6 = vsub.f32 %v1427_v49, %v966_v56  ;;  %v1081_v7 = vadd.f32 %v1080_v61, %v2566_v24  ;;  %v2621_v8 = vrot.slane %v2552_v4, %v845_v19 }
 0x245   :  { %1365 = vst [vmem:[#allocation9 + $0x190] sm:$0xff] %v1079_v57  ;;  %v1493_v10 = vsub.f32 %v1429_v53, %v1079_v57  ;;  %v2623_v34 = vadd.f32 %v1608_v63, %v1542_v62  ;;  %v1549_v9 = vmul.f32 %v1485_v47, %v1485_v47  ;;  %1364 = vst [vmem:[#allocation9 + $0x188] sm:$0xff] %v968_v3  ;;  %v971_v12 = vpop.f32.mrb[46].mxu0  ;;  %v1084_v16 = vpop.f32.mrb[46].mxu1  ;;  %v1391_v63 = vld [vmem:[#allocation2 + $0x60] sm:$0xff] }
 0x246   :  { %v1616_v50 = vadd.f32 %v1548_v1, %v1547_v54  ;;  %v1492_v11 = vsub.f32 %v1428_v59, %v968_v3  ;;  %v1550_v17 = vmul.f32 %v1486_v55, %v1486_v55  ;;  %v1555_v45 = vmul.f32 %v1491_v6, %v1491_v6  ;;  %1366 = vst [vmem:[#allocation9 + $0x198] sm:$0xff] %v1081_v7  ;;  %v973_v25 = vpop.f32.mrb[47].mxu0  ;;  %v1086_v19 = vpop.f32.mrb[47].mxu1  ;;  %v1385_v59 = vld [vmem:[#allocation2 + $0x30] sm:$0xff] }
 0x247   :  { %v1494_v22 = vsub.f32 %v1430_v5, %v1081_v7  ;;  %v972_v46 = vadd.f32 %v971_v12, %v2557_v37  ;;  %v1085_v29 = vadd.f32 %v1084_v16, %v2560_v21  ;;  %v974_v30 = vadd.f32 %v973_v25, %v2563_v23  ;;  %v1383_v23 = vld [vmem:[#allocation2 + $0x20] sm:$0xff] }
 0x248   :  { %v1617_v18 = vadd.f32 %v1616_v50, %v1549_v9  ;;  %v1556_v28 = vmul.f32 %v1492_v11, %v1492_v11  ;;  %v1557_v40 = vmul.f32 %v1493_v10, %v1493_v10  ;;  %v1087_v32 = vadd.f32 %v1086_v19, %v2566_v24  ;;  %v1393_v10 = vld [vmem:[#allocation2 + $0x70] sm:$0xff]  ;;  %v1392_v9 = vld [vmem:[#allocation2 + $0x68] sm:$0xff] }
 0x249   :  { %1371 = vst [vmem:[#allocation9 + $0x1c0] sm:$0xff] %v972_v46  ;;  %v1499_v31 = vsub.f32 %v1435_v15, %v972_v46  ;;  %v2632_v37 = vrot.slane %v2552_v4, %v853_v51  ;;  %1373 = vst [vmem:[#allocation9 + $0x1d0] sm:$0xff] %v1085_v29  ;;  %v1501_v38 = vsub.f32 %v1437_v58, %v1085_v29  ;;  %v1155_v39 = vpop.f32.mrb[48].mxu0  ;;  %v1268_v41 = vpop.f32.mrb[48].mxu1  ;;  %v1384_v4 = vld [vmem:[#allocation2 + $0x28] sm:$0xff]  ;;  %v1399_v29 = vld [vmem:[#allocation2 + $0xa0] sm:$0xff] }
 0x24a   :  { %v2634_v35 = vadd.f32 %v1617_v18, %v1550_v17  ;;  %v1625_v36 = vadd.f32 %v1556_v28, %v1555_v45  ;;  %1372 = vst [vmem:[#allocation9 + $0x1c8] sm:$0xff] %v974_v30  ;;  %v1500_v21 = vsub.f32 %v1436_v27, %v974_v30  ;;  %v1558_v44 = vmul.f32 %v1494_v22, %v1494_v22  ;;  %v1157_v48 = vpop.f32.mrb[49].mxu0  ;;  %v1270_v51 = vpop.f32.mrb[49].mxu1  ;;  %v1386_v17 = vld [vmem:[#allocation2 + $0x38] sm:$0xff] }
 0x24b   :  { %v1563_v47 = vmul.f32 %v1499_v31, %v1499_v31  ;;  %1374 = vst [vmem:[#allocation9 + $0x1d8] sm:$0xff] %v1087_v32  ;;  %v1156_v24 = vadd.f32 %v1155_v39, %v2599_v13  ;;  %v1269_v0 = vadd.f32 %v1268_v41, %v2610_v42  ;;  %v1502_v52 = vsub.f32 %v1438_v33, %v1087_v32  ;;  %v1394_v18 = vld [vmem:[#allocation2 + $0x78] sm:$0xff]  ;;  %v1401_v32 = vld [vmem:[#allocation2 + $0xb0] sm:$0xff] }
 0x24c   :  { %v1626_v2 = vadd.f32 %v1625_v36, %v1557_v40  ;;  %v1564_v49 = vmul.f32 %v1500_v21, %v1500_v21  ;;  %v1158_v53 = vadd.f32 %v1157_v48, %v2621_v8  ;;  %v1271_v55 = vadd.f32 %v1270_v51, %v2632_v37  ;;  %v1400_v36 = vld [vmem:[#allocation2 + $0xa8] sm:$0xff]  ;;  %v1402_v48 = vld [vmem:[#allocation2 + $0xb8] sm:$0xff] }
 0x24d   :  { %1319 = vst [vmem:[#allocation9 + $0x20] sm:$0xff] %v1156_v24  ;;  %v1447_v54 = vsub.f32 %v1383_v23, %v1156_v24  ;;  %1321 = vst [vmem:[#allocation9 + $0x30] sm:$0xff] %v1269_v0  ;;  %v1565_v57 = vmul.f32 %v1501_v38, %v1501_v38  ;;  %v1161_v62 = vpop.f32.mrb[50].mxu0  ;;  %v1274_v1 = vpop.f32.mrb[50].mxu1  ;;  %v1566_v11 = vmul.f32 %v1502_v52, %v1502_v52  ;;  %v1407_v52 = vld [vmem:[#allocation2 + $0xe0] sm:$0xff] }
 0x24e   :  { %v2640_v56 = vadd.f32 %v1626_v2, %v1558_v44  ;;  %v1634_v60 = vadd.f32 %v1564_v49, %v1563_v47  ;;  %1320 = vst [vmem:[#allocation9 + $0x28] sm:$0xff] %v1158_v53  ;;  %v1448_v61 = vsub.f32 %v1384_v4, %v1158_v53  ;;  %1322 = vst [vmem:[#allocation9 + $0x38] sm:$0xff] %v1271_v55  ;;  %v1163_v7 = vpop.f32.mrb[51].mxu0  ;;  %v1276_v50 = vpop.f32.mrb[51].mxu1 }
 0x24f   :  { %v1511_v3 = vmul.f32 %v1447_v54, %v1447_v54  ;;  %v1162_v5 = vadd.f32 %v1161_v62, %v2599_v13  ;;  %v1275_v6 = vadd.f32 %v1274_v1, %v2610_v42  ;;  %v1164_v15 = vadd.f32 %v1163_v7, %v2621_v8 }
 0x250   :  { %v1635_v12 = vadd.f32 %v1634_v60, %v1565_v57  ;;  %v1277_v16 = vadd.f32 %v1276_v50, %v2632_v37  ;;  %v1449_v22 = vsub.f32 %v1385_v59, %v1269_v0  ;;  %v1512_v25 = vmul.f32 %v1448_v61, %v1448_v61  ;;  %v1409_v59 = vld [vmem:[#allocation2 + $0xf0] sm:$0xff]  ;;  %v1408_v61 = vld [vmem:[#allocation2 + $0xe8] sm:$0xff] }
 0x251   :  { %v1574_v45 = vadd.f32 %v2583_v20, %v1511_v3  ;;  %1327 = vst [vmem:[#allocation9 + $0x60] sm:$0xff] %v1162_v5  ;;  %v1455_v46 = vsub.f32 %v1391_v63, %v1162_v5  ;;  %1329 = vst [vmem:[#allocation9 + $0x70] sm:$0xff] %v1275_v6  ;;  %v1457_v27 = vsub.f32 %v1393_v10, %v1275_v6  ;;  %v1167_v28 = vpop.f32.mrb[52].mxu0  ;;  %v1280_v30 = vpop.f32.mrb[52].mxu1 }
 0x252   :  { %v2647_v58 = vadd.f32 %v1635_v12, %v1566_v11  ;;  %1328 = vst [vmem:[#allocation9 + $0x68] sm:$0xff] %v1164_v15  ;;  %v1456_v19 = vsub.f32 %v1392_v9, %v1164_v15  ;;  %1330 = vst [vmem:[#allocation9 + $0x78] sm:$0xff] %v1277_v16  ;;  %v1168_v31 = vadd.f32 %v1167_v28, %v2599_v13  ;;  %v1169_v33 = vpop.f32.mrb[53].mxu0  ;;  %v1282_v38 = vpop.f32.mrb[53].mxu1  ;;  %v1410_v9 = vld [vmem:[#allocation2 + $0xf8] sm:$0xff] }
 0x253   :  { %v1519_v40 = vmul.f32 %v1455_v46, %v1455_v46  ;;  %v1281_v20 = vadd.f32 %v1280_v30, %v2610_v42  ;;  %v1450_v21 = vsub.f32 %v1386_v17, %v1271_v55  ;;  %v1170_v23 = vadd.f32 %v1169_v33, %v2621_v8  ;;  %v1418_v33 = vld [vmem:[#allocation2 + $0x138] sm:$0xff] }
 0x254   :  { %v1520_v39 = vmul.f32 %v1456_v19, %v1456_v19  ;;  %v1283_v41 = vadd.f32 %v1282_v38, %v2632_v37  ;;  %v1513_v44 = vmul.f32 %v1449_v22, %v1449_v22  ;;  %v1458_v24 = vsub.f32 %v1394_v18, %v1277_v16  ;;  %1335 = vst [vmem:[#allocation9 + $0xa0] sm:$0xff] %v1168_v31  ;;  %v1415_v22 = vld [vmem:[#allocation2 + $0x120] sm:$0xff]  ;;  %v1417_v18 = vld [vmem:[#allocation2 + $0x130] sm:$0xff] }
 0x255   :  { %v1583_v47 = vadd.f32 %v2590_v26, %v1519_v40  ;;  %v1463_v0 = vsub.f32 %v1399_v29, %v1168_v31  ;;  %1337 = vst [vmem:[#allocation9 + $0xb0] sm:$0xff] %v1281_v20  ;;  %v1521_v4 = vmul.f32 %v1457_v27, %v1457_v27  ;;  %v1465_v51 = vsub.f32 %v1401_v32, %v1281_v20  ;;  %v1173_v49 = vpop.f32.mrb[54].mxu0  ;;  %v1286_v53 = vpop.f32.mrb[54].mxu1  ;;  %v1416_v29 = vld [vmem:[#allocation2 + $0x128] sm:$0xff] }
 0x256   :  { %1336 = vst [vmem:[#allocation9 + $0xa8] sm:$0xff] %v1170_v23  ;;  %v1464_v2 = vsub.f32 %v1400_v36, %v1170_v23  ;;  %1338 = vst [vmem:[#allocation9 + $0xb8] sm:$0xff] %v1283_v41  ;;  %v1575_v54 = vadd.f32 %v1574_v45, %v1512_v25  ;;  %v1174_v60 = vadd.f32 %v1173_v49, %v2599_v13  ;;  %v1175_v26 = vpop.f32.mrb[55].mxu0  ;;  %v1288_v62 = vpop.f32.mrb[55].mxu1 }
 0x257   :  { %v1584_v55 = vadd.f32 %v1583_v47, %v1520_v39  ;;  %v1527_v57 = vmul.f32 %v1463_v0, %v1463_v0  ;;  %v1514_v63 = vmul.f32 %v1450_v21, %v1450_v21  ;;  %v1287_v1 = vadd.f32 %v1286_v53, %v2610_v42 }
 0x258   :  { %v1176_v3 = vadd.f32 %v1175_v26, %v2621_v8  ;;  %v1289_v5 = vadd.f32 %v1288_v62, %v2632_v37  ;;  %v1466_v6 = vsub.f32 %v1402_v48, %v1283_v41  ;;  %1343 = vst [vmem:[#allocation9 + $0xe0] sm:$0xff] %v1174_v60  ;;  %v1471_v7 = vsub.f32 %v1407_v52, %v1174_v60  ;;  %v1424_v52 = vld [vmem:[#allocation2 + $0x168] sm:$0xff]  ;;  %v1425_v60 = vld [vmem:[#allocation2 + $0x170] sm:$0xff] }
 0x259   :  { %v1592_v10 = vadd.f32 %v2601_v14, %v1527_v57  ;;  %v1576_v50 = vadd.f32 %v1575_v54, %v1513_v44  ;;  %v1585_v11 = vadd.f32 %v1584_v55, %v1521_v4  ;;  %v1522_v12 = vmul.f32 %v1458_v24, %v1458_v24  ;;  %1345 = vst [vmem:[#allocation9 + $0xf0] sm:$0xff] %v1287_v1  ;;  %v1179_v45 = vpop.f32.mrb[56].mxu0  ;;  %v1292_v46 = vpop.f32.mrb[56].mxu1 }
 0x25a   :  { %v1528_v15 = vmul.f32 %v1464_v2, %v1464_v2  ;;  %v1473_v16 = vsub.f32 %v1409_v59, %v1287_v1  ;;  %1344 = vst [vmem:[#allocation9 + $0xe8] sm:$0xff] %v1176_v3  ;;  %v1472_v17 = vsub.f32 %v1408_v61, %v1176_v3  ;;  %1346 = vst [vmem:[#allocation9 + $0xf8] sm:$0xff] %v1289_v5  ;;  %v1181_v28 = vpop.f32.mrb[57].mxu0  ;;  %v1294_v30 = vpop.f32.mrb[57].mxu1 }
 0x25b   :  { %v1535_v25 = vmul.f32 %v1471_v7, %v1471_v7  ;;  %v1577_v27 = vadd.f32 %v1576_v50, %v1514_v63  ;;  %v1180_v19 = vadd.f32 %v1179_v45, %v2599_v13  ;;  %v1293_v14 = vadd.f32 %v1292_v46, %v2610_v42  ;;  %v1431_v7 = vld [vmem:[#allocation2 + $0x1a0] sm:$0xff] }
 0x25c   :  { %v1529_v40 = vmul.f32 %v1465_v51, %v1465_v51  ;;  %v1536_v31 = vmul.f32 %v1472_v17, %v1472_v17  ;;  %v1474_v20 = vsub.f32 %v1410_v9, %v1289_v5  ;;  %v1182_v32 = vadd.f32 %v1181_v28, %v2621_v8 }
 0x25d   :  { %v1601_v36 = vadd.f32 %v2612_v43, %v1535_v25  ;;  %1578 = vadd.xlane.f32.xlu0 %v1577_v27  ;;  %1351 = vst [vmem:[#allocation9 + $0x120] sm:$0xff] %v1180_v19  ;;  %v1479_v38 = vsub.f32 %v1415_v22, %v1180_v19  ;;  %1353 = vst [vmem:[#allocation9 + $0x130] sm:$0xff] %v1293_v14  ;;  %v1295_v21 = vadd.f32 %v1294_v30, %v2632_v37  ;;  %v1185_v47 = vpop.f32.mrb[58].mxu0  ;;  %v1298_v24 = vpop.f32.mrb[58].mxu1  ;;  %v1423_v43 = vld [vmem:[#allocation2 + $0x160] sm:$0xff]  ;;  %v1432_v19 = vld [vmem:[#allocation2 + $0x1a8] sm:$0xff] }
 0x25e   :  { %v1530_v39 = vmul.f32 %v1466_v6, %v1466_v6  ;;  %v1481_v23 = vsub.f32 %v1417_v18, %v1293_v14  ;;  %1352 = vst [vmem:[#allocation9 + $0x128] sm:$0xff] %v1182_v32  ;;  %v1480_v41 = vsub.f32 %v1416_v29, %v1182_v32  ;;  %v1586_v44 = vadd.f32 %v1585_v11, %v1522_v12  ;;  %v1187_v49 = vpop.f32.mrb[59].mxu0  ;;  %v1300_v53 = vpop.f32.mrb[59].mxu1  ;;  %v1426_v6 = vld [vmem:[#allocation2 + $0x178] sm:$0xff] }
 0x25f   :  { %v1593_v0 = vadd.f32 %v1592_v10, %v1528_v15  ;;  %v1537_v48 = vmul.f32 %v1473_v16, %v1473_v16  ;;  %v1602_v4 = vadd.f32 %v1601_v36, %v1536_v31  ;;  %v1543_v51 = vmul.f32 %v1479_v38, %v1479_v38  ;;  %1354 = vst [vmem:[#allocation9 + $0x138] sm:$0xff] %v1295_v21  ;;  %v1433_v16 = vld [vmem:[#allocation2 + $0x1b0] sm:$0xff]  ;;  %v1434_v30 = vld [vmem:[#allocation2 + $0x1b8] sm:$0xff] }
 0x260   :  { %v1482_v2 = vsub.f32 %v1418_v33, %v1295_v21  ;;  %v1544_v54 = vmul.f32 %v1480_v41, %v1480_v41  ;;  %v1186_v55 = vadd.f32 %v1185_v47, %v2599_v13  ;;  %v1299_v57 = vadd.f32 %v1298_v24, %v2610_v42  ;;  %v1439_v33 = vld [vmem:[#allocation2 + $0x1e0] sm:$0xff]  ;;  %v1440_v47 = vld [vmem:[#allocation2 + $0x1e8] sm:$0xff] }
 0x261   :  { %v1188_v59 = vadd.f32 %v1187_v49, %v2621_v8  ;;  %v1538_v26 = vmul.f32 %v1474_v20, %v1474_v20  ;;  %v1610_v61 = vadd.f32 %v2623_v34, %v1543_v51  ;;  %1587 = vadd.xlane.f32.xlu0 %v1586_v44  ;;  %v1301_v62 = vadd.f32 %v1300_v53, %v2632_v37  ;;  %v1191_v10 = vpop.f32.mrb[60].mxu0  ;;  %v1304_v9 = vpop.f32.mrb[60].mxu1 }
 0x262   :  { %v1594_v63 = vadd.f32 %v1593_v0, %v1529_v40  ;;  %v1545_v1 = vmul.f32 %v1481_v23, %v1481_v23  ;;  %1359 = vst [vmem:[#allocation9 + $0x160] sm:$0xff] %v1186_v55  ;;  %v1487_v3 = vsub.f32 %v1423_v43, %v1186_v55  ;;  %1361 = vst [vmem:[#allocation9 + $0x170] sm:$0xff] %v1299_v57  ;;  %v1193_v17 = vpop.f32.mrb[61].mxu0  ;;  %v1306_v45 = vpop.f32.mrb[61].mxu1  ;;  %v1442_v55 = vld [vmem:[#allocation2 + $0x1f8] sm:$0xff] }
 0x263   :  { %1360 = vst [vmem:[#allocation9 + $0x168] sm:$0xff] %v1188_v59  ;;  %v1488_v5 = vsub.f32 %v1424_v52, %v1188_v59  ;;  %v1603_v50 = vadd.f32 %v1602_v4, %v1537_v48  ;;  %v1611_v11 = vadd.f32 %v1610_v61, %v1544_v54  ;;  %v1489_v12 = vsub.f32 %v1425_v60, %v1299_v57  ;;  %v1441_v4 = vld [vmem:[#allocation2 + $0x1f0] sm:$0xff] }
 0x264   :  { %1362 = vst [vmem:[#allocation9 + $0x178] sm:$0xff] %v1301_v62  ;;  %v1595_v15 = vadd.f32 %v1594_v63, %v1530_v39  ;;  %v1192_v34 = vadd.f32 %v1191_v10, %v2599_v13  ;;  %v1546_v22 = vmul.f32 %v1482_v2, %v1482_v2  ;;  %v1551_v46 = vmul.f32 %v1487_v3, %v1487_v3 }
 0x265   :  { %v1552_v25 = vmul.f32 %v1488_v5, %v1488_v5  ;;  %v1305_v27 = vadd.f32 %v1304_v9, %v2610_v42  ;;  %v1490_v14 = vsub.f32 %v1426_v6, %v1301_v62  ;;  %v1194_v28 = vadd.f32 %v1193_v17, %v2621_v8  ;;  %v1197_v32 = vpop.f32.mrb[62].mxu0  ;;  %v1310_v36 = vpop.f32.mrb[62].mxu1 }
 0x266   :  { %1596 = vadd.xlane.f32.xlu1 %v1595_v15  ;;  %1367 = vst [vmem:[#allocation9 + $0x1a0] sm:$0xff] %v1192_v34  ;;  %v1495_v18 = vsub.f32 %v1431_v7, %v1192_v34  ;;  %v1307_v29 = vadd.f32 %v1306_v45, %v2632_v37  ;;  %v1619_v40 = vadd.f32 %v2634_v35, %v1551_v46  ;;  %v1199_v44 = vpop.f32.mrb[63].mxu0  ;;  %v1312_v24 = vpop.f32.mrb[63].mxu1 }
 0x267   :  { %1369 = vst [vmem:[#allocation9 + $0x1b0] sm:$0xff] %v1305_v27  ;;  %v1497_v31 = vsub.f32 %v1433_v16, %v1305_v27  ;;  %v1604_v20 = vadd.f32 %v1603_v50, %v1538_v26  ;;  %v1612_v38 = vadd.f32 %v1611_v11, %v1545_v1  ;;  %v1553_v21 = vmul.f32 %v1489_v12, %v1489_v12 }
 0x268   :  { %v1559_v39 = vmul.f32 %v1495_v18, %v1495_v18  ;;  %1368 = vst [vmem:[#allocation9 + $0x1a8] sm:$0xff] %v1194_v28  ;;  %v1496_v23 = vsub.f32 %v1432_v19, %v1194_v28  ;;  %1370 = vst [vmem:[#allocation9 + $0x1b8] sm:$0xff] %v1307_v29  ;;  %v1198_v41 = vadd.f32 %v1197_v32, %v2599_v13 }
 0x269   :  { %v1620_v0 = vadd.f32 %v1619_v40, %v1552_v25  ;;  %v1498_v48 = vsub.f32 %v1434_v30, %v1307_v29  ;;  %v1311_v35 = vadd.f32 %v1310_v36, %v2610_v42  ;;  %v1200_v51 = vadd.f32 %v1199_v44, %v2621_v8 }
 0x26a   :  { %v1554_v2 = vmul.f32 %v1490_v14, %v1490_v14  ;;  %v1628_v43 = vadd.f32 %v2640_v56, %v1559_v39  ;;  %v1560_v49 = vmul.f32 %v1496_v23, %v1496_v23  ;;  %1605 = vadd.xlane.f32.xlu1 %v1604_v20  ;;  %1375 = vst [vmem:[#allocation9 + $0x1e0] sm:$0xff] %v1198_v41 }
 0x26b   :  { %v1503_v52 = vsub.f32 %v1439_v33, %v1198_v41  ;;  %v1561_v53 = vmul.f32 %v1497_v31, %v1497_v31  ;;  %1377 = vst [vmem:[#allocation9 + $0x1f0] sm:$0xff] %v1311_v35  ;;  %1376 = vst [vmem:[#allocation9 + $0x1e8] sm:$0xff] %v1200_v51  ;;  %v1504_v13 = vsub.f32 %v1440_v47, %v1200_v51 }
 0x26c   :  { %v1313_v54 = vadd.f32 %v1312_v24, %v2632_v37  ;;  %v1613_v57 = vadd.f32 %v1612_v38, %v1546_v22  ;;  %v1629_v60 = vadd.f32 %v1628_v43, %v1560_v49  ;;  %v1505_v59 = vsub.f32 %v1441_v4, %v1311_v35 }
 0x26d   :  { %v1567_v42 = vmul.f32 %v1503_v52, %v1503_v52  ;;  %v1621_v26 = vadd.f32 %v1620_v0, %v1553_v21  ;;  %v1562_v8 = vmul.f32 %v1498_v48, %v1498_v48  ;;  %v1568_v61 = vmul.f32 %v1504_v13, %v1504_v13 }
 0x26e   :  { %1378 = vst [vmem:[#allocation9 + $0x1f8] sm:$0xff] %v1313_v54  ;;  %1614 = vadd.xlane.f32.xlu0 %v1613_v57  ;;  %v1506_v62 = vsub.f32 %v1442_v55, %v1313_v54  ;;  %v1630_v1 = vadd.f32 %v1629_v60, %v1561_v53  ;;  %v1569_v3 = vmul.f32 %v1505_v59, %v1505_v59 }
 0x26f   :  { %v1637_v56 = vadd.f32 %v2647_v58, %v1567_v42  ;;  %v1622_v63 = vadd.f32 %v1621_v26, %v1554_v2 }
 0x270   :  { %v1631_v6 = vadd.f32 %v1630_v1, %v1562_v8  ;;  %v1570_v37 = vmul.f32 %v1506_v62, %v1506_v62 }
 0x271   :  { %v1638_v5 = vadd.f32 %v1637_v56, %v1568_v61  ;;  %1623 = vadd.xlane.f32.xlu1 %v1622_v63 }
 0x272   :  { %1632 = vadd.xlane.f32.xlu0 %v1631_v6 }
 0x273   :  { %v1639_v10 = vadd.f32 %v1638_v5, %v1569_v3 }
 0x275   :  { %v1640_v7 = vadd.f32 %v1639_v10, %v1570_v37 }
 0x277   :  { %1641 = vadd.xlane.f32.xlu1 %v1640_v7 }
 0x278   :  { %2285 = shalt.err (!%p2282_p0)
}
 0x279   :  { %s2286_s27 = scalar_lea.hbm %s2738_s6, 8192 }
 0x27a   :  { %p2287_p1 = scmp.ne.s32.totalorder %s2738_s6, %s2286_s27  ;;  %p2290_p2 = scmp.lt.u32.totalorder %s2286_s27, %s2738_s6 }
 0x27c   :  { %p2292_p3 = pnand %p2290_p2, %p2287_p1 }
 0x27e   :  { %2295 = shalt.err (!%p2292_p3)
}
 0x27f   :  { %1690 = dma.vmem_to_hbm [thread:$0]  %s1685_s20, 8192, %s2738_s6, [#allocation10], %s2352_s1, %s2352_s1, %s2353_s25  }
 0x280   :  { %s2296_s13 = scalar_lea.vmem %s2680_s22, 1024  ;;  %p2301_p5 = scmp.lt.s32.totalorder %s2680_s22, %s2680_s22 }
 0x281   :  { %p2297_p4 = scmp.ne.s32.totalorder %s2680_s22, %s2296_s13  ;;  %p2302_p6 = scmp.lt.s32.totalorder %s2296_s13, %s2296_s13 }
 0x283   :  { %p2303_p7 = por %p2302_p6, %p2301_p5 }
 0x285   :  { %p2304_p8 = pnand %p2303_p7, %p2297_p4 }
 0x287   :  { %2307 = shalt.err (!%p2304_p8)
}
 0x288   :  { %s2308_s17 = scalar_lea.hbm %s2737_s5, 1024 }
 0x289   :  { %p2309_p9 = scmp.ne.s32.totalorder %s2737_s5, %s2308_s17  ;;  %p2312_p10 = scmp.lt.u32.totalorder %s2308_s17, %s2737_s5 }
 0x28b   :  { %p2314_p11 = pnand %p2312_p10, %p2309_p9 }
 0x28d   :  { %2317 = shalt.err (!%p2314_p11)
}
 0x28e   :  { %1678 = dma.vmem_to_hbm [thread:$0]  %s2680_s22, 1024, %s2737_s5, [#allocation4], %s2349_s11, %s2349_s11, %s2350_s12  }
 0x28f   :  { %s2358_s5 = smov [#allocation11]  }
 0x290   :  { %s1696_s25 = sshll.u32 %s2358_s5, 4  ;;  %s1697_s25 = int_to_ptr.vmem [resolvable:$true] %s1696_s25 }
 0x291   :  { %s2318_s2 = scalar_lea.vmem %s1697_s25, 1024  ;;  %p2323_p13 = scmp.lt.s32.totalorder %s1697_s25, %s1697_s25 }
 0x292   :  { %p2319_p12 = scmp.ne.s32.totalorder %s1697_s25, %s2318_s2  ;;  %p2324_p0 = scmp.lt.s32.totalorder %s2318_s2, %s2318_s2 }
 0x294   :  { %p2325_p1 = por %p2324_p0, %p2323_p13 }
 0x296   :  { %p2326_p2 = pnand %p2325_p1, %p2319_p12 }
 0x2ea   :  { %v1579_v58 = vpop.xlane.xlu0 %1578 }
 0x2eb   :  { %v1643_v9 = vmul.f32 -0.5, %v1579_v58 }
 0x2ed   :  { %v1651_v50 = vadd.f32 -940.99304, %v1643_v9 }
 0x2ee   :  { %v1588_v11 = vpop.xlane.xlu0 %1587 }
 0x2ef   :  { %1659 = vst [vmem:[#allocation11] sm:$0xff] %v1651_v50  ;;  %v1644_v12 = vmul.f32 -0.5, %v1588_v11 }
 0x2f1   :  { %v1652_v15 = vadd.f32 -940.99304, %v1644_v12 }
 0x2f3   :  { %v1597_v34 = vpop.xlane.xlu1 %1596  ;;  %1660 = vst [vmem:[#allocation11 + $0x8] sm:$0xff] %v1652_v15 }
 0x2f4   :  { %v1645_v16 = vmul.f32 -0.5, %v1597_v34 }
 0x2f6   :  { %v1653_v17 = vadd.f32 -940.99304, %v1645_v16 }
 0x2f7   :  { %v1606_v45 = vpop.xlane.xlu1 %1605 }
 0x2f8   :  { %1661 = vst [vmem:[#allocation11 + $0x10] sm:$0xff] %v1653_v17  ;;  %v1646_v22 = vmul.f32 -0.5, %v1606_v45 }
 0x2fa   :  { %v1654_v46 = vadd.f32 -940.99304, %v1646_v22 }
 0x2fb   :  { %v1615_v25 = vpop.xlane.xlu0 %1614 }
 0x2fc   :  { %v1647_v27 = vmul.f32 -0.5, %v1615_v25  ;;  %1662 = vst [vmem:[#allocation11 + $0x18] sm:$0xff] %v1654_v46 }
 0x2fe   :  { %v1655_v19 = vadd.f32 -940.99304, %v1647_v27  ;;  %v1624_v14 = vpop.xlane.xlu1 %1623 }
 0x2ff   :  { %v1648_v18 = vmul.f32 -0.5, %v1624_v14  ;;  %v1633_v28 = vpop.xlane.xlu0 %1632 }
 0x300   :  { %1663 = vst [vmem:[#allocation11 + $0x20] sm:$0xff] %v1655_v19  ;;  %v1649_v30 = vmul.f32 -0.5, %v1633_v28 }
 0x301   :  { %v1656_v29 = vadd.f32 -940.99304, %v1648_v18 }
 0x302   :  { %v1657_v40 = vadd.f32 -940.99304, %v1649_v30 }
 0x303   :  { %1664 = vst [vmem:[#allocation11 + $0x28] sm:$0xff] %v1656_v29 }
 0x304   :  { %v1642_v31 = vpop.xlane.xlu1 %1641  ;;  %1665 = vst [vmem:[#allocation11 + $0x30] sm:$0xff] %v1657_v40 }
 0x305   :  { %v1650_v20 = vmul.f32 -0.5, %v1642_v31 }
 0x307   :  { %v1658_v32 = vadd.f32 -940.99304, %v1650_v20 }
 0x309   :  { %1666 = vst [vmem:[#allocation11 + $0x38] sm:$0xff] %v1658_v32 }
 0x30a   :  { %2329 = shalt.err (!%p2326_p2)
}
 0x30b   :  { %s2330_s20 = scalar_lea.hbm %s2739_s7, 1024 }
 0x30c   :  { %p2331_p3 = scmp.ne.s32.totalorder %s2739_s7, %s2330_s20  ;;  %p2334_p4 = scmp.lt.u32.totalorder %s2330_s20, %s2739_s7 }
 0x30e   :  { %p2336_p5 = pnand %p2334_p4, %p2331_p3 }
 0x310   :  { %2339 = shalt.err (!%p2336_p5)
}
 0x311   :  { %1702 = dma.vmem_to_hbm [thread:$0]  %s1697_s25, 1024, %s2739_s7, [#allocation10], %s2349_s11, %s2349_s11, %s2350_s12  }
 0x312   :  { %2344 = dma.done.wait [#allocation4], 1024  }
 0x313   :  { %2345 = vsyncadd [#allocation4], 4294966272 }
 0x314   :  { %2346 = dma.done.wait [#allocation10], 9216  }
 0x315   :  { %2347 = vsyncadd [#allocation10], 4294958080 }
 0x316   :  { %1712 = vsyncpa [#allocation3], 1 }
 0x317   :  { %1713 = vsyncpa [#allocation6], 1 }
 0x318   :  { %1714 = vsyncpa [#allocation4], 1 }
 0x319   :  { %1715 = vsyncpa [#allocation10], 1 }

// kernel: tpu_custom_call.1
= control target key start
LH: loop header
LB: loop body
LE: loop exit
PB: predicated region body
PF: predicated region fallthrough
CT: control target
= control target key end

     0   :  { %13 = vsyncpa [#allocation3], 0  ;;  %s2732_s0 = inlined_call_operand.hbm [shape: f32[64,1024], index: 0, kind: input, shape index: {}]   ;;  %s2733_s1 = inlined_call_operand.hbm [shape: f32[1024,128], index: 1, kind: input, shape index: {}]   ;;  %s2734_s2 = inlined_call_operand.vmem [shape: f32[1,128], index: 2, kind: input, shape index: {}]   ;;  %s2735_s3 = inlined_call_operand.hbm [shape: f32[128,1024], index: 3, kind: input, shape index: {}]   ;;  %s2736_s4 = inlined_call_operand.vmem [shape: f32[1,1024], index: 4, kind: input, shape index: {}]   ;;  %s2737_s5 = inlined_call_operand.hbm [shape: f32[64,128], index: 5, kind: output, shape index: {0}]   ;;  %s2738_s6 = inlined_call_operand.hbm [shape: f32[64,1024], index: 6, kind: output, shape index: {1}]   ;;  %s2739_s7 = inlined_call_operand.hbm [shape: f32[64,128], index: 7, kind: output, shape index: {2}]  }
   0x1   :  { %14 = vsyncpa [#allocation6], 0 }
   0x2   :  { %15 = vsyncpa [#allocation4], 0 }
   0x3   :  { %16 = vsyncpa [#allocation10], 0  ;;  %s2348_s24 = smov [#allocation5]   ;;  %s2208_s28 = scalar_lea.hbm %s2733_s1, 16384 }
   0x4   :  { %s34_s25 = sshll.u32 %s2348_s24, 4  ;;  %p2209_p0 = scmp.ne.s32.totalorder %s2733_s1, %s2208_s28  ;;  %s35_s25 = int_to_ptr.vmem [resolvable:$true] %s34_s25 }
   0x5   :  { %p2212_p1 = scmp.lt.u32.totalorder %s2208_s28, %s2733_s1 }
   0x7   :  { %p2214_p2 = pnand %p2212_p1, %p2209_p0 }
   0x9   :  { %2217 = shalt.err (!%p2214_p2)
}
   0xa   :  { %s2218_s10 = scalar_lea.vmem %s35_s25, 16384  ;;  %p2223_p4 = scmp.lt.s32.totalorder %s35_s25, %s35_s25 }
   0xb   :  { %p2219_p3 = scmp.ne.s32.totalorder %s35_s25, %s2218_s10  ;;  %p2224_p5 = scmp.lt.s32.totalorder %s2218_s10, %s2218_s10 }
   0xd   :  { %p2225_p6 = por %p2224_p5, %p2223_p4 }
   0xf   :  { %p2226_p7 = pnand %p2225_p6, %p2219_p3 }
  0x11   :  { %2229 = shalt.err (!%p2226_p7)
}
  0x12   :  { %s2349_s11 = smov 128   ;;  %s2350_s12 = smov 8  }
  0x13   :  { %40 = dma.hbm_to_vmem [thread:$0]  %s2733_s1, 16384, %s35_s25, [#allocation6], %s2349_s11, %s2349_s11, %s2350_s12  }
  0x14   :  { %s2351_s15 = smov [#allocation2]   ;;  %s2230_s19 = scalar_lea.hbm %s2732_s0, 8192 }
  0x15   :  { %s22_s16 = sshll.u32 %s2351_s15, 4  ;;  %p2231_p8 = scmp.ne.s32.totalorder %s2732_s0, %s2230_s19  ;;  %s23_s16 = int_to_ptr.vmem [resolvable:$true] %s22_s16 }
  0x16   :  { %p2234_p9 = scmp.lt.u32.totalorder %s2230_s19, %s2732_s0 }
  0x18   :  { %p2236_p10 = pnand %p2234_p9, %p2231_p8 }
  0x1a   :  { %2239 = shalt.err (!%p2236_p10)
}
  0x1b   :  { %s2240_s24 = scalar_lea.vmem %s23_s16, 8192  ;;  %p2245_p12 = scmp.lt.s32.totalorder %s23_s16, %s23_s16 }
  0x1c   :  { %p2241_p11 = scmp.ne.s32.totalorder %s23_s16, %s2240_s24  ;;  %p2246_p13 = scmp.lt.s32.totalorder %s2240_s24, %s2240_s24 }
  0x1e   :  { %p2247_p0 = por %p2246_p13, %p2245_p12 }
  0x20   :  { %p2248_p1 = pnand %p2247_p0, %p2241_p11 }
  0x22   :  { %2251 = shalt.err (!%p2248_p1)
}
  0x23   :  { %s2352_s1 = smov 1024   ;;  %s2353_s25 = smov 64  }
  0x24   :  { %28 = dma.hbm_to_vmem [thread:$0]  %s2732_s0, 8192, %s23_s16, [#allocation3], %s2352_s1, %s2352_s1, %s2353_s25  }
  0x25   :  { %s2354_s28 = smov [#allocation7]   ;;  %s2252_s9 = scalar_lea.hbm %s2735_s3, 16384 }
  0x26   :  { %s48_s29 = sshll.u32 %s2354_s28, 4  ;;  %p2253_p2 = scmp.ne.s32.totalorder %s2735_s3, %s2252_s9  ;;  %s49_s29 = int_to_ptr.vmem [resolvable:$true] %s48_s29 }
  0x27   :  { %p2256_p3 = scmp.lt.u32.totalorder %s2252_s9, %s2735_s3 }
  0x29   :  { %p2258_p4 = pnand %p2256_p3, %p2253_p2 }
  0x2b   :  { %2261 = shalt.err (!%p2258_p4)
}
  0x2c   :  { %s2262_s17 = scalar_lea.vmem %s49_s29, 16384  ;;  %p2267_p6 = scmp.lt.s32.totalorder %s49_s29, %s49_s29 }
  0x2d   :  { %p2263_p5 = scmp.ne.s32.totalorder %s49_s29, %s2262_s17  ;;  %p2268_p7 = scmp.lt.s32.totalorder %s2262_s17, %s2262_s17 }
  0x2f   :  { %p2269_p8 = por %p2268_p7, %p2267_p6 }
  0x31   :  { %p2270_p9 = pnand %p2269_p8, %p2263_p5 }
  0x33   :  { %2273 = shalt.err (!%p2270_p9)
}
  0x34   :  { %54 = dma.hbm_to_vmem [thread:$0]  %s2735_s3, 16384, %s49_s29, [#allocation6], %s2352_s1, %s2352_s1, %s2353_s25  }
  0x35   :  { %2340 = dma.done.wait [#allocation3], 8192  }
  0x36   :  { %2341 = vsyncadd [#allocation3], 4294959104 }
  0x37   :  { %2342 = dma.done.wait [#allocation6], 32768  }
  0x38   :  { %2343 = vsyncadd [#allocation6], 4294934528  ;;  %v146_v0 = vld [vmem:[#allocation5 + $0x80] sm:$0xff]  ;;  %v147_v1 = vld [vmem:[#allocation5 + $0x88] sm:$0xff]  ;;  %s2357_s21 = smov [#allocation8]  }
  0x39   :  { %v130_v2 = vld [vmem:[#allocation5] sm:$0xff]  ;;  %v1941_v3 = vpack.c.bf16 %v147_v1, %v146_v0  ;;  %v131_v4 = vld [vmem:[#allocation5 + $0x8] sm:$0xff]  ;;  %v148_v11 = vld [vmem:[#allocation5 + $0x90] sm:$0xff]  ;;  %s1672_s22 = sshll.u32 %s2357_s21, 4  ;;  %s2680_s22 = int_to_ptr.vmem [resolvable:$true] %s1672_s22 }
  0x3a   :  { %v178_v5 = vld [vmem:[#allocation5 + $0x180] sm:$0xff]  ;;  %v179_v6 = vld [vmem:[#allocation5 + $0x188] sm:$0xff]  ;;  %v1943_v7 = vpack.c.bf16 %v131_v4, %v130_v2  ;;  %v149_v13 = vld [vmem:[#allocation5 + $0x98] sm:$0xff] }
  0x3b   :  { %v1973_v8 = vpack.c.bf16 %v179_v6, %v178_v5  ;;  %v162_v9 = vld [vmem:[#allocation5 + $0x100] sm:$0xff]  ;;  %v163_v10 = vld [vmem:[#allocation5 + $0x108] sm:$0xff]  ;;  %1942 = vmatprep.subr.bf16.mxu0 %v1941_v3  ;;  %v132_v14 = vld [vmem:[#allocation5 + $0x10] sm:$0xff]  ;;  %v1945_v16 = vpack.c.bf16 %v149_v13, %v148_v11 }
  0x3c   :  { %v1975_v12 = vpack.c.bf16 %v163_v10, %v162_v9  ;;  %v133_v15 = vld [vmem:[#allocation5 + $0x18] sm:$0xff]  ;;  %1944 = vmatpush3.bf16.msra.mxu0 %v1943_v7  ;;  %v180_v18 = vld [vmem:[#allocation5 + $0x190] sm:$0xff]  ;;  %v150_v23 = vld [vmem:[#allocation5 + $0xa0] sm:$0xff] }
  0x3d   :  { %1974 = vmatprep.subr.bf16.mxu1 %v1973_v8  ;;  %v1947_v17 = vpack.c.bf16 %v133_v15, %v132_v14  ;;  %v181_v19 = vld [vmem:[#allocation5 + $0x198] sm:$0xff]  ;;  %v164_v20 = vld [vmem:[#allocation5 + $0x110] sm:$0xff]  ;;  %v151_v24 = vld [vmem:[#allocation5 + $0xa8] sm:$0xff]  ;;  %1946 = vmatprep.subr.bf16.mxu0 %v1945_v16 }
  0x3e   :  { %1976 = vmatpush3.bf16.msra.mxu1 %v1975_v12  ;;  %v1977_v21 = vpack.c.bf16 %v181_v19, %v180_v18  ;;  %v165_v22 = vld [vmem:[#allocation5 + $0x118] sm:$0xff]  ;;  %v1949_v26 = vpack.c.bf16 %v151_v24, %v150_v23  ;;  %v134_v27 = vld [vmem:[#allocation5 + $0x20] sm:$0xff]  ;;  %v135_v28 = vld [vmem:[#allocation5 + $0x28] sm:$0xff] }
  0x3f   :  { %v1979_v25 = vpack.c.bf16 %v165_v22, %v164_v20  ;;  %v182_v29 = vld [vmem:[#allocation5 + $0x1a0] sm:$0xff]  ;;  %v183_v30 = vld [vmem:[#allocation5 + $0x1a8] sm:$0xff]  ;;  %v1951_v33 = vpack.c.bf16 %v135_v28, %v134_v27  ;;  %v152_v35 = vld [vmem:[#allocation5 + $0xb0] sm:$0xff] }
  0x40   :  { %1978 = vmatprep.subr.bf16.mxu1 %v1977_v21  ;;  %v166_v31 = vld [vmem:[#allocation5 + $0x120] sm:$0xff]  ;;  %v167_v32 = vld [vmem:[#allocation5 + $0x128] sm:$0xff]  ;;  %1948 = vmatpush3.bf16.msra.mxu0 %v1947_v17  ;;  %v1981_v34 = vpack.c.bf16 %v183_v30, %v182_v29  ;;  %v153_v36 = vld [vmem:[#allocation5 + $0xb8] sm:$0xff] }
  0x41   :  { %v136_v37 = vld [vmem:[#allocation5 + $0x30] sm:$0xff]  ;;  %1950 = vmatprep.subr.bf16.mxu0 %v1949_v26  ;;  %v1983_v38 = vpack.c.bf16 %v167_v32, %v166_v31  ;;  %v1953_v39 = vpack.c.bf16 %v153_v36, %v152_v35  ;;  %v137_v40 = vld [vmem:[#allocation5 + $0x38] sm:$0xff]  ;;  %v154_v46 = vld [vmem:[#allocation5 + $0xc0] sm:$0xff] }
  0x42   :  { %1980 = vmatpush3.bf16.msra.mxu1 %v1979_v25  ;;  %v184_v41 = vld [vmem:[#allocation5 + $0x1b0] sm:$0xff]  ;;  %v185_v42 = vld [vmem:[#allocation5 + $0x1b8] sm:$0xff]  ;;  %v155_v47 = vld [vmem:[#allocation5 + $0xc8] sm:$0xff]  ;;  %v1955_v48 = vpack.c.bf16 %v137_v40, %v136_v37 }
  0x43   :  { %1982 = vmatprep.subr.bf16.mxu1 %v1981_v34  ;;  %v1985_v43 = vpack.c.bf16 %v185_v42, %v184_v41  ;;  %v168_v44 = vld [vmem:[#allocation5 + $0x130] sm:$0xff]  ;;  %v169_v45 = vld [vmem:[#allocation5 + $0x138] sm:$0xff]  ;;  %v186_v49 = vld [vmem:[#allocation5 + $0x1c0] sm:$0xff]  ;;  %v1957_v52 = vpack.c.bf16 %v155_v47, %v154_v46 }
  0x44   :  { %1952 = vmatpush3.bf16.msra.mxu0 %v1951_v33  ;;  %v187_v50 = vld [vmem:[#allocation5 + $0x1c8] sm:$0xff]  ;;  %v1987_v51 = vpack.c.bf16 %v169_v45, %v168_v44  ;;  %v138_v53 = vld [vmem:[#allocation5 + $0x40] sm:$0xff]  ;;  %v156_v58 = vld [vmem:[#allocation5 + $0xd0] sm:$0xff] }
  0x45   :  { %1954 = vmatprep.subr.bf16.mxu0 %v1953_v39  ;;  %v139_v54 = vld [vmem:[#allocation5 + $0x48] sm:$0xff]  ;;  %v170_v55 = vld [vmem:[#allocation5 + $0x140] sm:$0xff]  ;;  %v1989_v56 = vpack.c.bf16 %v187_v50, %v186_v49  ;;  %v157_v59 = vld [vmem:[#allocation5 + $0xd8] sm:$0xff] }
  0x46   :  { %1984 = vmatpush3.bf16.msra.mxu1 %v1983_v38  ;;  %v171_v57 = vld [vmem:[#allocation5 + $0x148] sm:$0xff]  ;;  %v188_v60 = vld [vmem:[#allocation5 + $0x1d0] sm:$0xff]  ;;  %v189_v61 = vld [vmem:[#allocation5 + $0x1d8] sm:$0xff]  ;;  %v1959_v62 = vpack.c.bf16 %v139_v54, %v138_v53  ;;  %v1961_v0 = vpack.c.bf16 %v157_v59, %v156_v58 }
  0x47   :  { %1986 = vmatprep.subr.bf16.mxu1 %v1985_v43  ;;  %v1991_v63 = vpack.c.bf16 %v171_v57, %v170_v55  ;;  %v140_v1 = vld [vmem:[#allocation5 + $0x50] sm:$0xff]  ;;  %v141_v2 = vld [vmem:[#allocation5 + $0x58] sm:$0xff]  ;;  %v1993_v4 = vpack.c.bf16 %v189_v61, %v188_v60  ;;  %v158_v6 = vld [vmem:[#allocation5 + $0xe0] sm:$0xff] }
  0x48   :  { %1956 = vmatpush3.bf16.msra.mxu0 %v1955_v48  ;;  %v172_v3 = vld [vmem:[#allocation5 + $0x150] sm:$0xff]  ;;  %v173_v5 = vld [vmem:[#allocation5 + $0x158] sm:$0xff]  ;;  %v159_v7 = vld [vmem:[#allocation5 + $0xe8] sm:$0xff]  ;;  %v1963_v10 = vpack.c.bf16 %v141_v2, %v140_v1 }
  0x49   :  { %1958 = vmatprep.subr.bf16.mxu0 %v1957_v52  ;;  %v190_v8 = vld [vmem:[#allocation5 + $0x1e0] sm:$0xff]  ;;  %v191_v9 = vld [vmem:[#allocation5 + $0x1e8] sm:$0xff]  ;;  %v1995_v13 = vpack.c.bf16 %v173_v5, %v172_v3  ;;  %v1965_v14 = vpack.c.bf16 %v159_v7, %v158_v6  ;;  %v160_v19 = vld [vmem:[#allocation5 + $0xf0] sm:$0xff] }
  0x4a   :  { %1988 = vmatpush3.bf16.msra.mxu1 %v1987_v51  ;;  %v142_v11 = vld [vmem:[#allocation5 + $0x60] sm:$0xff]  ;;  %v67_v12 = vld [vmem:[#allocation2 + $0x8] sm:$0xff]  ;;  %v1997_v18 = vpack.c.bf16 %v191_v9, %v190_v8  ;;  %v161_v20 = vld [vmem:[#allocation5 + $0xf8] sm:$0xff] }
  0x4b   :  { %1990 = vmatprep.subr.bf16.mxu1 %v1989_v56  ;;  %v143_v15 = vld [vmem:[#allocation5 + $0x68] sm:$0xff]  ;;  %v174_v16 = vld [vmem:[#allocation5 + $0x160] sm:$0xff]  ;;  %329 = vmatprep.mubr.f32.mxu0 %v67_v12  ;;  %v69_v21 = vld [vmem:[#allocation2 + $0x18] sm:$0xff]  ;;  %v1969_v26 = vpack.c.bf16 %v161_v20, %v160_v19 }
  0x4c   :  { %1960 = vmatpush3.bf16.msra.mxu0 %v1959_v62  ;;  %v175_v17 = vld [vmem:[#allocation5 + $0x168] sm:$0xff]  ;;  %v192_v22 = vld [vmem:[#allocation5 + $0x1f0] sm:$0xff]  ;;  %v193_v23 = vld [vmem:[#allocation5 + $0x1f8] sm:$0xff]  ;;  %434 = vmatprep.mubr.f32.mxu1 %v69_v21  ;;  %v1967_v24 = vpack.c.bf16 %v143_v15, %v142_v11 }
  0x4d   :  { %1962 = vmatprep.subr.bf16.mxu0 %v1961_v0  ;;  %v1999_v25 = vpack.c.bf16 %v175_v17, %v174_v16  ;;  %v144_v27 = vld [vmem:[#allocation5 + $0x70] sm:$0xff]  ;;  %v145_v28 = vld [vmem:[#allocation5 + $0x78] sm:$0xff]  ;;  %v2001_v30 = vpack.c.bf16 %v193_v23, %v192_v22  ;;  %v210_v32 = vld [vmem:[#allocation5 + $0x280] sm:$0xff] }
  0x4e   :  { %1992 = vmatpush3.bf16.msra.mxu1 %v1991_v63  ;;  %v176_v29 = vld [vmem:[#allocation5 + $0x170] sm:$0xff]  ;;  %v177_v31 = vld [vmem:[#allocation5 + $0x178] sm:$0xff]  ;;  %v211_v33 = vld [vmem:[#allocation5 + $0x288] sm:$0xff]  ;;  %v1971_v36 = vpack.c.bf16 %v145_v28, %v144_v27 }
  0x4f   :  { %1994 = vmatprep.subr.bf16.mxu1 %v1993_v4  ;;  %v242_v34 = vld [vmem:[#allocation5 + $0x380] sm:$0xff]  ;;  %v243_v35 = vld [vmem:[#allocation5 + $0x388] sm:$0xff]  ;;  %v2003_v37 = vpack.c.bf16 %v177_v31, %v176_v29  ;;  %v2005_v38 = vpack.c.bf16 %v211_v33, %v210_v32  ;;  %v212_v44 = vld [vmem:[#allocation5 + $0x290] sm:$0xff] }
  0x50   :  { %1964 = vmatpush3.bf16.msra.mxu0 %v1963_v10  ;;  %v194_v39 = vld [vmem:[#allocation5 + $0x200] sm:$0xff]  ;;  %v195_v40 = vld [vmem:[#allocation5 + $0x208] sm:$0xff]  ;;  %v2037_v41 = vpack.c.bf16 %v243_v35, %v242_v34  ;;  %v213_v45 = vld [vmem:[#allocation5 + $0x298] sm:$0xff] }
  0x51   :  { %1966 = vmatprep.subr.bf16.mxu0 %v1965_v14  ;;  %v226_v42 = vld [vmem:[#allocation5 + $0x300] sm:$0xff]  ;;  %v227_v43 = vld [vmem:[#allocation5 + $0x308] sm:$0xff]  ;;  %v2007_v47 = vpack.c.bf16 %v195_v40, %v194_v39  ;;  %v244_v48 = vld [vmem:[#allocation5 + $0x390] sm:$0xff]  ;;  %v2009_v55 = vpack.c.bf16 %v213_v45, %v212_v44 }
  0x52   :  { %1996 = vmatpush3.bf16.msra.mxu1 %v1995_v13  ;;  %v66_v46 = vld [vmem:[#allocation2] sm:$0xff]  ;;  %v245_v49 = vld [vmem:[#allocation5 + $0x398] sm:$0xff]  ;;  %v68_v50 = vld [vmem:[#allocation2 + $0x10] sm:$0xff]  ;;  %v2039_v51 = vpack.c.bf16 %v227_v43, %v226_v42 }
  0x53   :  { %1998 = vmatprep.subr.bf16.mxu1 %v1997_v18  ;;  %v196_v52 = vld [vmem:[#allocation5 + $0x210] sm:$0xff]  ;;  %v197_v53 = vld [vmem:[#allocation5 + $0x218] sm:$0xff]  ;;  %v75_v54 = vld [vmem:[#allocation2 + $0x48] sm:$0xff]  ;;  %v2041_v59 = vpack.c.bf16 %v245_v49, %v244_v48 }
  0x54   :  { %1968 = vmatpush3.bf16.msra.mxu0 %v1967_v24  ;;  %v228_v56 = vld [vmem:[#allocation5 + $0x310] sm:$0xff]  ;;  %v229_v57 = vld [vmem:[#allocation5 + $0x318] sm:$0xff]  ;;  %v214_v60 = vld [vmem:[#allocation5 + $0x2a0] sm:$0xff]  ;;  %v2011_v63 = vpack.c.bf16 %v197_v53, %v196_v52 }
  0x55   :  { %1970 = vmatprep.subr.bf16.mxu0 %v1969_v26  ;;  %v77_v58 = vld [vmem:[#allocation2 + $0x58] sm:$0xff]  ;;  %v215_v61 = vld [vmem:[#allocation5 + $0x2a8] sm:$0xff]  ;;  %v74_v62 = vld [vmem:[#allocation2 + $0x40] sm:$0xff]  ;;  %v2043_v3 = vpack.c.bf16 %v229_v57, %v228_v56 }
  0x56   :  { %2000 = vmatpush3.bf16.msra.mxu1 %v1999_v25  ;;  %v246_v0 = vld [vmem:[#allocation5 + $0x3a0] sm:$0xff]  ;;  %v247_v1 = vld [vmem:[#allocation5 + $0x3a8] sm:$0xff]  ;;  %v76_v2 = vld [vmem:[#allocation2 + $0x50] sm:$0xff]  ;;  %v2013_v7 = vpack.c.bf16 %v215_v61, %v214_v60 }
  0x57   :  { %2002 = vmatprep.subr.bf16.mxu1 %v2001_v30  ;;  %v198_v4 = vld [vmem:[#allocation5 + $0x220] sm:$0xff]  ;;  %v199_v5 = vld [vmem:[#allocation5 + $0x228] sm:$0xff]  ;;  %v85_v10 = vld [vmem:[#allocation2 + $0x98] sm:$0xff]  ;;  %v2045_v11 = vpack.c.bf16 %v247_v1, %v246_v0 }
  0x58   :  { %1972 = vmatpush3.bf16.msra.mxu0 %v1971_v36  ;;  %v83_v6 = vld [vmem:[#allocation2 + $0x88] sm:$0xff]  ;;  %v230_v8 = vld [vmem:[#allocation5 + $0x320] sm:$0xff]  ;;  %v216_v12 = vld [vmem:[#allocation5 + $0x2b0] sm:$0xff]  ;;  %v2015_v15 = vpack.c.bf16 %v199_v5, %v198_v4 }
  0x59   :  { %2006 = vmatprep.subr.bf16.mxu0 %v2005_v38  ;;  %v231_v9 = vld [vmem:[#allocation5 + $0x328] sm:$0xff]  ;;  %v217_v13 = vld [vmem:[#allocation5 + $0x2b8] sm:$0xff]  ;;  %v82_v14 = vld [vmem:[#allocation2 + $0x80] sm:$0xff] }
  0x5a   :  { %2004 = vmatpush3.bf16.msra.mxu1 %v2003_v37  ;;  %v248_v16 = vld [vmem:[#allocation5 + $0x3b0] sm:$0xff]  ;;  %v249_v17 = vld [vmem:[#allocation5 + $0x3b8] sm:$0xff]  ;;  %v2047_v19 = vpack.c.bf16 %v231_v9, %v230_v8  ;;  %v91_v22 = vld [vmem:[#allocation2 + $0xc8] sm:$0xff]  ;;  %v2017_v23 = vpack.c.bf16 %v217_v13, %v216_v12 }
  0x5b   :  { %2038 = vmatprep.subr.bf16.mxu1 %v2037_v41  ;;  %330 = vmatmul.mubr.f32.vlgmr.msra.gmra.mrb[0].mxu0 %v66_v46  ;;  %v84_v18 = vld [vmem:[#allocation2 + $0x90] sm:$0xff]  ;;  %v201_v21 = vld [vmem:[#allocation5 + $0x238] sm:$0xff]  ;;  %v2049_v27 = vpack.c.bf16 %v249_v17, %v248_v16  ;;  %v218_v28 = vld [vmem:[#allocation5 + $0x2c0] sm:$0xff] }
  0x5c   :  { %2008 = vmatpush3.bf16.msra.mxu0 %v2007_v47  ;;  %334 = vmatprep.mubr.f32.mxu0 %v75_v54  ;;  %v200_v20 = vld [vmem:[#allocation5 + $0x230] sm:$0xff]  ;;  %v233_v25 = vld [vmem:[#allocation5 + $0x338] sm:$0xff]  ;;  %v219_v29 = vld [vmem:[#allocation5 + $0x2c8] sm:$0xff] }
  0x5d   :  { %435 = vmatmul.mubr.f32.vlgmr.msra.gmra.mrb[0].mxu1 %v68_v50  ;;  %2010 = vmatprep.subr.bf16.mxu0 %v2009_v55  ;;  %v232_v24 = vld [vmem:[#allocation5 + $0x330] sm:$0xff]  ;;  %v93_v26 = vld [vmem:[#allocation2 + $0xd8] sm:$0xff]  ;;  %v90_v30 = vld [vmem:[#allocation2 + $0xc0] sm:$0xff]  ;;  %v2019_v31 = vpack.c.bf16 %v201_v21, %v200_v20  ;;  %v2021_v39 = vpack.c.bf16 %v219_v29, %v218_v28 }
  0x5e   :  { %2040 = vmatpush3.bf16.msra.mxu1 %v2039_v51  ;;  %439 = vmatprep.mubr.f32.mxu1 %v77_v58  ;;  %v250_v32 = vld [vmem:[#allocation5 + $0x3c0] sm:$0xff]  ;;  %v251_v33 = vld [vmem:[#allocation5 + $0x3c8] sm:$0xff]  ;;  %v92_v34 = vld [vmem:[#allocation2 + $0xd0] sm:$0xff]  ;;  %v2051_v35 = vpack.c.bf16 %v233_v25, %v232_v24 }
  0x5f   :  { %335 = vmatmul.mubr.f32.gmra.mrb[2].mxu0 %v74_v62  ;;  %2042 = vmatprep.subr.bf16.mxu1 %v2041_v59  ;;  %v202_v36 = vld [vmem:[#allocation5 + $0x240] sm:$0xff]  ;;  %v203_v37 = vld [vmem:[#allocation5 + $0x248] sm:$0xff]  ;;  %v101_v42 = vld [vmem:[#allocation2 + $0x118] sm:$0xff]  ;;  %v2053_v43 = vpack.c.bf16 %v251_v33, %v250_v32 }
  0x60   :  { %2012 = vmatpush3.bf16.msra.mxu0 %v2011_v63  ;;  %339 = vmatprep.mubr.f32.mxu0 %v83_v6  ;;  %v99_v38 = vld [vmem:[#allocation2 + $0x108] sm:$0xff]  ;;  %v234_v40 = vld [vmem:[#allocation5 + $0x340] sm:$0xff]  ;;  %v220_v44 = vld [vmem:[#allocation5 + $0x2d0] sm:$0xff]  ;;  %v2023_v47 = vpack.c.bf16 %v203_v37, %v202_v36 }
  0x61   :  { %440 = vmatmul.mubr.f32.gmra.mrb[2].mxu1 %v76_v2  ;;  %2014 = vmatprep.subr.bf16.mxu0 %v2013_v7  ;;  %v235_v41 = vld [vmem:[#allocation5 + $0x348] sm:$0xff]  ;;  %v221_v45 = vld [vmem:[#allocation5 + $0x2d8] sm:$0xff]  ;;  %v98_v46 = vld [vmem:[#allocation2 + $0x100] sm:$0xff] }
  0x62   :  { %2044 = vmatpush3.bf16.msra.mxu1 %v2043_v3  ;;  %444 = vmatprep.mubr.f32.mxu1 %v85_v10  ;;  %v252_v48 = vld [vmem:[#allocation5 + $0x3d0] sm:$0xff]  ;;  %v253_v49 = vld [vmem:[#allocation5 + $0x3d8] sm:$0xff]  ;;  %v2055_v51 = vpack.c.bf16 %v235_v41, %v234_v40  ;;  %v107_v54 = vld [vmem:[#allocation2 + $0x148] sm:$0xff]  ;;  %v2025_v55 = vpack.c.bf16 %v221_v45, %v220_v44 }
  0x63   :  { %340 = vmatmul.mubr.f32.gmra.mrb[4].mxu0 %v82_v14  ;;  %2046 = vmatprep.subr.bf16.mxu1 %v2045_v11  ;;  %v100_v50 = vld [vmem:[#allocation2 + $0x110] sm:$0xff]  ;;  %v205_v53 = vld [vmem:[#allocation5 + $0x258] sm:$0xff]  ;;  %v2057_v59 = vpack.c.bf16 %v253_v49, %v252_v48  ;;  %v222_v60 = vld [vmem:[#allocation5 + $0x2e0] sm:$0xff] }
  0x64   :  { %2016 = vmatpush3.bf16.msra.mxu0 %v2015_v15  ;;  %344 = vmatprep.mubr.f32.mxu0 %v91_v22  ;;  %v204_v52 = vld [vmem:[#allocation5 + $0x250] sm:$0xff]  ;;  %v237_v57 = vld [vmem:[#allocation5 + $0x358] sm:$0xff]  ;;  %v223_v61 = vld [vmem:[#allocation5 + $0x2e8] sm:$0xff] }
  0x65   :  { %445 = vmatmul.mubr.f32.gmra.mrb[4].mxu1 %v84_v18  ;;  %2018 = vmatprep.subr.bf16.mxu0 %v2017_v23  ;;  %v236_v56 = vld [vmem:[#allocation5 + $0x350] sm:$0xff]  ;;  %v109_v58 = vld [vmem:[#allocation2 + $0x158] sm:$0xff]  ;;  %v106_v62 = vld [vmem:[#allocation2 + $0x140] sm:$0xff]  ;;  %v2027_v63 = vpack.c.bf16 %v205_v53, %v204_v52  ;;  %v2029_v7 = vpack.c.bf16 %v223_v61, %v222_v60 }
  0x66   :  { %2048 = vmatpush3.bf16.msra.mxu1 %v2047_v19  ;;  %449 = vmatprep.mubr.f32.mxu1 %v93_v26  ;;  %v254_v0 = vld [vmem:[#allocation5 + $0x3e0] sm:$0xff]  ;;  %v255_v1 = vld [vmem:[#allocation5 + $0x3e8] sm:$0xff]  ;;  %v108_v2 = vld [vmem:[#allocation2 + $0x150] sm:$0xff]  ;;  %v2059_v3 = vpack.c.bf16 %v237_v57, %v236_v56 }
  0x67   :  { %345 = vmatmul.mubr.f32.gmra.mrb[6].mxu0 %v90_v30  ;;  %2050 = vmatprep.subr.bf16.mxu1 %v2049_v27  ;;  %v206_v4 = vld [vmem:[#allocation5 + $0x260] sm:$0xff]  ;;  %v207_v5 = vld [vmem:[#allocation5 + $0x268] sm:$0xff]  ;;  %v117_v10 = vld [vmem:[#allocation2 + $0x198] sm:$0xff]  ;;  %v2061_v11 = vpack.c.bf16 %v255_v1, %v254_v0 }
  0x68   :  { %2020 = vmatpush3.bf16.msra.mxu0 %v2019_v31  ;;  %349 = vmatprep.mubr.f32.mxu0 %v99_v38  ;;  %v115_v6 = vld [vmem:[#allocation2 + $0x188] sm:$0xff]  ;;  %v238_v8 = vld [vmem:[#allocation5 + $0x360] sm:$0xff]  ;;  %v224_v12 = vld [vmem:[#allocation5 + $0x2f0] sm:$0xff]  ;;  %v2031_v15 = vpack.c.bf16 %v207_v5, %v206_v4 }
  0x69   :  { %450 = vmatmul.mubr.f32.gmra.mrb[6].mxu1 %v92_v34  ;;  %2022 = vmatprep.subr.bf16.mxu0 %v2021_v39  ;;  %v239_v9 = vld [vmem:[#allocation5 + $0x368] sm:$0xff]  ;;  %v225_v13 = vld [vmem:[#allocation5 + $0x2f8] sm:$0xff]  ;;  %v114_v14 = vld [vmem:[#allocation2 + $0x180] sm:$0xff] }
  0x6a   :  { %2052 = vmatpush3.bf16.msra.mxu1 %v2051_v35  ;;  %454 = vmatprep.mubr.f32.mxu1 %v101_v42  ;;  %v256_v16 = vld [vmem:[#allocation5 + $0x3f0] sm:$0xff]  ;;  %v257_v17 = vld [vmem:[#allocation5 + $0x3f8] sm:$0xff]  ;;  %v2063_v19 = vpack.c.bf16 %v239_v9, %v238_v8  ;;  %v123_v22 = vld [vmem:[#allocation2 + $0x1c8] sm:$0xff]  ;;  %v2033_v23 = vpack.c.bf16 %v225_v13, %v224_v12 }
  0x6b   :  { %350 = vmatmul.mubr.f32.gmra.mrb[8].mxu0 %v98_v46  ;;  %2054 = vmatprep.subr.bf16.mxu1 %v2053_v43  ;;  %v116_v18 = vld [vmem:[#allocation2 + $0x190] sm:$0xff]  ;;  %v209_v21 = vld [vmem:[#allocation5 + $0x278] sm:$0xff]  ;;  %v2065_v27 = vpack.c.bf16 %v257_v17, %v256_v16  ;;  %v122_v28 = vld [vmem:[#allocation2 + $0x1c0] sm:$0xff] }
  0x6c   :  { %2024 = vmatpush3.bf16.msra.mxu0 %v2023_v47  ;;  %354 = vmatprep.mubr.f32.mxu0 %v107_v54  ;;  %v208_v20 = vld [vmem:[#allocation5 + $0x270] sm:$0xff]  ;;  %v241_v25 = vld [vmem:[#allocation5 + $0x378] sm:$0xff]  ;;  %v71_v32 = vld [vmem:[#allocation2 + $0x28] sm:$0xff] }
  0x6d   :  { %455 = vmatmul.mubr.f32.gmra.mrb[8].mxu1 %v100_v50  ;;  %2026 = vmatprep.subr.bf16.mxu0 %v2025_v55  ;;  %v240_v24 = vld [vmem:[#allocation5 + $0x370] sm:$0xff]  ;;  %v125_v26 = vld [vmem:[#allocation2 + $0x1d8] sm:$0xff]  ;;  %v2035_v29 = vpack.c.bf16 %v209_v21, %v208_v20  ;;  %v70_v34 = vld [vmem:[#allocation2 + $0x20] sm:$0xff] }
  0x6e   :  { %2056 = vmatpush3.bf16.msra.mxu1 %v2055_v51  ;;  %459 = vmatprep.mubr.f32.mxu1 %v109_v58  ;;  %v124_v30 = vld [vmem:[#allocation2 + $0x1d0] sm:$0xff]  ;;  %v2067_v31 = vpack.c.bf16 %v241_v25, %v240_v24  ;;  %v73_v33 = vld [vmem:[#allocation2 + $0x38] sm:$0xff]  ;;  %v79_v36 = vld [vmem:[#allocation2 + $0x68] sm:$0xff] }
  0x6f   :  { %355 = vmatmul.mubr.f32.gmra.mrb[10].mxu0 %v106_v62  ;;  %2058 = vmatprep.subr.bf16.mxu1 %v2057_v59  ;;  %v72_v35 = vld [vmem:[#allocation2 + $0x30] sm:$0xff]  ;;  %v81_v37 = vld [vmem:[#allocation2 + $0x78] sm:$0xff]  ;;  %v78_v38 = vld [vmem:[#allocation2 + $0x60] sm:$0xff] }
  0x70   :  { %2028 = vmatpush3.bf16.msra.mxu0 %v2027_v63  ;;  %359 = vmatprep.mubr.f32.mxu0 %v115_v6  ;;  %v80_v39 = vld [vmem:[#allocation2 + $0x70] sm:$0xff]  ;;  %v87_v40 = vld [vmem:[#allocation2 + $0xa8] sm:$0xff]  ;;  %v89_v41 = vld [vmem:[#allocation2 + $0xb8] sm:$0xff] }
  0x71   :  { %460 = vmatmul.mubr.f32.gmra.mrb[10].mxu1 %v108_v2  ;;  %2030 = vmatprep.subr.bf16.mxu0 %v2029_v7  ;;  %v86_v42 = vld [vmem:[#allocation2 + $0xa0] sm:$0xff]  ;;  %v88_v43 = vld [vmem:[#allocation2 + $0xb0] sm:$0xff]  ;;  %v95_v44 = vld [vmem:[#allocation2 + $0xe8] sm:$0xff] }
  0x72   :  { %2060 = vmatpush3.bf16.msra.mxu1 %v2059_v3  ;;  %464 = vmatprep.mubr.f32.mxu1 %v117_v10  ;;  %v97_v45 = vld [vmem:[#allocation2 + $0xf8] sm:$0xff]  ;;  %v94_v46 = vld [vmem:[#allocation2 + $0xe0] sm:$0xff]  ;;  %v96_v47 = vld [vmem:[#allocation2 + $0xf0] sm:$0xff] }
  0x73   :  { %360 = vmatmul.mubr.f32.gmra.mrb[12].mxu0 %v114_v14  ;;  %2062 = vmatprep.subr.bf16.mxu1 %v2061_v11  ;;  %v103_v48 = vld [vmem:[#allocation2 + $0x128] sm:$0xff]  ;;  %v105_v49 = vld [vmem:[#allocation2 + $0x138] sm:$0xff]  ;;  %v102_v50 = vld [vmem:[#allocation2 + $0x120] sm:$0xff] }
  0x74   :  { %2032 = vmatpush3.bf16.msra.mxu0 %v2031_v15  ;;  %364 = vmatprep.mubr.f32.mxu0 %v123_v22  ;;  %v104_v51 = vld [vmem:[#allocation2 + $0x130] sm:$0xff]  ;;  %v111_v52 = vld [vmem:[#allocation2 + $0x168] sm:$0xff]  ;;  %v113_v53 = vld [vmem:[#allocation2 + $0x178] sm:$0xff] }
  0x75   :  { %465 = vmatmul.mubr.f32.gmra.mrb[12].mxu1 %v116_v18  ;;  %2034 = vmatprep.subr.bf16.mxu0 %v2033_v23  ;;  %v110_v54 = vld [vmem:[#allocation2 + $0x160] sm:$0xff]  ;;  %v112_v55 = vld [vmem:[#allocation2 + $0x170] sm:$0xff]  ;;  %v119_v56 = vld [vmem:[#allocation2 + $0x1a8] sm:$0xff] }
  0x76   :  { %2064 = vmatpush3.bf16.msra.mxu1 %v2063_v19  ;;  %469 = vmatprep.mubr.f32.mxu1 %v125_v26  ;;  %v121_v57 = vld [vmem:[#allocation2 + $0x1b8] sm:$0xff]  ;;  %v118_v58 = vld [vmem:[#allocation2 + $0x1a0] sm:$0xff]  ;;  %v120_v59 = vld [vmem:[#allocation2 + $0x1b0] sm:$0xff] }
  0x77   :  { %365 = vmatmul.mubr.f32.gmra.mrb[14].mxu0 %v122_v28  ;;  %2066 = vmatprep.subr.bf16.mxu1 %v2065_v27  ;;  %v127_v60 = vld [vmem:[#allocation2 + $0x1e8] sm:$0xff]  ;;  %v129_v61 = vld [vmem:[#allocation2 + $0x1f8] sm:$0xff]  ;;  %v126_v62 = vld [vmem:[#allocation2 + $0x1e0] sm:$0xff] }
  0x78   :  { %2036 = vmatpush3.bf16.msra.mxu0 %v2035_v29  ;;  %539 = vmatprep.mubr.f32.mxu0 %v71_v32  ;;  %v128_v63 = vld [vmem:[#allocation2 + $0x1f0] sm:$0xff]  ;;  %v694_v0 = vld [vmem:[#allocation7 + $0x8] sm:$0xff]  ;;  %v696_v2 = vld [vmem:[#allocation7 + $0x18] sm:$0xff] }
  0x79   :  { %470 = vmatmul.mubr.f32.gmra.mrb[14].mxu1 %v124_v30  ;;  %v702_v1 = vld [vmem:[#allocation7 + $0x48] sm:$0xff]  ;;  %v704_v4 = vld [vmem:[#allocation7 + $0x58] sm:$0xff]  ;;  %v693_v5 = vld [vmem:[#allocation7] sm:$0xff] }
  0x7a   :  { %2068 = vmatpush3.bf16.msra.mxu1 %v2067_v31  ;;  %644 = vmatprep.mubr.f32.mxu1 %v73_v33  ;;  %v2069_v3 = vpack.c.bf16 %v702_v1, %v694_v0  ;;  %v701_v6 = vld [vmem:[#allocation7 + $0x40] sm:$0xff]  ;;  %v2101_v7 = vpack.c.bf16 %v704_v4, %v696_v2  ;;  %v695_v9 = vld [vmem:[#allocation7 + $0x10] sm:$0xff]  ;;  %v710_v12 = vld [vmem:[#allocation7 + $0x88] sm:$0xff] }
  0x7b   :  { %540 = vmatmul.mubr.f32.vlgmr.msra.gmra.mrb[16].mxu0 %v70_v34  ;;  %v2071_v8 = vpack.c.bf16 %v701_v6, %v693_v5  ;;  %v703_v10 = vld [vmem:[#allocation7 + $0x50] sm:$0xff]  ;;  %v718_v13 = vld [vmem:[#allocation7 + $0xc8] sm:$0xff]  ;;  %v712_v14 = vld [vmem:[#allocation7 + $0x98] sm:$0xff] }
  0x7c   :  { %544 = vmatprep.mubr.f32.mxu0 %v79_v36  ;;  %2070 = vmatprep.subr.bf16.mxu0 %v2069_v3  ;;  %v2103_v11 = vpack.c.bf16 %v703_v10, %v695_v9  ;;  %v2073_v15 = vpack.c.bf16 %v718_v13, %v710_v12  ;;  %v720_v16 = vld [vmem:[#allocation7 + $0xd8] sm:$0xff]  ;;  %v709_v17 = vld [vmem:[#allocation7 + $0x80] sm:$0xff]  ;;  %v711_v21 = vld [vmem:[#allocation7 + $0x90] sm:$0xff] }
  0x7d   :  { %645 = vmatmul.mubr.f32.vlgmr.msra.gmra.mrb[16].mxu1 %v72_v35  ;;  %2102 = vmatprep.subr.bf16.mxu1 %v2101_v7  ;;  %v717_v18 = vld [vmem:[#allocation7 + $0xc0] sm:$0xff]  ;;  %v2105_v19 = vpack.c.bf16 %v720_v16, %v712_v14  ;;  %v719_v22 = vld [vmem:[#allocation7 + $0xd0] sm:$0xff]  ;;  %v726_v24 = vld [vmem:[#allocation7 + $0x108] sm:$0xff] }
  0x7e   :  { %649 = vmatprep.mubr.f32.mxu1 %v81_v37  ;;  %2072 = vmatpush1.bf16.msra.mxu0 %v2071_v8  ;;  %v2075_v20 = vpack.c.bf16 %v717_v18, %v709_v17  ;;  %v2107_v23 = vpack.c.bf16 %v719_v22, %v711_v21  ;;  %v734_v25 = vld [vmem:[#allocation7 + $0x148] sm:$0xff]  ;;  %v728_v26 = vld [vmem:[#allocation7 + $0x118] sm:$0xff]  ;;  %v725_v29 = vld [vmem:[#allocation7 + $0x100] sm:$0xff] }
  0x7f   :  { %545 = vmatmul.mubr.f32.gmra.mrb[18].mxu0 %v78_v38  ;;  %2104 = vmatpush1.bf16.msra.mxu1 %v2103_v11  ;;  %v2077_v27 = vpack.c.bf16 %v734_v25, %v726_v24  ;;  %v736_v28 = vld [vmem:[#allocation7 + $0x158] sm:$0xff]  ;;  %v733_v30 = vld [vmem:[#allocation7 + $0x140] sm:$0xff]  ;;  %v727_v33 = vld [vmem:[#allocation7 + $0x110] sm:$0xff] }
  0x80   :  { %549 = vmatprep.mubr.f32.mxu0 %v87_v40  ;;  %2074 = vmatprep.subr.bf16.mxu0 %v2073_v15  ;;  %v2109_v31 = vpack.c.bf16 %v736_v28, %v728_v26  ;;  %v2079_v32 = vpack.c.bf16 %v733_v30, %v725_v29  ;;  %v735_v34 = vld [vmem:[#allocation7 + $0x150] sm:$0xff]  ;;  %v742_v36 = vld [vmem:[#allocation7 + $0x188] sm:$0xff]  ;;  %v744_v38 = vld [vmem:[#allocation7 + $0x198] sm:$0xff] }
  0x81   :  { %650 = vmatmul.mubr.f32.gmra.mrb[18].mxu1 %v80_v39  ;;  %2106 = vmatprep.subr.bf16.mxu1 %v2105_v19  ;;  %v2111_v35 = vpack.c.bf16 %v735_v34, %v727_v33  ;;  %v750_v37 = vld [vmem:[#allocation7 + $0x1c8] sm:$0xff]  ;;  %v752_v40 = vld [vmem:[#allocation7 + $0x1d8] sm:$0xff]  ;;  %v773_v1 = vld [vmem:[#allocation7 + $0x280] sm:$0xff] }
  0x82   :  { %654 = vmatprep.mubr.f32.mxu1 %v89_v41  ;;  %2076 = vmatpush1.bf16.msra.mxu0 %v2075_v20  ;;  %v2081_v39 = vpack.c.bf16 %v750_v37, %v742_v36  ;;  %v741_v41 = vld [vmem:[#allocation7 + $0x180] sm:$0xff]  ;;  %v784_v0 = vld [vmem:[#allocation7 + $0x2d8] sm:$0xff]  ;;  %v775_v5 = vld [vmem:[#allocation7 + $0x290] sm:$0xff]  ;;  %v2355_v37 = vmov 0.0  }
  0x83   :  { %550 = vmatmul.mubr.f32.gmra.mrb[20].mxu0 %v86_v42  ;;  %2108 = vmatpush1.bf16.msra.mxu1 %v2107_v23  ;;  %v749_v42 = vld [vmem:[#allocation7 + $0x1c0] sm:$0xff]  ;;  %v783_v6 = vld [vmem:[#allocation7 + $0x2d0] sm:$0xff]  ;;  %v790_v8 = vld [vmem:[#allocation7 + $0x308] sm:$0xff] }
  0x84   :  { %554 = vmatprep.mubr.f32.mxu0 %v95_v44  ;;  %2078 = vmatprep.subr.bf16.mxu0 %v2077_v27  ;;  %v2083_v44 = vpack.c.bf16 %v749_v42, %v741_v41  ;;  %v781_v2 = vld [vmem:[#allocation7 + $0x2c0] sm:$0xff]  ;;  %v2123_v7 = vpack.c.bf16 %v783_v6, %v775_v5  ;;  %v798_v9 = vld [vmem:[#allocation7 + $0x348] sm:$0xff]  ;;  %v792_v10 = vld [vmem:[#allocation7 + $0x318] sm:$0xff] }
  0x85   :  { %655 = vmatmul.mubr.f32.gmra.mrb[20].mxu1 %v88_v43  ;;  %2110 = vmatprep.subr.bf16.mxu1 %v2109_v31  ;;  %v2113_v43 = vpack.c.bf16 %v752_v40, %v744_v38  ;;  %v2091_v4 = vpack.c.bf16 %v781_v2, %v773_v1  ;;  %v2093_v11 = vpack.c.bf16 %v798_v9, %v790_v8  ;;  %v800_v12 = vld [vmem:[#allocation7 + $0x358] sm:$0xff]  ;;  %v789_v13 = vld [vmem:[#allocation7 + $0x300] sm:$0xff]  ;;  %v791_v17 = vld [vmem:[#allocation7 + $0x310] sm:$0xff] }
  0x86   :  { %659 = vmatprep.mubr.f32.mxu1 %v97_v45  ;;  %2080 = vmatpush1.bf16.msra.mxu0 %v2079_v32  ;;  %v743_v45 = vld [vmem:[#allocation7 + $0x190] sm:$0xff]  ;;  %v797_v14 = vld [vmem:[#allocation7 + $0x340] sm:$0xff]  ;;  %v2125_v15 = vpack.c.bf16 %v800_v12, %v792_v10  ;;  %v806_v20 = vld [vmem:[#allocation7 + $0x388] sm:$0xff] }
  0x87   :  { %555 = vmatmul.mubr.f32.gmra.mrb[22].mxu0 %v94_v46  ;;  %2112 = vmatpush1.bf16.msra.mxu1 %v2111_v35  ;;  %v751_v46 = vld [vmem:[#allocation7 + $0x1d0] sm:$0xff]  ;;  %v2095_v16 = vpack.c.bf16 %v797_v14, %v789_v13  ;;  %v814_v21 = vld [vmem:[#allocation7 + $0x3c8] sm:$0xff]  ;;  %v808_v22 = vld [vmem:[#allocation7 + $0x398] sm:$0xff] }
  0x88   :  { %559 = vmatprep.mubr.f32.mxu0 %v103_v48  ;;  %2082 = vmatprep.subr.bf16.mxu0 %v2081_v39  ;;  %v758_v48 = vld [vmem:[#allocation7 + $0x208] sm:$0xff]  ;;  %v799_v18 = vld [vmem:[#allocation7 + $0x350] sm:$0xff]  ;;  %v2097_v23 = vpack.c.bf16 %v814_v21, %v806_v20  ;;  %v816_v24 = vld [vmem:[#allocation7 + $0x3d8] sm:$0xff] }
  0x89   :  { %660 = vmatmul.mubr.f32.gmra.mrb[22].mxu1 %v96_v47  ;;  %v2115_v47 = vpack.c.bf16 %v751_v46, %v743_v45  ;;  %2114 = vmatprep.subr.bf16.mxu1 %v2113_v43  ;;  %v2127_v19 = vpack.c.bf16 %v799_v18, %v791_v17  ;;  %v805_v25 = vld [vmem:[#allocation7 + $0x380] sm:$0xff]  ;;  %v2129_v27 = vpack.c.bf16 %v816_v24, %v808_v22  ;;  %v807_v29 = vld [vmem:[#allocation7 + $0x390] sm:$0xff]  ;;  %v698_v32 = vld [vmem:[#allocation7 + $0x28] sm:$0xff] }
  0x8a   :  { %664 = vmatprep.mubr.f32.mxu1 %v105_v49  ;;  %2084 = vmatpush1.bf16.msra.mxu0 %v2083_v44  ;;  %v766_v49 = vld [vmem:[#allocation7 + $0x248] sm:$0xff]  ;;  %v813_v26 = vld [vmem:[#allocation7 + $0x3c0] sm:$0xff]  ;;  %v815_v30 = vld [vmem:[#allocation7 + $0x3d0] sm:$0xff] }
  0x8b   :  { %560 = vmatmul.mubr.f32.gmra.mrb[24].mxu0 %v102_v50  ;;  %v760_v50 = vld [vmem:[#allocation7 + $0x218] sm:$0xff]  ;;  %2116 = vmatpush1.bf16.msra.mxu1 %v2115_v47  ;;  %v2099_v28 = vpack.c.bf16 %v813_v26, %v805_v25  ;;  %v2131_v31 = vpack.c.bf16 %v815_v30, %v807_v29  ;;  %v706_v33 = vld [vmem:[#allocation7 + $0x68] sm:$0xff]  ;;  %v1716_v40 = vld [vmem:[%s2734_s2] ss:$0 sm:$0xff] }
  0x8c   :  { %564 = vmatprep.mubr.f32.mxu0 %v111_v52  ;;  %v768_v52 = vld [vmem:[#allocation7 + $0x258] sm:$0xff]  ;;  %v2133_v35 = vpack.c.bf16 %v706_v33, %v698_v32 }
  0x8d   :  { %665 = vmatmul.mubr.f32.gmra.mrb[24].mxu1 %v104_v51  ;;  %v2085_v51 = vpack.c.bf16 %v766_v49, %v758_v48  ;;  %v700_v34 = vld [vmem:[#allocation7 + $0x38] sm:$0xff] }
  0x8e   :  { %669 = vmatprep.mubr.f32.mxu1 %v113_v53  ;;  %v757_v53 = vld [vmem:[#allocation7 + $0x200] sm:$0xff]  ;;  %v708_v36 = vld [vmem:[#allocation7 + $0x78] sm:$0xff] }
  0x8f   :  { %565 = vmatmul.mubr.f32.gmra.mrb[26].mxu0 %v110_v54  ;;  %v765_v54 = vld [vmem:[#allocation7 + $0x240] sm:$0xff]  ;;  %2086 = vmatprep.subr.bf16.mxu0 %v2085_v51  ;;  %v2165_v38 = vpack.c.bf16 %v708_v36, %v700_v34 }
  0x90   :  { %569 = vmatprep.mubr.f32.mxu0 %v119_v56  ;;  %v2087_v56 = vpack.c.bf16 %v765_v54, %v757_v53 }
  0x91   :  { %670 = vmatmul.mubr.f32.gmra.mrb[26].mxu1 %v112_v55  ;;  %v2117_v55 = vpack.c.bf16 %v768_v52, %v760_v50 }
  0x92   :  { %674 = vmatprep.mubr.f32.mxu1 %v121_v57  ;;  %v759_v57 = vld [vmem:[#allocation7 + $0x210] sm:$0xff]  ;;  %2088 = vmatpush1.bf16.msra.mxu0 %v2087_v56 }
  0x93   :  { %570 = vmatmul.mubr.f32.gmra.mrb[28].mxu0 %v118_v58  ;;  %v767_v58 = vld [vmem:[#allocation7 + $0x250] sm:$0xff]  ;;  %2118 = vmatprep.subr.bf16.mxu1 %v2117_v55 }
  0x94   :  { %574 = vmatprep.mubr.f32.mxu0 %v127_v60  ;;  %v774_v60 = vld [vmem:[#allocation7 + $0x288] sm:$0xff] }
  0x95   :  { %675 = vmatmul.mubr.f32.gmra.mrb[28].mxu1 %v120_v59  ;;  %v2119_v59 = vpack.c.bf16 %v767_v58, %v759_v57 }
  0x96   :  { %679 = vmatprep.mubr.f32.mxu1 %v129_v61  ;;  %v782_v61 = vld [vmem:[#allocation7 + $0x2c8] sm:$0xff] }
  0x97   :  { %575 = vmatmul.mubr.f32.gmra.mrb[30].mxu0 %v126_v62  ;;  %v776_v62 = vld [vmem:[#allocation7 + $0x298] sm:$0xff]  ;;  %2120 = vmatpush1.bf16.msra.mxu1 %v2119_v59 }
  0x98   :  { %v2121_v3 = vpack.c.bf16 %v784_v0, %v776_v62  ;;  %927 = vmatprep.mubr.f32.mxu0 %v2355_v37 }
  0x99   :  { %680 = vmatmul.mubr.f32.gmra.mrb[30].mxu1 %v128_v63  ;;  %v2089_v63 = vpack.c.bf16 %v782_v61, %v774_v60 }
  0x9a   :  { %2122 = vmatprep.subr.bf16.mxu1 %v2121_v3  ;;  %1040 = vmatprep.mubr.f32.mxu1 %v2355_v37 }
  0x9b   :  { %2090 = vmatprep.subr.bf16.mxu0 %v2089_v63  ;;  %2124 = vmatpush1.bf16.msra.mxu1 %v2123_v7 }
  0x9c   :  { %2092 = vmatpush1.bf16.msra.mxu0 %v2091_v4  ;;  %2126 = vmatprep.subr.bf16.mxu1 %v2125_v15 }
  0x9d   :  { %2094 = vmatprep.subr.bf16.mxu0 %v2093_v11 }
  0x9f   :  { %2128 = vmatpush1.bf16.msra.mxu1 %v2127_v19 }
  0xa0   :  { %2096 = vmatpush1.bf16.msra.mxu0 %v2095_v16  ;;  %2130 = vmatprep.subr.bf16.mxu1 %v2129_v27 }
  0xa1   :  { %2098 = vmatprep.subr.bf16.mxu0 %v2097_v23 }
  0xa3   :  { %2132 = vmatpush1.bf16.msra.mxu1 %v2131_v31 }
  0xa4   :  { %2100 = vmatpush1.bf16.msra.mxu0 %v2099_v28  ;;  %2166 = vmatprep.subr.bf16.mxu1 %v2165_v38 }
  0xa5   :  { %2134 = vmatprep.subr.bf16.mxu0 %v2133_v35 }
 0x12e   :  { %v1749_v39 = vpop.f32.mrb[0].mxu0 }
 0x12f   :  { %v1750_v41 = vpop.f32.mrb[1].mxu0 }
 0x130   :  { %v1805_v42 = vpop.f32.mrb[0].mxu1  ;;  %v1751_v43 = vadd.f32 %v1750_v41, %v1749_v39 }
 0x131   :  { %v1806_v44 = vpop.f32.mrb[1].mxu1 }
 0x132   :  { %v1807_v45 = vadd.f32 %v1806_v44, %v1805_v42  ;;  %v332_v46 = vadd.f32 %v1751_v43, %v1716_v40  ;;  %v1752_v47 = vpop.f32.mrb[2].mxu0  ;;  %v697_v44 = vld [vmem:[#allocation7 + $0x20] sm:$0xff] }
 0x133   :  { %v1753_v48 = vpop.f32.mrb[3].mxu0 }
 0x134   :  { %v1808_v49 = vpop.f32.mrb[2].mxu1  ;;  %v2449_v50 = vadd.f32 %v1807_v45, %v332_v46  ;;  %v1754_v51 = vadd.f32 %v1753_v48, %v1752_v47  ;;  %v705_v48 = vld [vmem:[#allocation7 + $0x60] sm:$0xff] }
 0x135   :  { %v1809_v52 = vpop.f32.mrb[3].mxu1 }
 0x136   :  { %v1810_v53 = vadd.f32 %v1809_v52, %v1808_v49  ;;  %v337_v54 = vadd.f32 %v1754_v51, %v1716_v40  ;;  %v1755_v55 = vpop.f32.mrb[4].mxu0  ;;  %v699_v49 = vld [vmem:[#allocation7 + $0x30] sm:$0xff] }
 0x137   :  { %v1756_v56 = vpop.f32.mrb[5].mxu0  ;;  %v707_v51 = vld [vmem:[#allocation7 + $0x70] sm:$0xff] }
 0x138   :  { %v1811_v57 = vpop.f32.mrb[4].mxu1  ;;  %v2451_v58 = vadd.f32 %v1810_v53, %v337_v54  ;;  %v1757_v59 = vadd.f32 %v1756_v56, %v1755_v55  ;;  %v714_v53 = vld [vmem:[#allocation7 + $0xa8] sm:$0xff] }
 0x139   :  { %v1812_v60 = vpop.f32.mrb[5].mxu1  ;;  %v722_v56 = vld [vmem:[#allocation7 + $0xe8] sm:$0xff] }
 0x13a   :  { %v1813_v61 = vadd.f32 %v1812_v60, %v1811_v57  ;;  %v342_v62 = vadd.f32 %v1757_v59, %v1716_v40  ;;  %v1758_v63 = vpop.f32.mrb[6].mxu0  ;;  %v716_v57 = vld [vmem:[#allocation7 + $0xb8] sm:$0xff] }
 0x13b   :  { %v1759_v0 = vpop.f32.mrb[7].mxu0  ;;  %v724_v59 = vld [vmem:[#allocation7 + $0xf8] sm:$0xff] }
 0x13c   :  { %v1814_v1 = vpop.f32.mrb[6].mxu1  ;;  %v2453_v2 = vadd.f32 %v1813_v61, %v342_v62  ;;  %v1760_v3 = vadd.f32 %v1759_v0, %v1758_v63  ;;  %v2135_v61 = vpack.c.bf16 %v705_v48, %v697_v44  ;;  %v2167_v62 = vpack.c.bf16 %v707_v51, %v699_v49  ;;  %v713_v63 = vld [vmem:[#allocation7 + $0xa0] sm:$0xff]  ;;  %v747_v49 = vld [vmem:[#allocation7 + $0x1b0] sm:$0xff] }
 0x13d   :  { %v1815_v4 = vpop.f32.mrb[7].mxu1  ;;  %v745_v44 = vld [vmem:[#allocation7 + $0x1a0] sm:$0xff]  ;;  %v755_v51 = vld [vmem:[#allocation7 + $0x1f0] sm:$0xff] }
 0x13e   :  { %v1816_v5 = vadd.f32 %v1815_v4, %v1814_v1  ;;  %v347_v6 = vadd.f32 %v1760_v3, %v1716_v40  ;;  %v1761_v7 = vpop.f32.mrb[8].mxu0  ;;  %v721_v4 = vld [vmem:[#allocation7 + $0xe0] sm:$0xff] }
 0x13f   :  { %v1762_v8 = vpop.f32.mrb[9].mxu0 }
 0x140   :  { %v1817_v9 = vpop.f32.mrb[8].mxu1  ;;  %v2455_v10 = vadd.f32 %v1816_v5, %v347_v6  ;;  %v1763_v11 = vadd.f32 %v1762_v8, %v1761_v7  ;;  %v715_v5 = vld [vmem:[#allocation7 + $0xb0] sm:$0xff]  ;;  %v2137_v8 = vpack.c.bf16 %v722_v56, %v714_v53 }
 0x141   :  { %v1818_v12 = vpop.f32.mrb[9].mxu1  ;;  %v723_v6 = vld [vmem:[#allocation7 + $0xf0] sm:$0xff] }
 0x142   :  { %v1819_v13 = vadd.f32 %v1818_v12, %v1817_v9  ;;  %v352_v14 = vadd.f32 %v1763_v11, %v1716_v40  ;;  %v1764_v15 = vpop.f32.mrb[10].mxu0  ;;  %v2169_v9 = vpack.c.bf16 %v724_v59, %v716_v57  ;;  %v770_v59 = vld [vmem:[#allocation7 + $0x268] sm:$0xff] }
 0x143   :  { %v1765_v16 = vpop.f32.mrb[11].mxu0 }
 0x144   :  { %v1820_v17 = vpop.f32.mrb[10].mxu1  ;;  %v2457_v18 = vadd.f32 %v1819_v13, %v352_v14  ;;  %v1766_v19 = vadd.f32 %v1765_v16, %v1764_v15  ;;  %v738_v13 = vld [vmem:[#allocation7 + $0x168] sm:$0xff]  ;;  %v732_v14 = vld [vmem:[#allocation7 + $0x138] sm:$0xff] }
 0x145   :  { %v1821_v20 = vpop.f32.mrb[11].mxu1  ;;  %v740_v15 = vld [vmem:[#allocation7 + $0x178] sm:$0xff] }
 0x146   :  { %v1822_v21 = vadd.f32 %v1821_v20, %v1820_v17  ;;  %v357_v22 = vadd.f32 %v1766_v19, %v1716_v40  ;;  %v1767_v23 = vpop.f32.mrb[12].mxu0  ;;  %v2139_v19 = vpack.c.bf16 %v721_v4, %v713_v63  ;;  %v2171_v20 = vpack.c.bf16 %v723_v6, %v715_v5 }
 0x147   :  { %v1768_v24 = vpop.f32.mrb[13].mxu0 }
 0x148   :  { %v1823_v25 = vpop.f32.mrb[12].mxu1  ;;  %v2459_v26 = vadd.f32 %v1822_v21, %v357_v22  ;;  %v1769_v27 = vadd.f32 %v1768_v24, %v1767_v23  ;;  %v729_v21 = vld [vmem:[#allocation7 + $0x120] sm:$0xff] }
 0x149   :  { %v1824_v28 = vpop.f32.mrb[13].mxu1 }
 0x14a   :  { %v1825_v29 = vadd.f32 %v1824_v28, %v1823_v25  ;;  %v362_v30 = vadd.f32 %v1769_v27, %v1716_v40  ;;  %v1770_v31 = vpop.f32.mrb[14].mxu0  ;;  %v731_v25 = vld [vmem:[#allocation7 + $0x130] sm:$0xff] }
 0x14b   :  { %v1771_v32 = vpop.f32.mrb[15].mxu0  ;;  %v739_v27 = vld [vmem:[#allocation7 + $0x170] sm:$0xff] }
 0x14c   :  { %v1826_v33 = vpop.f32.mrb[14].mxu1  ;;  %v2461_v34 = vadd.f32 %v1825_v29, %v362_v30  ;;  %v1772_v35 = vadd.f32 %v1771_v32, %v1770_v31  ;;  %v2173_v30 = vpack.c.bf16 %v740_v15, %v732_v14  ;;  %v746_v31 = vld [vmem:[#allocation7 + $0x1a8] sm:$0xff] }
 0x14d   :  { %v1827_v36 = vpop.f32.mrb[15].mxu1  ;;  %v786_v15 = vld [vmem:[#allocation7 + $0x2e8] sm:$0xff] }
 0x14e   :  { %v1828_v38 = vadd.f32 %v1827_v36, %v1826_v33  ;;  %v367_v39 = vadd.f32 %v1772_v35, %v1716_v40  ;;  %v1861_v41 = vpop.f32.mrb[16].mxu0  ;;  %v754_v35 = vld [vmem:[#allocation7 + $0x1e8] sm:$0xff]  ;;  %v748_v36 = vld [vmem:[#allocation7 + $0x1b8] sm:$0xff] }
 0x14f   :  { %v1862_v42 = vpop.f32.mrb[17].mxu0  ;;  %v2145_v53 = vpack.c.bf16 %v754_v35, %v746_v31 }
 0x150   :  { %v1917_v43 = vpop.f32.mrb[16].mxu1  ;;  %v2463_v45 = vadd.f32 %v1828_v38, %v367_v39  ;;  %v1863_v46 = vadd.f32 %v1862_v42, %v1861_v41  ;;  %v756_v38 = vld [vmem:[#allocation7 + $0x1f8] sm:$0xff] }
 0x151   :  { %v1918_v47 = vpop.f32.mrb[17].mxu1 }
 0x152   :  { %v1919_v52 = vadd.f32 %v1918_v47, %v1917_v43  ;;  %v542_v54 = vadd.f32 %v1863_v46, %v2449_v50  ;;  %v1864_v55 = vpop.f32.mrb[18].mxu0  ;;  %v730_v50 = vld [vmem:[#allocation7 + $0x128] sm:$0xff]  ;;  %v2175_v43 = vpack.c.bf16 %v739_v27, %v731_v25 }
 0x153   :  { %v1865_v40 = vpop.f32.mrb[19].mxu0  ;;  %v2141_v29 = vpack.c.bf16 %v738_v13, %v730_v50 }
 0x154   :  { %v1920_v60 = vpop.f32.mrb[18].mxu1  ;;  %v2466_v0 = vadd.f32 %v1919_v52, %v542_v54  ;;  %v1866_v1 = vadd.f32 %v1865_v40, %v1864_v55  ;;  %v2177_v54 = vpack.c.bf16 %v756_v38, %v748_v36  ;;  %v762_v55 = vld [vmem:[#allocation7 + $0x228] sm:$0xff]  ;;  %v764_v40 = vld [vmem:[#allocation7 + $0x238] sm:$0xff] }
 0x155   :  { %v1921_v3 = vpop.f32.mrb[19].mxu1  ;;  %v2149_v50 = vpack.c.bf16 %v770_v59, %v762_v55  ;;  %v802_v38 = vld [vmem:[#allocation7 + $0x368] sm:$0xff] }
 0x156   :  { %v1922_v7 = vadd.f32 %v1921_v3, %v1920_v60  ;;  %685 = vst [vmem:[#allocation8] sm:$0xff] %v2466_v0  ;;  %v547_v11 = vadd.f32 %v1866_v1, %v2451_v58  ;;  %v1867_v12 = vpop.f32.mrb[20].mxu0  ;;  %928 = vmatmul.mubr.f32.vlgmr.msra.gmra.mrb[32].mxu0 %v2466_v0  ;;  %1041 = vmatmul.mubr.f32.vlgmr.msra.gmra.mrb[32].mxu1 %v2466_v0  ;;  %v737_v58 = vld [vmem:[#allocation7 + $0x160] sm:$0xff]  ;;  %v772_v60 = vld [vmem:[#allocation7 + $0x278] sm:$0xff] }
 0x157   :  { %v1868_v16 = vpop.f32.mrb[21].mxu0  ;;  %2136 = vmatpush1.bf16.msra.mxu0 %v2135_v61  ;;  %2168 = vmatpush1.bf16.msra.mxu1 %v2167_v62  ;;  %v2143_v42 = vpack.c.bf16 %v737_v58, %v729_v21  ;;  %v2179_v1 = vpack.c.bf16 %v755_v51, %v747_v49  ;;  %v761_v3 = vld [vmem:[#allocation7 + $0x220] sm:$0xff] }
 0x158   :  { %v1923_v17 = vpop.f32.mrb[20].mxu1  ;;  %v2472_v22 = vadd.f32 %v1922_v7, %v547_v11  ;;  %v1869_v23 = vadd.f32 %v1868_v16, %v1867_v12  ;;  %933 = vmatprep.mubr.f32.mxu0 %v2355_v37  ;;  %1046 = vmatprep.mubr.f32.mxu1 %v2355_v37  ;;  %v763_v7 = vld [vmem:[#allocation7 + $0x230] sm:$0xff]  ;;  %v2181_v11 = vpack.c.bf16 %v772_v60, %v764_v40  ;;  %v778_v12 = vld [vmem:[#allocation7 + $0x2a8] sm:$0xff]  ;;  %v780_v16 = vld [vmem:[#allocation7 + $0x2b8] sm:$0xff] }
 0x159   :  { %v1924_v24 = vpop.f32.mrb[21].mxu1  ;;  %2138 = vmatprep.subr.bf16.mxu0 %v2137_v8  ;;  %2170 = vmatprep.subr.bf16.mxu1 %v2169_v9  ;;  %v771_v8 = vld [vmem:[#allocation7 + $0x270] sm:$0xff]  ;;  %v2153_v31 = vpack.c.bf16 %v786_v15, %v778_v12  ;;  %v818_v60 = vld [vmem:[#allocation7 + $0x3e8] sm:$0xff] }
 0x15a   :  { %v1925_v28 = vadd.f32 %v1924_v24, %v1923_v17  ;;  %686 = vst [vmem:[#allocation8 + $0x8] sm:$0xff] %v2472_v22  ;;  %v552_v32 = vadd.f32 %v1869_v23, %v2453_v2  ;;  %v1870_v33 = vpop.f32.mrb[22].mxu0  ;;  %934 = vmatmul.mubr.f32.gmra.mrb[34].mxu0 %v2472_v22  ;;  %1047 = vmatmul.mubr.f32.gmra.mrb[34].mxu1 %v2472_v22  ;;  %v753_v2 = vld [vmem:[#allocation7 + $0x1e0] sm:$0xff]  ;;  %v788_v17 = vld [vmem:[#allocation7 + $0x2f8] sm:$0xff] }
 0x15b   :  { %v1871_v39 = vpop.f32.mrb[23].mxu0  ;;  %2140 = vmatpush1.bf16.msra.mxu0 %v2139_v19  ;;  %2172 = vmatpush1.bf16.msra.mxu1 %v2171_v20  ;;  %v2147_v63 = vpack.c.bf16 %v753_v2, %v745_v44  ;;  %v2183_v23 = vpack.c.bf16 %v771_v8, %v763_v7  ;;  %v777_v24 = vld [vmem:[#allocation7 + $0x2a0] sm:$0xff] }
 0x15c   :  { %v1926_v41 = vpop.f32.mrb[22].mxu1  ;;  %v2480_v46 = vadd.f32 %v1925_v28, %v552_v32  ;;  %v1872_v47 = vadd.f32 %v1871_v39, %v1870_v33  ;;  %939 = vmatprep.mubr.f32.mxu0 %v2355_v37  ;;  %1052 = vmatprep.mubr.f32.mxu1 %v2355_v37  ;;  %v779_v28 = vld [vmem:[#allocation7 + $0x2b0] sm:$0xff]  ;;  %v2185_v32 = vpack.c.bf16 %v788_v17, %v780_v16  ;;  %v794_v33 = vld [vmem:[#allocation7 + $0x328] sm:$0xff]  ;;  %v796_v39 = vld [vmem:[#allocation7 + $0x338] sm:$0xff] }
 0x15d   :  { %v1927_v48 = vpop.f32.mrb[23].mxu1  ;;  %2142 = vmatprep.subr.bf16.mxu0 %v2141_v29  ;;  %2174 = vmatprep.subr.bf16.mxu1 %v2173_v30  ;;  %v787_v29 = vld [vmem:[#allocation7 + $0x2f0] sm:$0xff]  ;;  %v2157_v55 = vpack.c.bf16 %v802_v38, %v794_v33  ;;  %v1382_v38 = vld [vmem:[#allocation2 + $0x18] sm:$0xff] }
 0x15e   :  { %v1928_v52 = vadd.f32 %v1927_v48, %v1926_v41  ;;  %687 = vst [vmem:[#allocation8 + $0x10] sm:$0xff] %v2480_v46  ;;  %v557_v56 = vadd.f32 %v1872_v47, %v2455_v10  ;;  %v1873_v57 = vpop.f32.mrb[24].mxu0  ;;  %940 = vmatmul.mubr.f32.gmra.mrb[36].mxu0 %v2480_v46  ;;  %1053 = vmatmul.mubr.f32.gmra.mrb[36].mxu1 %v2480_v46  ;;  %v769_v10 = vld [vmem:[#allocation7 + $0x260] sm:$0xff]  ;;  %v804_v41 = vld [vmem:[#allocation7 + $0x378] sm:$0xff] }
 0x15f   :  { %v1874_v61 = vpop.f32.mrb[25].mxu0  ;;  %2144 = vmatpush1.bf16.msra.mxu0 %v2143_v42  ;;  %2176 = vmatpush1.bf16.msra.mxu1 %v2175_v43  ;;  %v2151_v21 = vpack.c.bf16 %v769_v10, %v761_v3  ;;  %v2187_v47 = vpack.c.bf16 %v787_v29, %v779_v28  ;;  %v793_v48 = vld [vmem:[#allocation7 + $0x320] sm:$0xff]  ;;  %v1381_v29 = vld [vmem:[#allocation2 + $0x10] sm:$0xff] }
 0x160   :  { %v1929_v62 = vpop.f32.mrb[24].mxu1  ;;  %v2488_v4 = vadd.f32 %v1928_v52, %v557_v56  ;;  %v1875_v5 = vadd.f32 %v1874_v61, %v1873_v57  ;;  %945 = vmatprep.mubr.f32.mxu0 %v2355_v37  ;;  %1058 = vmatprep.mubr.f32.mxu1 %v2355_v37  ;;  %v795_v52 = vld [vmem:[#allocation7 + $0x330] sm:$0xff]  ;;  %v2189_v56 = vpack.c.bf16 %v804_v41, %v796_v39  ;;  %v810_v57 = vld [vmem:[#allocation7 + $0x3a8] sm:$0xff]  ;;  %v812_v61 = vld [vmem:[#allocation7 + $0x3b8] sm:$0xff] }
 0x161   :  { %v1930_v6 = vpop.f32.mrb[25].mxu1  ;;  %2146 = vmatprep.subr.bf16.mxu0 %v2145_v53  ;;  %2178 = vmatprep.subr.bf16.mxu1 %v2177_v54  ;;  %v803_v53 = vld [vmem:[#allocation7 + $0x370] sm:$0xff]  ;;  %v2161_v12 = vpack.c.bf16 %v818_v60, %v810_v57  ;;  %v1390_v57 = vld [vmem:[#allocation2 + $0x58] sm:$0xff] }
 0x162   :  { %v1931_v9 = vadd.f32 %v1930_v6, %v1929_v62  ;;  %688 = vst [vmem:[#allocation8 + $0x18] sm:$0xff] %v2488_v4  ;;  %v562_v13 = vadd.f32 %v1875_v5, %v2457_v18  ;;  %v1876_v14 = vpop.f32.mrb[26].mxu0  ;;  %946 = vmatmul.mubr.f32.gmra.mrb[38].mxu0 %v2488_v4  ;;  %1059 = vmatmul.mubr.f32.gmra.mrb[38].mxu1 %v2488_v4  ;;  %v785_v18 = vld [vmem:[#allocation7 + $0x2e0] sm:$0xff]  ;;  %v820_v62 = vld [vmem:[#allocation7 + $0x3f8] sm:$0xff] }
 0x163   :  { %v1877_v19 = vpop.f32.mrb[27].mxu0  ;;  %2148 = vmatpush1.bf16.msra.mxu0 %v2147_v63  ;;  %2180 = vmatpush1.bf16.msra.mxu1 %v2179_v1  ;;  %v2155_v44 = vpack.c.bf16 %v785_v18, %v777_v24  ;;  %v2191_v5 = vpack.c.bf16 %v803_v53, %v795_v52  ;;  %v809_v6 = vld [vmem:[#allocation7 + $0x3a0] sm:$0xff] }
 0x164   :  { %v1932_v20 = vpop.f32.mrb[26].mxu1  ;;  %v2496_v58 = vadd.f32 %v1931_v9, %v562_v13  ;;  %v1878_v25 = vadd.f32 %v1877_v19, %v1876_v14  ;;  %951 = vmatprep.mubr.f32.mxu0 %v2355_v37  ;;  %1064 = vmatprep.mubr.f32.mxu1 %v2355_v37  ;;  %v811_v9 = vld [vmem:[#allocation7 + $0x3b0] sm:$0xff]  ;;  %v2193_v13 = vpack.c.bf16 %v820_v62, %v812_v61 }
 0x165   :  { %v1933_v27 = vpop.f32.mrb[27].mxu1  ;;  %2150 = vmatprep.subr.bf16.mxu0 %v2149_v50  ;;  %2182 = vmatprep.subr.bf16.mxu1 %v2181_v11  ;;  %v819_v50 = vld [vmem:[#allocation7 + $0x3f0] sm:$0xff] }
 0x166   :  { %v1934_v30 = vadd.f32 %v1933_v27, %v1932_v20  ;;  %689 = vst [vmem:[#allocation8 + $0x20] sm:$0xff] %v2496_v58  ;;  %v567_v35 = vadd.f32 %v1878_v25, %v2459_v26  ;;  %v1879_v36 = vpop.f32.mrb[28].mxu0  ;;  %952 = vmatmul.mubr.f32.gmra.mrb[40].mxu0 %v2496_v58  ;;  %1065 = vmatmul.mubr.f32.gmra.mrb[40].mxu1 %v2496_v58  ;;  %v801_v26 = vld [vmem:[#allocation7 + $0x360] sm:$0xff] }
 0x167   :  { %v1880_v42 = vpop.f32.mrb[29].mxu0  ;;  %2152 = vmatpush1.bf16.msra.mxu0 %v2151_v21  ;;  %2184 = vmatpush1.bf16.msra.mxu1 %v2183_v23  ;;  %v2159_v3 = vpack.c.bf16 %v801_v26, %v793_v48  ;;  %v2195_v16 = vpack.c.bf16 %v819_v50, %v811_v9  ;;  %v1379_v25 = vld [vmem:[#allocation2] sm:$0xff]  ;;  %v1388_v26 = vld [vmem:[#allocation2 + $0x48] sm:$0xff] }
 0x168   :  { %v1935_v43 = vpop.f32.mrb[28].mxu1  ;;  %v2504_v2 = vadd.f32 %v1934_v30, %v567_v35  ;;  %v1881_v49 = vadd.f32 %v1880_v42, %v1879_v36  ;;  %957 = vmatprep.mubr.f32.mxu0 %v2355_v37  ;;  %1070 = vmatprep.mubr.f32.mxu1 %v2355_v37 }
 0x169   :  { %v1936_v51 = vpop.f32.mrb[29].mxu1  ;;  %2154 = vmatprep.subr.bf16.mxu0 %v2153_v31  ;;  %2186 = vmatprep.subr.bf16.mxu1 %v2185_v32  ;;  %v1380_v31 = vld [vmem:[#allocation2 + $0x8] sm:$0xff] }
 0x16a   :  { %v1937_v54 = vadd.f32 %v1936_v51, %v1935_v43  ;;  %690 = vst [vmem:[#allocation8 + $0x28] sm:$0xff] %v2504_v2  ;;  %v572_v59 = vadd.f32 %v1881_v49, %v2461_v34  ;;  %v1882_v40 = vpop.f32.mrb[30].mxu0  ;;  %958 = vmatmul.mubr.f32.gmra.mrb[42].mxu0 %v2504_v2  ;;  %1071 = vmatmul.mubr.f32.gmra.mrb[42].mxu1 %v2504_v2  ;;  %v817_v34 = vld [vmem:[#allocation7 + $0x3e0] sm:$0xff]  ;;  %v1389_v49 = vld [vmem:[#allocation2 + $0x50] sm:$0xff] }
 0x16b   :  { %v1883_v63 = vpop.f32.mrb[31].mxu0  ;;  %2156 = vmatpush1.bf16.msra.mxu0 %v2155_v44  ;;  %2188 = vmatpush1.bf16.msra.mxu1 %v2187_v47  ;;  %v2163_v15 = vpack.c.bf16 %v817_v34, %v809_v6  ;;  %v1387_v43 = vld [vmem:[#allocation2 + $0x40] sm:$0xff] }
 0x16c   :  { %v1938_v1 = vpop.f32.mrb[30].mxu1  ;;  %v677_v10 = vadd.f32 %v1937_v54, %v572_v59  ;;  %v1884_v7 = vadd.f32 %v1883_v63, %v1882_v40  ;;  %963 = vmatprep.mubr.f32.mxu0 %v2355_v37  ;;  %1076 = vmatprep.mubr.f32.mxu1 %v2355_v37 }
 0x16d   :  { %v1939_v8 = vpop.f32.mrb[31].mxu1  ;;  %2158 = vmatprep.subr.bf16.mxu0 %v2157_v55  ;;  %2190 = vmatprep.subr.bf16.mxu1 %v2189_v56 }
 0x16e   :  { %v1940_v11 = vadd.f32 %v1939_v8, %v1938_v1  ;;  %691 = vst [vmem:[#allocation8 + $0x30] sm:$0xff] %v677_v10  ;;  %v577_v14 = vadd.f32 %v1884_v7, %v2463_v45  ;;  %964 = vmatmul.mubr.f32.gmra.mrb[44].mxu0 %v677_v10  ;;  %1077 = vmatmul.mubr.f32.gmra.mrb[44].mxu1 %v677_v10  ;;  %v823_v45 = vlaneseq }
 0x16f   :  { %2160 = vmatpush1.bf16.msra.mxu0 %v2159_v3  ;;  %2192 = vmatpush1.bf16.msra.mxu1 %v2191_v5  ;;  %v1395_v5 = vld [vmem:[#allocation2 + $0x80] sm:$0xff] }
 0x170   :  { %v682_v17 = vadd.f32 %v1940_v11, %v577_v14  ;;  %969 = vmatprep.mubr.f32.mxu0 %v2355_v37  ;;  %1082 = vmatprep.mubr.f32.mxu1 %v2355_v37  ;;  %v1396_v11 = vld [vmem:[#allocation2 + $0x88] sm:$0xff] }
 0x171   :  { %2162 = vmatprep.subr.bf16.mxu0 %v2161_v12  ;;  %2194 = vmatprep.subr.bf16.mxu1 %v2193_v13 }
 0x172   :  { %692 = vst [vmem:[#allocation8 + $0x38] sm:$0xff] %v682_v17  ;;  %970 = vmatmul.mubr.f32.gmra.mrb[46].mxu0 %v682_v17  ;;  %1083 = vmatmul.mubr.f32.gmra.mrb[46].mxu1 %v682_v17 }
 0x173   :  { %2164 = vmatpush1.bf16.msra.mxu0 %v2163_v15  ;;  %2196 = vmatpush1.bf16.msra.mxu1 %v2195_v16 }
 0x174   :  { %1153 = vmatprep.mubr.f32.mxu0 %v2355_v37  ;;  %1266 = vmatprep.mubr.f32.mxu1 %v2355_v37 }
 0x176   :  { %1154 = vmatmul.mubr.f32.vlgmr.msra.gmra.mrb[48].mxu0 %v2466_v0  ;;  %1267 = vmatmul.mubr.f32.vlgmr.msra.gmra.mrb[48].mxu1 %v2466_v0  ;;  %v2545_v0 = vshrl.u32 %v823_v45, 7 }
 0x177   :  { %1159 = vmatprep.mubr.f32.mxu0 %v2355_v37  ;;  %1272 = vmatprep.mubr.f32.mxu1 %v2355_v37 }
 0x178   :  { %v829_v19 = vsub.s32 1, %v2545_v0  ;;  %v837_v20 = vsub.s32 3, %v2545_v0  ;;  %v841_v40 = vsub.s32 4, %v2545_v0  ;;  %v849_v60 = vsub.s32 6, %v2545_v0 }
 0x17a   :  { %1160 = vmatmul.mubr.f32.gmra.mrb[50].mxu0 %v2472_v22  ;;  %1273 = vmatmul.mubr.f32.gmra.mrb[50].mxu1 %v2472_v22  ;;  %v825_v22 = vsub.s32 0, %v2545_v0 }
 0x17b   :  { %1165 = vmatprep.mubr.f32.mxu0 %v2355_v37  ;;  %1278 = vmatprep.mubr.f32.mxu1 %v2355_v37 }
 0x17e   :  { %1166 = vmatmul.mubr.f32.gmra.mrb[52].mxu0 %v2480_v46  ;;  %1279 = vmatmul.mubr.f32.gmra.mrb[52].mxu1 %v2480_v46  ;;  %v833_v46 = vsub.s32 2, %v2545_v0 }
 0x17f   :  { %1171 = vmatprep.mubr.f32.mxu0 %v2355_v37  ;;  %1284 = vmatprep.mubr.f32.mxu1 %v2355_v37 }
 0x182   :  { %1172 = vmatmul.mubr.f32.gmra.mrb[54].mxu0 %v2488_v4  ;;  %1285 = vmatmul.mubr.f32.gmra.mrb[54].mxu1 %v2488_v4  ;;  %v2552_v4 = vld [vmem:[%s2736_s4] sm:$0xff]  ;;  %s2356_s4 = smov [#allocation9]  }
 0x183   :  { %1177 = vmatprep.mubr.f32.mxu0 %v2355_v37  ;;  %1290 = vmatprep.mubr.f32.mxu1 %v2355_v37  ;;  %v2560_v21 = vrot.slane %v2552_v4, %v833_v46  ;;  %v2563_v23 = vrot.slane %v2552_v4, %v829_v19  ;;  %v2566_v24 = vrot.slane %v2552_v4, %v837_v20  ;;  %v845_v19 = vsub.s32 5, %v2545_v0  ;;  %s1684_s20 = sshll.u32 %s2356_s4, 4  ;;  %s1685_s20 = int_to_ptr.vmem [resolvable:$true] %s1684_s20 }
 0x184   :  { %s2274_s23 = scalar_lea.vmem %s1685_s20, 8192  ;;  %p2279_p11 = scmp.lt.s32.totalorder %s1685_s20, %s1685_s20 }
 0x185   :  { %p2275_p10 = scmp.ne.s32.totalorder %s1685_s20, %s2274_s23  ;;  %p2280_p12 = scmp.lt.s32.totalorder %s2274_s23, %s2274_s23 }
 0x186   :  { %1178 = vmatmul.mubr.f32.gmra.mrb[56].mxu0 %v2496_v58  ;;  %1291 = vmatmul.mubr.f32.gmra.mrb[56].mxu1 %v2496_v58 }
 0x187   :  { %1183 = vmatprep.mubr.f32.mxu0 %v2355_v37  ;;  %1296 = vmatprep.mubr.f32.mxu1 %v2355_v37  ;;  %p2281_p13 = por %p2280_p12, %p2279_p11 }
 0x189   :  { %p2282_p0 = pnand %p2281_p13, %p2275_p10 }
 0x18a   :  { %1184 = vmatmul.mubr.f32.gmra.mrb[58].mxu0 %v2504_v2  ;;  %1297 = vmatmul.mubr.f32.gmra.mrb[58].mxu1 %v2504_v2 }
 0x18b   :  { %1189 = vmatprep.mubr.f32.mxu0 %v2355_v37  ;;  %1302 = vmatprep.mubr.f32.mxu1 %v2355_v37 }
 0x18e   :  { %1190 = vmatmul.mubr.f32.gmra.mrb[60].mxu0 %v677_v10  ;;  %1303 = vmatmul.mubr.f32.gmra.mrb[60].mxu1 %v677_v10  ;;  %v1397_v10 = vld [vmem:[#allocation2 + $0x90] sm:$0xff] }
 0x18f   :  { %1195 = vmatprep.mubr.f32.mxu0 %v2355_v37  ;;  %1308 = vmatprep.mubr.f32.mxu1 %v2355_v37  ;;  %v2557_v37 = vrot.slane %v2552_v4, %v825_v22 }
 0x192   :  { %1196 = vmatmul.mubr.f32.gmra.mrb[62].mxu0 %v682_v17  ;;  %1309 = vmatmul.mubr.f32.gmra.mrb[62].mxu1 %v682_v17  ;;  %v1398_v17 = vld [vmem:[#allocation2 + $0x98] sm:$0xff] }
 0x229   :  { %v929_v58 = vpop.f32.mrb[32].mxu0  ;;  %v1042_v27 = vpop.f32.mrb[32].mxu1 }
 0x22a   :  { %v930_v18 = vadd.f32 %v929_v58, %v2557_v37  ;;  %v1043_v28 = vadd.f32 %v1042_v27, %v2560_v21  ;;  %v931_v30 = vpop.f32.mrb[33].mxu0  ;;  %v1044_v32 = vpop.f32.mrb[33].mxu1 }
 0x22b   :  { %v932_v33 = vadd.f32 %v931_v30, %v2563_v23  ;;  %v1045_v35 = vadd.f32 %v1044_v32, %v2566_v24 }
 0x22c   :  { %1315 = vst [vmem:[#allocation9] sm:$0xff] %v930_v18  ;;  %v1443_v36 = vsub.f32 %v1379_v25, %v930_v18  ;;  %1317 = vst [vmem:[#allocation9 + $0x10] sm:$0xff] %v1043_v28  ;;  %v1445_v39 = vsub.f32 %v1381_v29, %v1043_v28  ;;  %v1403_v28 = vld [vmem:[#allocation2 + $0xc0] sm:$0xff] }
 0x22d   :  { %1316 = vst [vmem:[#allocation9 + $0x8] sm:$0xff] %v932_v33  ;;  %v1444_v41 = vsub.f32 %v1380_v31, %v932_v33  ;;  %1318 = vst [vmem:[#allocation9 + $0x18] sm:$0xff] %v1045_v35  ;;  %v935_v42 = vpop.f32.mrb[34].mxu0  ;;  %v1048_v44 = vpop.f32.mrb[34].mxu1  ;;  %v1446_v54 = vsub.f32 %v1382_v38, %v1045_v35  ;;  %v1405_v35 = vld [vmem:[#allocation2 + $0xd0] sm:$0xff]  ;;  %v1404_v38 = vld [vmem:[#allocation2 + $0xc8] sm:$0xff] }
 0x22e   :  { %v1507_v47 = vmul.f32 %v1443_v36, %v1443_v36  ;;  %v936_v48 = vadd.f32 %v935_v42, %v2557_v37  ;;  %v1049_v2 = vadd.f32 %v1048_v44, %v2560_v21  ;;  %v937_v51 = vpop.f32.mrb[35].mxu0  ;;  %v1050_v52 = vpop.f32.mrb[35].mxu1  ;;  %v1509_v61 = vmul.f32 %v1445_v39, %v1445_v39 }
 0x22f   :  { %v1508_v53 = vmul.f32 %v1444_v41, %v1444_v41  ;;  %v938_v55 = vadd.f32 %v937_v51, %v2563_v23  ;;  %v1051_v56 = vadd.f32 %v1050_v52, %v2566_v24  ;;  %v1510_v13 = vmul.f32 %v1446_v54, %v1446_v54 }
 0x230   :  { %1323 = vst [vmem:[#allocation9 + $0x40] sm:$0xff] %v936_v48  ;;  %v1451_v59 = vsub.f32 %v1387_v43, %v936_v48  ;;  %1325 = vst [vmem:[#allocation9 + $0x50] sm:$0xff] %v1049_v2  ;;  %v1453_v63 = vsub.f32 %v1389_v49, %v1049_v2  ;;  %v853_v51 = vsub.s32 7, %v2545_v0 }
 0x231   :  { %v1571_v62 = vadd.f32 %v1508_v53, %v1507_v47  ;;  %1324 = vst [vmem:[#allocation9 + $0x48] sm:$0xff] %v938_v55  ;;  %v1452_v1 = vsub.f32 %v1388_v26, %v938_v55  ;;  %1326 = vst [vmem:[#allocation9 + $0x58] sm:$0xff] %v1051_v56  ;;  %v941_v3 = vpop.f32.mrb[36].mxu0  ;;  %v1054_v6 = vpop.f32.mrb[36].mxu1  ;;  %v1454_v8 = vsub.f32 %v1390_v57, %v1051_v56  ;;  %v1406_v47 = vld [vmem:[#allocation2 + $0xd8] sm:$0xff]  ;;  %v1411_v56 = vld [vmem:[#allocation2 + $0x100] sm:$0xff] }
 0x232   :  { %v1515_v7 = vmul.f32 %v1451_v59, %v1451_v59  ;;  %v942_v34 = vadd.f32 %v941_v3, %v2557_v37  ;;  %v1055_v9 = vadd.f32 %v1054_v6, %v2560_v21  ;;  %v943_v50 = vpop.f32.mrb[37].mxu0  ;;  %v1056_v12 = vpop.f32.mrb[37].mxu1  ;;  %v1517_v58 = vmul.f32 %v1453_v63, %v1453_v63  ;;  %v1413_v59 = vld [vmem:[#allocation2 + $0x110] sm:$0xff] }
 0x233   :  { %v1572_v14 = vadd.f32 %v1571_v62, %v1509_v61  ;;  %v1516_v15 = vmul.f32 %v1452_v1, %v1452_v1  ;;  %v944_v16 = vadd.f32 %v943_v50, %v2563_v23  ;;  %v1057_v46 = vadd.f32 %v1056_v12, %v2566_v24 }
 0x234   :  { %1331 = vst [vmem:[#allocation9 + $0x80] sm:$0xff] %v942_v34  ;;  %v1459_v45 = vsub.f32 %v1395_v5, %v942_v34  ;;  %1333 = vst [vmem:[#allocation9 + $0x90] sm:$0xff] %v1055_v9  ;;  %v1461_v22 = vsub.f32 %v1397_v10, %v1055_v9  ;;  %v1518_v30 = vmul.f32 %v1454_v8, %v1454_v8  ;;  %v1412_v5 = vld [vmem:[#allocation2 + $0x108] sm:$0xff]  ;;  %v1414_v9 = vld [vmem:[#allocation2 + $0x118] sm:$0xff] }
 0x235   :  { %v2583_v20 = vadd.f32 %v1572_v14, %v1510_v13  ;;  %v1580_v25 = vadd.f32 %v1516_v15, %v1515_v7  ;;  %1332 = vst [vmem:[#allocation9 + $0x88] sm:$0xff] %v944_v16  ;;  %v1460_v27 = vsub.f32 %v1396_v11, %v944_v16  ;;  %v947_v18 = vpop.f32.mrb[38].mxu0  ;;  %v1060_v29 = vpop.f32.mrb[38].mxu1  ;;  %1334 = vst [vmem:[#allocation9 + $0x98] sm:$0xff] %v1057_v46 }
 0x236   :  { %v1523_v31 = vmul.f32 %v1459_v45, %v1459_v45  ;;  %v1462_v32 = vsub.f32 %v1398_v17, %v1057_v46  ;;  %v948_v33 = vadd.f32 %v947_v18, %v2557_v37  ;;  %v949_v36 = vpop.f32.mrb[39].mxu0  ;;  %v1062_v39 = vpop.f32.mrb[39].mxu1  ;;  %v1061_v43 = vadd.f32 %v1060_v29, %v2560_v21 }
 0x237   :  { %v1581_v41 = vadd.f32 %v1580_v25, %v1517_v58  ;;  %v1524_v42 = vmul.f32 %v1460_v27, %v1460_v27  ;;  %v950_v44 = vadd.f32 %v949_v36, %v2563_v23  ;;  %v1525_v48 = vmul.f32 %v1461_v22, %v1461_v22  ;;  %v1419_v22 = vld [vmem:[#allocation2 + $0x140] sm:$0xff]  ;;  %v1422_v36 = vld [vmem:[#allocation2 + $0x158] sm:$0xff] }
 0x238   :  { %1339 = vst [vmem:[#allocation9 + $0xc0] sm:$0xff] %v948_v33  ;;  %v1467_v2 = vsub.f32 %v1403_v28, %v948_v33  ;;  %v1063_v49 = vadd.f32 %v1062_v39, %v2566_v24  ;;  %1341 = vst [vmem:[#allocation9 + $0xd0] sm:$0xff] %v1061_v43  ;;  %v1469_v53 = vsub.f32 %v1405_v35, %v1061_v43  ;;  %v1421_v28 = vld [vmem:[#allocation2 + $0x150] sm:$0xff] }
 0x239   :  { %v2590_v26 = vadd.f32 %v1581_v41, %v1518_v30  ;;  %v1589_v52 = vadd.f32 %v1524_v42, %v1523_v31  ;;  %1340 = vst [vmem:[#allocation9 + $0xc8] sm:$0xff] %v950_v44  ;;  %v1468_v54 = vsub.f32 %v1404_v38, %v950_v44  ;;  %v953_v55 = vpop.f32.mrb[40].mxu0  ;;  %v1066_v57 = vpop.f32.mrb[40].mxu1  ;;  %v1526_v10 = vmul.f32 %v1462_v32, %v1462_v32  ;;  %v1420_v30 = vld [vmem:[#allocation2 + $0x148] sm:$0xff] }
 0x23a   :  { %v1531_v61 = vmul.f32 %v1467_v2, %v1467_v2  ;;  %1342 = vst [vmem:[#allocation9 + $0xd8] sm:$0xff] %v1063_v49  ;;  %v1470_v62 = vsub.f32 %v1406_v47, %v1063_v49  ;;  %v954_v63 = vadd.f32 %v953_v55, %v2557_v37  ;;  %v1067_v1 = vadd.f32 %v1066_v57, %v2560_v21  ;;  %v955_v3 = vpop.f32.mrb[41].mxu0  ;;  %v1068_v6 = vpop.f32.mrb[41].mxu1  ;;  %v1427_v49 = vld [vmem:[#allocation2 + $0x180] sm:$0xff] }
 0x23b   :  { %v1590_v7 = vadd.f32 %v1589_v52, %v1525_v48  ;;  %v1532_v8 = vmul.f32 %v1468_v54, %v1468_v54  ;;  %v956_v34 = vadd.f32 %v955_v3, %v2563_v23  ;;  %v1069_v12 = vadd.f32 %v1068_v6, %v2566_v24 }
 0x23c   :  { %1347 = vst [vmem:[#allocation9 + $0x100] sm:$0xff] %v954_v63  ;;  %v1475_v50 = vsub.f32 %v1411_v56, %v954_v63  ;;  %1349 = vst [vmem:[#allocation9 + $0x110] sm:$0xff] %v1067_v1  ;;  %v1477_v11 = vsub.f32 %v1413_v59, %v1067_v1  ;;  %v2599_v13 = vrot.slane %v2552_v4, %v841_v40  ;;  %v1428_v59 = vld [vmem:[#allocation2 + $0x188] sm:$0xff] }
 0x23d   :  { %v2601_v14 = vadd.f32 %v1590_v7, %v1526_v10  ;;  %v1533_v15 = vmul.f32 %v1469_v53, %v1469_v53  ;;  %v1598_v16 = vadd.f32 %v1532_v8, %v1531_v61  ;;  %1348 = vst [vmem:[#allocation9 + $0x108] sm:$0xff] %v956_v34  ;;  %v1476_v17 = vsub.f32 %v1412_v5, %v956_v34  ;;  %v959_v45 = vpop.f32.mrb[42].mxu0  ;;  %v1072_v46 = vpop.f32.mrb[42].mxu1  ;;  %v1429_v53 = vld [vmem:[#allocation2 + $0x190] sm:$0xff]  ;;  %v1430_v5 = vld [vmem:[#allocation2 + $0x198] sm:$0xff] }
 0x23e   :  { %v1534_v58 = vmul.f32 %v1470_v62, %v1470_v62  ;;  %v1539_v25 = vmul.f32 %v1475_v50, %v1475_v50  ;;  %1350 = vst [vmem:[#allocation9 + $0x118] sm:$0xff] %v1069_v12  ;;  %v1478_v27 = vsub.f32 %v1414_v9, %v1069_v12  ;;  %v960_v18 = vadd.f32 %v959_v45, %v2557_v37  ;;  %v961_v29 = vpop.f32.mrb[43].mxu0  ;;  %v1074_v40 = vpop.f32.mrb[43].mxu1 }
 0x23f   :  { %v1599_v31 = vadd.f32 %v1598_v16, %v1533_v15  ;;  %v1540_v32 = vmul.f32 %v1476_v17, %v1476_v17  ;;  %v1073_v33 = vadd.f32 %v1072_v46, %v2560_v21  ;;  %v962_v35 = vadd.f32 %v961_v29, %v2563_v23  ;;  %v1435_v15 = vld [vmem:[#allocation2 + $0x1c0] sm:$0xff] }
 0x240   :  { %v1541_v38 = vmul.f32 %v1477_v11, %v1477_v11  ;;  %1355 = vst [vmem:[#allocation9 + $0x140] sm:$0xff] %v960_v18  ;;  %v1483_v39 = vsub.f32 %v1419_v22, %v960_v18  ;;  %v1075_v41 = vadd.f32 %v1074_v40, %v2566_v24  ;;  %v2610_v42 = vrot.slane %v2552_v4, %v849_v60 }
 0x241   :  { %v2612_v43 = vadd.f32 %v1599_v31, %v1534_v58  ;;  %v1607_v44 = vadd.f32 %v1540_v32, %v1539_v25  ;;  %1357 = vst [vmem:[#allocation9 + $0x150] sm:$0xff] %v1073_v33  ;;  %v1485_v47 = vsub.f32 %v1421_v28, %v1073_v33  ;;  %1356 = vst [vmem:[#allocation9 + $0x148] sm:$0xff] %v962_v35  ;;  %v965_v2 = vpop.f32.mrb[44].mxu0  ;;  %v1078_v52 = vpop.f32.mrb[44].mxu1  ;;  %v1437_v58 = vld [vmem:[#allocation2 + $0x1d0] sm:$0xff]  ;;  %v1438_v33 = vld [vmem:[#allocation2 + $0x1d8] sm:$0xff] }
 0x242   :  { %v1484_v48 = vsub.f32 %v1420_v30, %v962_v35  ;;  %v1547_v54 = vmul.f32 %v1483_v39, %v1483_v39  ;;  %1358 = vst [vmem:[#allocation9 + $0x158] sm:$0xff] %v1075_v41  ;;  %v1486_v55 = vsub.f32 %v1422_v36, %v1075_v41  ;;  %v966_v56 = vadd.f32 %v965_v2, %v2557_v37  ;;  %v967_v60 = vpop.f32.mrb[45].mxu0  ;;  %v1080_v61 = vpop.f32.mrb[45].mxu1 }
 0x243   :  { %v1079_v57 = vadd.f32 %v1078_v52, %v2560_v21  ;;  %v1542_v62 = vmul.f32 %v1478_v27, %v1478_v27  ;;  %v1608_v63 = vadd.f32 %v1607_v44, %v1541_v38  ;;  %v968_v3 = vadd.f32 %v967_v60, %v2563_v23  ;;  %v1436_v27 = vld [vmem:[#allocation2 + $0x1c8] sm:$0xff] }
 0x244   :  { %v1548_v1 = vmul.f32 %v1484_v48, %v1484_v48  ;;  %1363 = vst [vmem:[#allocation9 + $0x180] sm:$0xff] %v966_v56  ;;  %v1491_v6 = vsub.f32 %v1427_v49, %v966_v56  ;;  %v1081_v7 = vadd.f32 %v1080_v61, %v2566_v24  ;;  %v2621_v8 = vrot.slane %v2552_v4, %v845_v19 }
 0x245   :  { %1365 = vst [vmem:[#allocation9 + $0x190] sm:$0xff] %v1079_v57  ;;  %v1493_v10 = vsub.f32 %v1429_v53, %v1079_v57  ;;  %v2623_v34 = vadd.f32 %v1608_v63, %v1542_v62  ;;  %v1549_v9 = vmul.f32 %v1485_v47, %v1485_v47  ;;  %1364 = vst [vmem:[#allocation9 + $0x188] sm:$0xff] %v968_v3  ;;  %v971_v12 = vpop.f32.mrb[46].mxu0  ;;  %v1084_v16 = vpop.f32.mrb[46].mxu1  ;;  %v1391_v63 = vld [vmem:[#allocation2 + $0x60] sm:$0xff] }
 0x246   :  { %v1616_v50 = vadd.f32 %v1548_v1, %v1547_v54  ;;  %v1492_v11 = vsub.f32 %v1428_v59, %v968_v3  ;;  %v1550_v17 = vmul.f32 %v1486_v55, %v1486_v55  ;;  %v1555_v45 = vmul.f32 %v1491_v6, %v1491_v6  ;;  %1366 = vst [vmem:[#allocation9 + $0x198] sm:$0xff] %v1081_v7  ;;  %v973_v25 = vpop.f32.mrb[47].mxu0  ;;  %v1086_v19 = vpop.f32.mrb[47].mxu1  ;;  %v1385_v59 = vld [vmem:[#allocation2 + $0x30] sm:$0xff] }
 0x247   :  { %v1494_v22 = vsub.f32 %v1430_v5, %v1081_v7  ;;  %v972_v46 = vadd.f32 %v971_v12, %v2557_v37  ;;  %v1085_v29 = vadd.f32 %v1084_v16, %v2560_v21  ;;  %v974_v30 = vadd.f32 %v973_v25, %v2563_v23  ;;  %v1383_v23 = vld [vmem:[#allocation2 + $0x20] sm:$0xff] }
 0x248   :  { %v1617_v18 = vadd.f32 %v1616_v50, %v1549_v9  ;;  %v1556_v28 = vmul.f32 %v1492_v11, %v1492_v11  ;;  %v1557_v40 = vmul.f32 %v1493_v10, %v1493_v10  ;;  %v1087_v32 = vadd.f32 %v1086_v19, %v2566_v24  ;;  %v1393_v10 = vld [vmem:[#allocation2 + $0x70] sm:$0xff]  ;;  %v1392_v9 = vld [vmem:[#allocation2 + $0x68] sm:$0xff] }
 0x249   :  { %1371 = vst [vmem:[#allocation9 + $0x1c0] sm:$0xff] %v972_v46  ;;  %v1499_v31 = vsub.f32 %v1435_v15, %v972_v46  ;;  %v2632_v37 = vrot.slane %v2552_v4, %v853_v51  ;;  %1373 = vst [vmem:[#allocation9 + $0x1d0] sm:$0xff] %v1085_v29  ;;  %v1501_v38 = vsub.f32 %v1437_v58, %v1085_v29  ;;  %v1155_v39 = vpop.f32.mrb[48].mxu0  ;;  %v1268_v41 = vpop.f32.mrb[48].mxu1  ;;  %v1384_v4 = vld [vmem:[#allocation2 + $0x28] sm:$0xff]  ;;  %v1399_v29 = vld [vmem:[#allocation2 + $0xa0] sm:$0xff] }
 0x24a   :  { %v2634_v35 = vadd.f32 %v1617_v18, %v1550_v17  ;;  %v1625_v36 = vadd.f32 %v1556_v28, %v1555_v45  ;;  %1372 = vst [vmem:[#allocation9 + $0x1c8] sm:$0xff] %v974_v30  ;;  %v1500_v21 = vsub.f32 %v1436_v27, %v974_v30  ;;  %v1558_v44 = vmul.f32 %v1494_v22, %v1494_v22  ;;  %v1157_v48 = vpop.f32.mrb[49].mxu0  ;;  %v1270_v51 = vpop.f32.mrb[49].mxu1  ;;  %v1386_v17 = vld [vmem:[#allocation2 + $0x38] sm:$0xff] }
 0x24b   :  { %v1563_v47 = vmul.f32 %v1499_v31, %v1499_v31  ;;  %1374 = vst [vmem:[#allocation9 + $0x1d8] sm:$0xff] %v1087_v32  ;;  %v1156_v24 = vadd.f32 %v1155_v39, %v2599_v13  ;;  %v1269_v0 = vadd.f32 %v1268_v41, %v2610_v42  ;;  %v1502_v52 = vsub.f32 %v1438_v33, %v1087_v32  ;;  %v1394_v18 = vld [vmem:[#allocation2 + $0x78] sm:$0xff]  ;;  %v1401_v32 = vld [vmem:[#allocation2 + $0xb0] sm:$0xff] }
 0x24c   :  { %v1626_v2 = vadd.f32 %v1625_v36, %v1557_v40  ;;  %v1564_v49 = vmul.f32 %v1500_v21, %v1500_v21  ;;  %v1158_v53 = vadd.f32 %v1157_v48, %v2621_v8  ;;  %v1271_v55 = vadd.f32 %v1270_v51, %v2632_v37  ;;  %v1400_v36 = vld [vmem:[#allocation2 + $0xa8] sm:$0xff]  ;;  %v1402_v48 = vld [vmem:[#allocation2 + $0xb8] sm:$0xff] }
 0x24d   :  { %1319 = vst [vmem:[#allocation9 + $0x20] sm:$0xff] %v1156_v24  ;;  %v1447_v54 = vsub.f32 %v1383_v23, %v1156_v24  ;;  %1321 = vst [vmem:[#allocation9 + $0x30] sm:$0xff] %v1269_v0  ;;  %v1565_v57 = vmul.f32 %v1501_v38, %v1501_v38  ;;  %v1161_v62 = vpop.f32.mrb[50].mxu0  ;;  %v1274_v1 = vpop.f32.mrb[50].mxu1  ;;  %v1566_v11 = vmul.f32 %v1502_v52, %v1502_v52  ;;  %v1407_v52 = vld [vmem:[#allocation2 + $0xe0] sm:$0xff] }
 0x24e   :  { %v2640_v56 = vadd.f32 %v1626_v2, %v1558_v44  ;;  %v1634_v60 = vadd.f32 %v1564_v49, %v1563_v47  ;;  %1320 = vst [vmem:[#allocation9 + $0x28] sm:$0xff] %v1158_v53  ;;  %v1448_v61 = vsub.f32 %v1384_v4, %v1158_v53  ;;  %1322 = vst [vmem:[#allocation9 + $0x38] sm:$0xff] %v1271_v55  ;;  %v1163_v7 = vpop.f32.mrb[51].mxu0  ;;  %v1276_v50 = vpop.f32.mrb[51].mxu1 }
 0x24f   :  { %v1511_v3 = vmul.f32 %v1447_v54, %v1447_v54  ;;  %v1162_v5 = vadd.f32 %v1161_v62, %v2599_v13  ;;  %v1275_v6 = vadd.f32 %v1274_v1, %v2610_v42  ;;  %v1164_v15 = vadd.f32 %v1163_v7, %v2621_v8 }
 0x250   :  { %v1635_v12 = vadd.f32 %v1634_v60, %v1565_v57  ;;  %v1277_v16 = vadd.f32 %v1276_v50, %v2632_v37  ;;  %v1449_v22 = vsub.f32 %v1385_v59, %v1269_v0  ;;  %v1512_v25 = vmul.f32 %v1448_v61, %v1448_v61  ;;  %v1409_v59 = vld [vmem:[#allocation2 + $0xf0] sm:$0xff]  ;;  %v1408_v61 = vld [vmem:[#allocation2 + $0xe8] sm:$0xff] }
 0x251   :  { %v1574_v45 = vadd.f32 %v2583_v20, %v1511_v3  ;;  %1327 = vst [vmem:[#allocation9 + $0x60] sm:$0xff] %v1162_v5  ;;  %v1455_v46 = vsub.f32 %v1391_v63, %v1162_v5  ;;  %1329 = vst [vmem:[#allocation9 + $0x70] sm:$0xff] %v1275_v6  ;;  %v1457_v27 = vsub.f32 %v1393_v10, %v1275_v6  ;;  %v1167_v28 = vpop.f32.mrb[52].mxu0  ;;  %v1280_v30 = vpop.f32.mrb[52].mxu1 }
 0x252   :  { %v2647_v58 = vadd.f32 %v1635_v12, %v1566_v11  ;;  %1328 = vst [vmem:[#allocation9 + $0x68] sm:$0xff] %v1164_v15  ;;  %v1456_v19 = vsub.f32 %v1392_v9, %v1164_v15  ;;  %1330 = vst [vmem:[#allocation9 + $0x78] sm:$0xff] %v1277_v16  ;;  %v1168_v31 = vadd.f32 %v1167_v28, %v2599_v13  ;;  %v1169_v33 = vpop.f32.mrb[53].mxu0  ;;  %v1282_v38 = vpop.f32.mrb[53].mxu1  ;;  %v1410_v9 = vld [vmem:[#allocation2 + $0xf8] sm:$0xff] }
 0x253   :  { %v1519_v40 = vmul.f32 %v1455_v46, %v1455_v46  ;;  %v1281_v20 = vadd.f32 %v1280_v30, %v2610_v42  ;;  %v1450_v21 = vsub.f32 %v1386_v17, %v1271_v55  ;;  %v1170_v23 = vadd.f32 %v1169_v33, %v2621_v8  ;;  %v1418_v33 = vld [vmem:[#allocation2 + $0x138] sm:$0xff] }
 0x254   :  { %v1520_v39 = vmul.f32 %v1456_v19, %v1456_v19  ;;  %v1283_v41 = vadd.f32 %v1282_v38, %v2632_v37  ;;  %v1513_v44 = vmul.f32 %v1449_v22, %v1449_v22  ;;  %v1458_v24 = vsub.f32 %v1394_v18, %v1277_v16  ;;  %1335 = vst [vmem:[#allocation9 + $0xa0] sm:$0xff] %v1168_v31  ;;  %v1415_v22 = vld [vmem:[#allocation2 + $0x120] sm:$0xff]  ;;  %v1417_v18 = vld [vmem:[#allocation2 + $0x130] sm:$0xff] }
 0x255   :  { %v1583_v47 = vadd.f32 %v2590_v26, %v1519_v40  ;;  %v1463_v0 = vsub.f32 %v1399_v29, %v1168_v31  ;;  %1337 = vst [vmem:[#allocation9 + $0xb0] sm:$0xff] %v1281_v20  ;;  %v1521_v4 = vmul.f32 %v1457_v27, %v1457_v27  ;;  %v1465_v51 = vsub.f32 %v1401_v32, %v1281_v20  ;;  %v1173_v49 = vpop.f32.mrb[54].mxu0  ;;  %v1286_v53 = vpop.f32.mrb[54].mxu1  ;;  %v1416_v29 = vld [vmem:[#allocation2 + $0x128] sm:$0xff] }
 0x256   :  { %1336 = vst [vmem:[#allocation9 + $0xa8] sm:$0xff] %v1170_v23  ;;  %v1464_v2 = vsub.f32 %v1400_v36, %v1170_v23  ;;  %1338 = vst [vmem:[#allocation9 + $0xb8] sm:$0xff] %v1283_v41  ;;  %v1575_v54 = vadd.f32 %v1574_v45, %v1512_v25  ;;  %v1174_v60 = vadd.f32 %v1173_v49, %v2599_v13  ;;  %v1175_v26 = vpop.f32.mrb[55].mxu0  ;;  %v1288_v62 = vpop.f32.mrb[55].mxu1 }
 0x257   :  { %v1584_v55 = vadd.f32 %v1583_v47, %v1520_v39  ;;  %v1527_v57 = vmul.f32 %v1463_v0, %v1463_v0  ;;  %v1514_v63 = vmul.f32 %v1450_v21, %v1450_v21  ;;  %v1287_v1 = vadd.f32 %v1286_v53, %v2610_v42 }
 0x258   :  { %v1176_v3 = vadd.f32 %v1175_v26, %v2621_v8  ;;  %v1289_v5 = vadd.f32 %v1288_v62, %v2632_v37  ;;  %v1466_v6 = vsub.f32 %v1402_v48, %v1283_v41  ;;  %1343 = vst [vmem:[#allocation9 + $0xe0] sm:$0xff] %v1174_v60  ;;  %v1471_v7 = vsub.f32 %v1407_v52, %v1174_v60  ;;  %v1424_v52 = vld [vmem:[#allocation2 + $0x168] sm:$0xff]  ;;  %v1425_v60 = vld [vmem:[#allocation2 + $0x170] sm:$0xff] }
 0x259   :  { %v1592_v10 = vadd.f32 %v2601_v14, %v1527_v57  ;;  %v1576_v50 = vadd.f32 %v1575_v54, %v1513_v44  ;;  %v1585_v11 = vadd.f32 %v1584_v55, %v1521_v4  ;;  %v1522_v12 = vmul.f32 %v1458_v24, %v1458_v24  ;;  %1345 = vst [vmem:[#allocation9 + $0xf0] sm:$0xff] %v1287_v1  ;;  %v1179_v45 = vpop.f32.mrb[56].mxu0  ;;  %v1292_v46 = vpop.f32.mrb[56].mxu1 }
 0x25a   :  { %v1528_v15 = vmul.f32 %v1464_v2, %v1464_v2  ;;  %v1473_v16 = vsub.f32 %v1409_v59, %v1287_v1  ;;  %1344 = vst [vmem:[#allocation9 + $0xe8] sm:$0xff] %v1176_v3  ;;  %v1472_v17 = vsub.f32 %v1408_v61, %v1176_v3  ;;  %1346 = vst [vmem:[#allocation9 + $0xf8] sm:$0xff] %v1289_v5  ;;  %v1181_v28 = vpop.f32.mrb[57].mxu0  ;;  %v1294_v30 = vpop.f32.mrb[57].mxu1 }
 0x25b   :  { %v1535_v25 = vmul.f32 %v1471_v7, %v1471_v7  ;;  %v1577_v27 = vadd.f32 %v1576_v50, %v1514_v63  ;;  %v1180_v19 = vadd.f32 %v1179_v45, %v2599_v13  ;;  %v1293_v14 = vadd.f32 %v1292_v46, %v2610_v42  ;;  %v1431_v7 = vld [vmem:[#allocation2 + $0x1a0] sm:$0xff] }
 0x25c   :  { %v1529_v40 = vmul.f32 %v1465_v51, %v1465_v51  ;;  %v1536_v31 = vmul.f32 %v1472_v17, %v1472_v17  ;;  %v1474_v20 = vsub.f32 %v1410_v9, %v1289_v5  ;;  %v1182_v32 = vadd.f32 %v1181_v28, %v2621_v8 }
 0x25d   :  { %v1601_v36 = vadd.f32 %v2612_v43, %v1535_v25  ;;  %1578 = vadd.xlane.f32.xlu0 %v1577_v27  ;;  %1351 = vst [vmem:[#allocation9 + $0x120] sm:$0xff] %v1180_v19  ;;  %v1479_v38 = vsub.f32 %v1415_v22, %v1180_v19  ;;  %1353 = vst [vmem:[#allocation9 + $0x130] sm:$0xff] %v1293_v14  ;;  %v1295_v21 = vadd.f32 %v1294_v30, %v2632_v37  ;;  %v1185_v47 = vpop.f32.mrb[58].mxu0  ;;  %v1298_v24 = vpop.f32.mrb[58].mxu1  ;;  %v1423_v43 = vld [vmem:[#allocation2 + $0x160] sm:$0xff]  ;;  %v1432_v19 = vld [vmem:[#allocation2 + $0x1a8] sm:$0xff] }
 0x25e   :  { %v1530_v39 = vmul.f32 %v1466_v6, %v1466_v6  ;;  %v1481_v23 = vsub.f32 %v1417_v18, %v1293_v14  ;;  %1352 = vst [vmem:[#allocation9 + $0x128] sm:$0xff] %v1182_v32  ;;  %v1480_v41 = vsub.f32 %v1416_v29, %v1182_v32  ;;  %v1586_v44 = vadd.f32 %v1585_v11, %v1522_v12  ;;  %v1187_v49 = vpop.f32.mrb[59].mxu0  ;;  %v1300_v53 = vpop.f32.mrb[59].mxu1  ;;  %v1426_v6 = vld [vmem:[#allocation2 + $0x178] sm:$0xff] }
 0x25f   :  { %v1593_v0 = vadd.f32 %v1592_v10, %v1528_v15  ;;  %v1537_v48 = vmul.f32 %v1473_v16, %v1473_v16  ;;  %v1602_v4 = vadd.f32 %v1601_v36, %v1536_v31  ;;  %v1543_v51 = vmul.f32 %v1479_v38, %v1479_v38  ;;  %1354 = vst [vmem:[#allocation9 + $0x138] sm:$0xff] %v1295_v21  ;;  %v1433_v16 = vld [vmem:[#allocation2 + $0x1b0] sm:$0xff]  ;;  %v1434_v30 = vld [vmem:[#allocation2 + $0x1b8] sm:$0xff] }
 0x260   :  { %v1482_v2 = vsub.f32 %v1418_v33, %v1295_v21  ;;  %v1544_v54 = vmul.f32 %v1480_v41, %v1480_v41  ;;  %v1186_v55 = vadd.f32 %v1185_v47, %v2599_v13  ;;  %v1299_v57 = vadd.f32 %v1298_v24, %v2610_v42  ;;  %v1439_v33 = vld [vmem:[#allocation2 + $0x1e0] sm:$0xff]  ;;  %v1440_v47 = vld [vmem:[#allocation2 + $0x1e8] sm:$0xff] }
 0x261   :  { %v1188_v59 = vadd.f32 %v1187_v49, %v2621_v8  ;;  %v1538_v26 = vmul.f32 %v1474_v20, %v1474_v20  ;;  %v1610_v61 = vadd.f32 %v2623_v34, %v1543_v51  ;;  %1587 = vadd.xlane.f32.xlu0 %v1586_v44  ;;  %v1301_v62 = vadd.f32 %v1300_v53, %v2632_v37  ;;  %v1191_v10 = vpop.f32.mrb[60].mxu0  ;;  %v1304_v9 = vpop.f32.mrb[60].mxu1 }
 0x262   :  { %v1594_v63 = vadd.f32 %v1593_v0, %v1529_v40  ;;  %v1545_v1 = vmul.f32 %v1481_v23, %v1481_v23  ;;  %1359 = vst [vmem:[#allocation9 + $0x160] sm:$0xff] %v1186_v55  ;;  %v1487_v3 = vsub.f32 %v1423_v43, %v1186_v55  ;;  %1361 = vst [vmem:[#allocation9 + $0x170] sm:$0xff] %v1299_v57  ;;  %v1193_v17 = vpop.f32.mrb[61].mxu0  ;;  %v1306_v45 = vpop.f32.mrb[61].mxu1  ;;  %v1442_v55 = vld [vmem:[#allocation2 + $0x1f8] sm:$0xff] }
 0x263   :  { %1360 = vst [vmem:[#allocation9 + $0x168] sm:$0xff] %v1188_v59  ;;  %v1488_v5 = vsub.f32 %v1424_v52, %v1188_v59  ;;  %v1603_v50 = vadd.f32 %v1602_v4, %v1537_v48  ;;  %v1611_v11 = vadd.f32 %v1610_v61, %v1544_v54  ;;  %v1489_v12 = vsub.f32 %v1425_v60, %v1299_v57  ;;  %v1441_v4 = vld [vmem:[#allocation2 + $0x1f0] sm:$0xff] }
 0x264   :  { %1362 = vst [vmem:[#allocation9 + $0x178] sm:$0xff] %v1301_v62  ;;  %v1595_v15 = vadd.f32 %v1594_v63, %v1530_v39  ;;  %v1192_v34 = vadd.f32 %v1191_v10, %v2599_v13  ;;  %v1546_v22 = vmul.f32 %v1482_v2, %v1482_v2  ;;  %v1551_v46 = vmul.f32 %v1487_v3, %v1487_v3 }
 0x265   :  { %v1552_v25 = vmul.f32 %v1488_v5, %v1488_v5  ;;  %v1305_v27 = vadd.f32 %v1304_v9, %v2610_v42  ;;  %v1490_v14 = vsub.f32 %v1426_v6, %v1301_v62  ;;  %v1194_v28 = vadd.f32 %v1193_v17, %v2621_v8  ;;  %v1197_v32 = vpop.f32.mrb[62].mxu0  ;;  %v1310_v36 = vpop.f32.mrb[62].mxu1 }
 0x266   :  { %1596 = vadd.xlane.f32.xlu1 %v1595_v15  ;;  %1367 = vst [vmem:[#allocation9 + $0x1a0] sm:$0xff] %v1192_v34  ;;  %v1495_v18 = vsub.f32 %v1431_v7, %v1192_v34  ;;  %v1307_v29 = vadd.f32 %v1306_v45, %v2632_v37  ;;  %v1619_v40 = vadd.f32 %v2634_v35, %v1551_v46  ;;  %v1199_v44 = vpop.f32.mrb[63].mxu0  ;;  %v1312_v24 = vpop.f32.mrb[63].mxu1 }
 0x267   :  { %1369 = vst [vmem:[#allocation9 + $0x1b0] sm:$0xff] %v1305_v27  ;;  %v1497_v31 = vsub.f32 %v1433_v16, %v1305_v27  ;;  %v1604_v20 = vadd.f32 %v1603_v50, %v1538_v26  ;;  %v1612_v38 = vadd.f32 %v1611_v11, %v1545_v1  ;;  %v1553_v21 = vmul.f32 %v1489_v12, %v1489_v12 }
 0x268   :  { %v1559_v39 = vmul.f32 %v1495_v18, %v1495_v18  ;;  %1368 = vst [vmem:[#allocation9 + $0x1a8] sm:$0xff] %v1194_v28  ;;  %v1496_v23 = vsub.f32 %v1432_v19, %v1194_v28  ;;  %1370 = vst [vmem:[#allocation9 + $0x1b8] sm:$0xff] %v1307_v29  ;;  %v1198_v41 = vadd.f32 %v1197_v32, %v2599_v13 }
 0x269   :  { %v1620_v0 = vadd.f32 %v1619_v40, %v1552_v25  ;;  %v1498_v48 = vsub.f32 %v1434_v30, %v1307_v29  ;;  %v1311_v35 = vadd.f32 %v1310_v36, %v2610_v42  ;;  %v1200_v51 = vadd.f32 %v1199_v44, %v2621_v8 }
 0x26a   :  { %v1554_v2 = vmul.f32 %v1490_v14, %v1490_v14  ;;  %v1628_v43 = vadd.f32 %v2640_v56, %v1559_v39  ;;  %v1560_v49 = vmul.f32 %v1496_v23, %v1496_v23  ;;  %1605 = vadd.xlane.f32.xlu1 %v1604_v20  ;;  %1375 = vst [vmem:[#allocation9 + $0x1e0] sm:$0xff] %v1198_v41 }
 0x26b   :  { %v1503_v52 = vsub.f32 %v1439_v33, %v1198_v41  ;;  %v1561_v53 = vmul.f32 %v1497_v31, %v1497_v31  ;;  %1377 = vst [vmem:[#allocation9 + $0x1f0] sm:$0xff] %v1311_v35  ;;  %1376 = vst [vmem:[#allocation9 + $0x1e8] sm:$0xff] %v1200_v51  ;;  %v1504_v13 = vsub.f32 %v1440_v47, %v1200_v51 }
 0x26c   :  { %v1313_v54 = vadd.f32 %v1312_v24, %v2632_v37  ;;  %v1613_v57 = vadd.f32 %v1612_v38, %v1546_v22  ;;  %v1629_v60 = vadd.f32 %v1628_v43, %v1560_v49  ;;  %v1505_v59 = vsub.f32 %v1441_v4, %v1311_v35 }
 0x26d   :  { %v1567_v42 = vmul.f32 %v1503_v52, %v1503_v52  ;;  %v1621_v26 = vadd.f32 %v1620_v0, %v1553_v21  ;;  %v1562_v8 = vmul.f32 %v1498_v48, %v1498_v48  ;;  %v1568_v61 = vmul.f32 %v1504_v13, %v1504_v13 }
 0x26e   :  { %1378 = vst [vmem:[#allocation9 + $0x1f8] sm:$0xff] %v1313_v54  ;;  %1614 = vadd.xlane.f32.xlu0 %v1613_v57  ;;  %v1506_v62 = vsub.f32 %v1442_v55, %v1313_v54  ;;  %v1630_v1 = vadd.f32 %v1629_v60, %v1561_v53  ;;  %v1569_v3 = vmul.f32 %v1505_v59, %v1505_v59 }
 0x26f   :  { %v1637_v56 = vadd.f32 %v2647_v58, %v1567_v42  ;;  %v1622_v63 = vadd.f32 %v1621_v26, %v1554_v2 }
 0x270   :  { %v1631_v6 = vadd.f32 %v1630_v1, %v1562_v8  ;;  %v1570_v37 = vmul.f32 %v1506_v62, %v1506_v62 }
 0x271   :  { %v1638_v5 = vadd.f32 %v1637_v56, %v1568_v61  ;;  %1623 = vadd.xlane.f32.xlu1 %v1622_v63 }
 0x272   :  { %1632 = vadd.xlane.f32.xlu0 %v1631_v6 }
 0x273   :  { %v1639_v10 = vadd.f32 %v1638_v5, %v1569_v3 }
 0x275   :  { %v1640_v7 = vadd.f32 %v1639_v10, %v1570_v37 }
 0x277   :  { %1641 = vadd.xlane.f32.xlu1 %v1640_v7 }
 0x278   :  { %2285 = shalt.err (!%p2282_p0)
}
 0x279   :  { %s2286_s27 = scalar_lea.hbm %s2738_s6, 8192 }
 0x27a   :  { %p2287_p1 = scmp.ne.s32.totalorder %s2738_s6, %s2286_s27  ;;  %p2290_p2 = scmp.lt.u32.totalorder %s2286_s27, %s2738_s6 }
 0x27c   :  { %p2292_p3 = pnand %p2290_p2, %p2287_p1 }
 0x27e   :  { %2295 = shalt.err (!%p2292_p3)
}
 0x27f   :  { %1690 = dma.vmem_to_hbm [thread:$0]  %s1685_s20, 8192, %s2738_s6, [#allocation10], %s2352_s1, %s2352_s1, %s2353_s25  }
 0x280   :  { %s2296_s13 = scalar_lea.vmem %s2680_s22, 1024  ;;  %p2301_p5 = scmp.lt.s32.totalorder %s2680_s22, %s2680_s22 }
 0x281   :  { %p2297_p4 = scmp.ne.s32.totalorder %s2680_s22, %s2296_s13  ;;  %p2302_p6 = scmp.lt.s32.totalorder %s2296_s13, %s2296_s13 }
 0x283   :  { %p2303_p7 = por %p2302_p6, %p2301_p5 }
 0x285   :  { %p2304_p8 = pnand %p2303_p7, %p2297_p4 }
 0x287   :  { %2307 = shalt.err (!%p2304_p8)
}
 0x288   :  { %s2308_s17 = scalar_lea.hbm %s2737_s5, 1024 }
 0x289   :  { %p2309_p9 = scmp.ne.s32.totalorder %s2737_s5, %s2308_s17  ;;  %p2312_p10 = scmp.lt.u32.totalorder %s2308_s17, %s2737_s5 }
 0x28b   :  { %p2314_p11 = pnand %p2312_p10, %p2309_p9 }
 0x28d   :  { %2317 = shalt.err (!%p2314_p11)
}
 0x28e   :  { %1678 = dma.vmem_to_hbm [thread:$0]  %s2680_s22, 1024, %s2737_s5, [#allocation4], %s2349_s11, %s2349_s11, %s2350_s12  }
 0x28f   :  { %s2358_s5 = smov [#allocation11]  }
 0x290   :  { %s1696_s25 = sshll.u32 %s2358_s5, 4  ;;  %s1697_s25 = int_to_ptr.vmem [resolvable:$true] %s1696_s25 }
 0x291   :  { %s2318_s2 = scalar_lea.vmem %s1697_s25, 1024  ;;  %p2323_p13 = scmp.lt.s32.totalorder %s1697_s25, %s1697_s25 }
 0x292   :  { %p2319_p12 = scmp.ne.s32.totalorder %s1697_s25, %s2318_s2  ;;  %p2324_p0 = scmp.lt.s32.totalorder %s2318_s2, %s2318_s2 }
 0x294   :  { %p2325_p1 = por %p2324_p0, %p2323_p13 }
 0x296   :  { %p2326_p2 = pnand %p2325_p1, %p2319_p12 }
 0x2ea   :  { %v1579_v58 = vpop.xlane.xlu0 %1578 }
 0x2eb   :  { %v1643_v9 = vmul.f32 -0.5, %v1579_v58 }
 0x2ed   :  { %v1651_v50 = vadd.f32 -940.99304, %v1643_v9 }
 0x2ee   :  { %v1588_v11 = vpop.xlane.xlu0 %1587 }
 0x2ef   :  { %1659 = vst [vmem:[#allocation11] sm:$0xff] %v1651_v50  ;;  %v1644_v12 = vmul.f32 -0.5, %v1588_v11 }
 0x2f1   :  { %v1652_v15 = vadd.f32 -940.99304, %v1644_v12 }
 0x2f3   :  { %v1597_v34 = vpop.xlane.xlu1 %1596  ;;  %1660 = vst [vmem:[#allocation11 + $0x8] sm:$0xff] %v1652_v15 }
 0x2f4   :  { %v1645_v16 = vmul.f32 -0.5, %v1597_v34 }
 0x2f6   :  { %v1653_v17 = vadd.f32 -940.99304, %v1645_v16 }
 0x2f7   :  { %v1606_v45 = vpop.xlane.xlu1 %1605 }
 0x2f8   :  { %1661 = vst [vmem:[#allocation11 + $0x10] sm:$0xff] %v1653_v17  ;;  %v1646_v22 = vmul.f32 -0.5, %v1606_v45 }
 0x2fa   :  { %v1654_v46 = vadd.f32 -940.99304, %v1646_v22 }
 0x2fb   :  { %v1615_v25 = vpop.xlane.xlu0 %1614 }
 0x2fc   :  { %v1647_v27 = vmul.f32 -0.5, %v1615_v25  ;;  %1662 = vst [vmem:[#allocation11 + $0x18] sm:$0xff] %v1654_v46 }
 0x2fe   :  { %v1655_v19 = vadd.f32 -940.99304, %v1647_v27  ;;  %v1624_v14 = vpop.xlane.xlu1 %1623 }
 0x2ff   :  { %v1648_v18 = vmul.f32 -0.5, %v1624_v14  ;;  %v1633_v28 = vpop.xlane.xlu0 %1632 }
 0x300   :  { %1663 = vst [vmem:[#allocation11 + $0x20] sm:$0xff] %v1655_v19  ;;  %v1649_v30 = vmul.f32 -0.5, %v1633_v28 }
 0x301   :  { %v1656_v29 = vadd.f32 -940.99304, %v1648_v18 }
 0x302   :  { %v1657_v40 = vadd.f32 -940.99304, %v1649_v30 }
 0x303   :  { %1664 = vst [vmem:[#allocation11 + $0x28] sm:$0xff] %v1656_v29 }
 0x304   :  { %v1642_v31 = vpop.xlane.xlu1 %1641  ;;  %1665 = vst [vmem:[#allocation11 + $0x30] sm:$0xff] %v1657_v40 }
 0x305   :  { %v1650_v20 = vmul.f32 -0.5, %v1642_v31 }
 0x307   :  { %v1658_v32 = vadd.f32 -940.99304, %v1650_v20 }
 0x309   :  { %1666 = vst [vmem:[#allocation11 + $0x38] sm:$0xff] %v1658_v32 }
 0x30a   :  { %2329 = shalt.err (!%p2326_p2)
}
 0x30b   :  { %s2330_s20 = scalar_lea.hbm %s2739_s7, 1024 }
 0x30c   :  { %p2331_p3 = scmp.ne.s32.totalorder %s2739_s7, %s2330_s20  ;;  %p2334_p4 = scmp.lt.u32.totalorder %s2330_s20, %s2739_s7 }
 0x30e   :  { %p2336_p5 = pnand %p2334_p4, %p2331_p3 }
 0x310   :  { %2339 = shalt.err (!%p2336_p5)
}
 0x311   :  { %1702 = dma.vmem_to_hbm [thread:$0]  %s1697_s25, 1024, %s2739_s7, [#allocation10], %s2349_s11, %s2349_s11, %s2350_s12  }
 0x312   :  { %2344 = dma.done.wait [#allocation4], 1024  }
 0x313   :  { %2345 = vsyncadd [#allocation4], 4294966272 }
 0x314   :  { %2346 = dma.done.wait [#allocation10], 9216  }
 0x315   :  { %2347 = vsyncadd [#allocation10], 4294958080 }
 0x316   :  { %1712 = vsyncpa [#allocation3], 1 }
 0x317   :  { %1713 = vsyncpa [#allocation6], 1 }
 0x318   :  { %1714 = vsyncpa [#allocation4], 1 }
 0x319   :  { %1715 = vsyncpa [#allocation10], 1 }

</bundles_post_ra>
